<compile_context>
chip_gen: v7x
topology: tpu7x:2x2x1
jax: 0.10.0
libtpu: 0.0.40
codegen_flags: <defaults>
</compile_context>

<pallas_src>
import math

import jax
import jax.numpy as jnp
from jax import lax
from jax.experimental import pallas as pl
from jax.experimental.pallas import tpu as pltpu

# ----------------------------- config ---------------------------------------
SRC_VOCAB = 16
TGT_VOCAB = 16
D_MODEL = 32
NUM_HEADS = 4
NUM_LAYERS = 2
D_FF = 64
MAX_SEQ = 8
DH = D_MODEL // NUM_HEADS
SCALE = 1.0 / math.sqrt(DH)
PAD_OUT = 128          # lane-dense padded logits width
PACK_W = 128           # packed parameter buffer lane width
LN_EPS = 1e-5
NEG_INF = -1e9


# ------------------------- parameter packing ---------------------------------
def pack_tree(tree):
    """Pack every 2-D leaf of `tree` into one (R, 128) f32 buffer.

    Returns (packed_buffer, layout) where `layout` mirrors the tree but each
    leaf is a static (row_offset, rows, cols) tuple.  Row offsets are multiples
    of 8 (sublane aligned)."""
    rows = []
    state = {"offset": 0}

    def add(arr):
        arr = jnp.asarray(arr, jnp.float32)
        r, c = arr.shape
        rp = -(-r // 8) * 8                       # round rows up to sublane mult
        buf = jnp.zeros((rp, PACK_W), jnp.float32).at[:r, :c].set(arr)
        rows.append(buf)
        entry = (state["offset"], r, c)
        state["offset"] += rp
        return entry

    layout = jax.tree_util.tree_map(add, tree)
    return jnp.concatenate(rows, axis=0), layout


# ------------------------- fused Pallas forward ------------------------------
def build_forward(layout, B, Ss, St, packed_shape):
    """Build the single-pallas_call forward for fixed shapes and param layout."""

    def kernel(src_ref, tgt_ref, w_ref, out_ref):
        # ---- packed-parameter reader (all-static slices) ----
        def rd(entry):
            off, r, c = entry
            return w_ref[off:off + r, :c]

        # ---- embeddings + positional encoding + masks (fused glue) ----
        src_ids = src_ref[...]                    # (1, Ss) int32, key-axis layout
        tgt_ids = tgt_ref[...]                    # (St, 1) int32, query-axis layout

        oh_src = (lax.broadcasted_iota(jnp.int32, (SRC_VOCAB, Ss), 0)
                  == src_ids).astype(jnp.float32)                 # (V, Ss)
        x = lax.dot_general(oh_src, rd(layout["enc_emb"]),
                            (((0,), (0,)), ((), ())),
                            preferred_element_type=jnp.float32)   # (Ss, D)
        oh_tgt = (lax.broadcasted_iota(jnp.int32, (St, TGT_VOCAB), 1)
                  == tgt_ids).astype(jnp.float32)                 # (St, V)
        y = jnp.dot(oh_tgt, rd(layout["dec_emb"]),
                    preferred_element_type=jnp.float32)           # (St, D)

        pe = rd(layout["pe"])                                     # (MAX_SEQ, D)
        x = x + pe[:Ss, :]
        y = y + pe[:St, :]
        # TODO(synk): dropout is identity (eval mode) — stochastic op omitted.

        # additive biases: 0 = keep, -1e9 = masked
        enc_bias = jnp.where(src_ids == 0, NEG_INF, 0.0)          # (1, Ss), keys
        q_iota = lax.broadcasted_iota(jnp.int32, (St, St), 0)
        k_iota = lax.broadcasted_iota(jnp.int32, (St, St), 1)
        dec_allow = jnp.logical_and(k_iota <= q_iota, tgt_ids != 0)
        dec_bias = jnp.where(dec_allow, 0.0, NEG_INF)             # (St, St)

        # ---- building blocks ----
        def layernorm(z, g_e, b_e):
            mu = jnp.mean(z, axis=-1, keepdims=True)
            ms = jnp.mean(z * z, axis=-1, keepdims=True)
            var = ms - mu * mu
            return (z - mu) * lax.rsqrt(var + LN_EPS) * rd(g_e) + rd(b_e)

        def attention(q, k, v, bias):
            sq, sk = q.shape[0], k.shape[0]
            q3 = jnp.transpose(q.reshape(sq, NUM_HEADS, DH), (1, 0, 2))
            k3 = jnp.transpose(k.reshape(sk, NUM_HEADS, DH), (1, 0, 2))
            v3 = jnp.transpose(v.reshape(sk, NUM_HEADS, DH), (1, 0, 2))
            s = jnp.einsum("hqd,hkd->hqk", q3, k3,
                           preferred_element_type=jnp.float32) * SCALE + bias
            s = s - jnp.max(s, axis=-1, keepdims=True)
            e = jnp.exp(s)
            pr = e * pl.reciprocal(jnp.sum(e, axis=-1, keepdims=True),
                                   approx=True)
            o = jnp.einsum("hqk,hkd->hqd", pr, v3,
                           preferred_element_type=jnp.float32)    # (H, Sq, DH)
            return jnp.transpose(o, (1, 0, 2)).reshape(sq, D_MODEL)

        def self_attn(xin, bias, lp):
            qkv = jnp.dot(xin, rd(lp["w_qkv"]),
                          preferred_element_type=jnp.float32) + rd(lp["b_qkv"])
            a = attention(qkv[:, :D_MODEL],
                          qkv[:, D_MODEL:2 * D_MODEL],
                          qkv[:, 2 * D_MODEL:3 * D_MODEL], bias)
            return jnp.dot(a, rd(lp["w_o"]),
                           preferred_element_type=jnp.float32) + rd(lp["b_o"])

        def cross_attn(xin, enc, bias, lp):
            q = jnp.dot(xin, rd(lp["w_q"]),
                        preferred_element_type=jnp.float32) + rd(lp["b_q"])
            kv = jnp.dot(enc, rd(lp["w_kv"]),
                         preferred_element_type=jnp.float32) + rd(lp["b_kv"])
            a = attention(q, kv[:, :D_MODEL], kv[:, D_MODEL:2 * D_MODEL], bias)
            return jnp.dot(a, rd(lp["w_o"]),
                           preferred_element_type=jnp.float32) + rd(lp["b_o"])

        def ffn(xin, lp):
            h = jnp.dot(xin, rd(lp["ff_w1"]),
                        preferred_element_type=jnp.float32) + rd(lp["ff_b1"])
            h = jnp.maximum(h, 0.0)
            return jnp.dot(h, rd(lp["ff_w2"]),
                           preferred_element_type=jnp.float32) + rd(lp["ff_b2"])

        # ---- encoder stack ----
        for lp in layout["enc"]:
            a = self_attn(x, enc_bias, lp["attn"])
            x = layernorm(x + a, lp["ln1_g"], lp["ln1_b"])
            f = ffn(x, lp)
            x = layernorm(x + f, lp["ln2_g"], lp["ln2_b"])
        enc_out = x

        # ---- decoder stack ----
        for lp in layout["dec"]:
            a = self_attn(y, dec_bias, lp["self_attn"])
            y = layernorm(y + a, lp["ln1_g"], lp["ln1_b"])
            c = cross_attn(y, enc_out, enc_bias, lp["cross_attn"])
            y = layernorm(y + c, lp["ln2_g"], lp["ln2_b"])
            f = ffn(y, lp)
            y = layernorm(y + f, lp["ln3_g"], lp["ln3_b"])

        # ---- final projection (padded to 128 lanes -> unmasked store) ----
        out_ref[...] = jnp.dot(y, rd(layout["fc_w"]),
                               preferred_element_type=jnp.float32) + rd(layout["fc_b"])

    return pl.pallas_call(
        kernel,
        out_shape=jax.ShapeDtypeStruct((B, St, PAD_OUT), jnp.float32),
        grid=(B,),
        in_specs=[
            pl.BlockSpec((None, 1, Ss), lambda b: (b, 0, 0)),   # src ids (key axis)
            pl.BlockSpec((None, St, 1), lambda b: (b, 0, 0)),   # tgt ids (query axis)
            pl.BlockSpec(packed_shape, lambda b: (0, 0)),       # packed params (1 DMA)
        ],
        out_specs=pl.BlockSpec((None, St, PAD_OUT), lambda b: (b, 0, 0)),
        compiler_params=pltpu.CompilerParams(
            dimension_semantics=("parallel",)),
    )


# ----------------------------- init ------------------------------------------
def _dense(key, fan_in, fan_out):
    k1, k2 = jax.random.split(key)
    bound = 1.0 / math.sqrt(fan_in)
    w = jax.random.uniform(k1, (fan_in, fan_out), jnp.float32, -bound, bound)
    b = jax.random.uniform(k2, (1, fan_out), jnp.float32, -bound, bound)
    return w, b


def _fused_dense(key, fan_in, fan_out, n):
    ks = jax.random.split(key, n)
    ws, bs = zip(*[_dense(k, fan_in, fan_out) for k in ks])
    return jnp.concatenate(ws, axis=1), jnp.concatenate(bs, axis=1)


def _enc_layer(key):
    ks = jax.random.split(key, 4)
    w_qkv, b_qkv = _fused_dense(ks[0], D_MODEL, D_MODEL, 3)
    w_o, b_o = _dense(ks[1], D_MODEL, D_MODEL)
    ff_w1, ff_b1 = _dense(ks[2], D_MODEL, D_FF)
    ff_w2, ff_b2 = _dense(ks[3], D_FF, D_MODEL)
    return dict(attn=dict(w_qkv=w_qkv, b_qkv=b_qkv, w_o=w_o, b_o=b_o),
                ff_w1=ff_w1, ff_b1=ff_b1, ff_w2=ff_w2, ff_b2=ff_b2,
                ln1_g=jnp.ones((1, D_MODEL)), ln1_b=jnp.zeros((1, D_MODEL)),
                ln2_g=jnp.ones((1, D_MODEL)), ln2_b=jnp.zeros((1, D_MODEL)))


def _dec_layer(key):
    ks = jax.random.split(key, 7)
    sw_qkv, sb_qkv = _fused_dense(ks[0], D_MODEL, D_MODEL, 3)
    sw_o, sb_o = _dense(ks[1], D_MODEL, D_MODEL)
    cw_q, cb_q = _dense(ks[2], D_MODEL, D_MODEL)
    cw_kv, cb_kv = _fused_dense(ks[3], D_MODEL, D_MODEL, 2)
    cw_o, cb_o = _dense(ks[4], D_MODEL, D_MODEL)
    ff_w1, ff_b1 = _dense(ks[5], D_MODEL, D_FF)
    ff_w2, ff_b2 = _dense(ks[6], D_FF, D_MODEL)
    return dict(
        self_attn=dict(w_qkv=sw_qkv, b_qkv=sb_qkv, w_o=sw_o, b_o=sb_o),
        cross_attn=dict(w_q=cw_q, b_q=cb_q, w_kv=cw_kv, b_kv=cb_kv,
                        w_o=cw_o, b_o=cb_o),
        ff_w1=ff_w1, ff_b1=ff_b1, ff_w2=ff_w2, ff_b2=ff_b2,
        ln1_g=jnp.ones((1, D_MODEL)), ln1_b=jnp.zeros((1, D_MODEL)),
        ln2_g=jnp.ones((1, D_MODEL)), ln2_b=jnp.zeros((1, D_MODEL)),
        ln3_g=jnp.ones((1, D_MODEL)), ln3_b=jnp.zeros((1, D_MODEL)))


def sinusoidal_pe(max_len, d_model):
    pos = jnp.arange(max_len, dtype=jnp.float32)[:, None]
    div = jnp.exp(jnp.arange(0, d_model, 2, dtype=jnp.float32)
                  * (-math.log(10000.0) / d_model))
    pe = jnp.zeros((max_len, d_model), jnp.float32)
    pe = pe.at[:, 0::2].set(jnp.sin(pos * div))
    pe = pe.at[:, 1::2].set(jnp.cos(pos * div))
    return pe


def init_params(key):
    ks = jax.random.split(key, 3 + 2 * NUM_LAYERS)
    fc_w, fc_b = _dense(ks[2], D_MODEL, TGT_VOCAB)
    # zero-pad the final projection to 128 output lanes (lane-dense store)
    fc_w_pad = jnp.zeros((D_MODEL, PAD_OUT), jnp.float32).at[:, :TGT_VOCAB].set(fc_w)
    fc_b_pad = jnp.zeros((1, PAD_OUT), jnp.float32).at[:, :TGT_VOCAB].set(fc_b)
    return dict(
        enc_emb=jax.random.normal(ks[0], (SRC_VOCAB, D_MODEL), jnp.float32),
        dec_emb=jax.random.normal(ks[1], (TGT_VOCAB, D_MODEL), jnp.float32),
        pe=sinusoidal_pe(MAX_SEQ, D_MODEL),
        enc=[_enc_layer(ks[3 + i]) for i in range(NUM_LAYERS)],
        dec=[_dec_layer(ks[3 + NUM_LAYERS + i]) for i in range(NUM_LAYERS)],
        fc_w=fc_w_pad, fc_b=fc_b_pad)


# ----------------------------- main ------------------------------------------
if __name__ == "__main__":
    key = jax.random.PRNGKey(0)
    pkey, skey, tkey = jax.random.split(key, 3)

    raw_params = init_params(pkey)
    packed, layout = pack_tree(raw_params)      # single (R, 128) f32 buffer

    B, S = 2, MAX_SEQ
    fwd_call = build_forward(layout, B, S, S, packed.shape)

    @jax.jit
    def forward(packed_buf, src, tgt):
        src_in = src.astype(jnp.int32).reshape(B, 1, S)   # key-axis layout
        tgt_in = tgt.astype(jnp.int32).reshape(B, S, 1)   # query-axis layout
        logits_pad = fwd_call(src_in, tgt_in, packed_buf)
        return logits_pad[..., :TGT_VOCAB]

    # token id 0 is "padding"; sample >=1 so masks reflect the causal structure
    src = jax.random.randint(skey, (B, S), 1, SRC_VOCAB, dtype=jnp.int32)
    tgt = jax.random.randint(tkey, (B, S), 1, TGT_VOCAB, dtype=jnp.int32)

    out = jax.block_until_ready(forward(packed, src, tgt))
    assert out.shape == (B, S, TGT_VOCAB)
    assert bool(jnp.all(jnp.isfinite(out)))
    print("KERNEL_OK")
</pallas_src>

<mosaic_0001>
module attributes {stable_mosaic.version = 11 : i64} {
  func.func @kernel(%arg0: i32, %arg1: memref<1x1x8xi32, #tpu.memory_space<vmem>>, %arg2: memref<1x8x1xi32, #tpu.memory_space<vmem>>, %arg3: memref<1248x128xf32, #tpu.memory_space<vmem>>, %arg4: memref<1x8x128xf32, #tpu.memory_space<vmem>>) attributes {dimension_semantics = [#tpu.dimension_semantics<parallel>], iteration_bounds = array<i64: 2>, scalar_prefetch = 0 : i64, scratch_operands = 0 : i64, tpu.core_type = #tpu.core_type<tc>, window_params = [{transform_indices = @transform_0, window_bounds = array<i64: 1, 1, 8>}, {transform_indices = @transform_1, window_bounds = array<i64: 1, 8, 1>}, {pipeline_mode = #tpu.pipeline_mode<synchronous>, transform_indices = @transform_2, window_bounds = array<i64: 1248, 128>}, {transform_indices = @transform_3, window_bounds = array<i64: 1, 8, 128>}]} {
    %c0 = arith.constant 0 : index
    %c0_0 = arith.constant 0 : index
    %c0_1 = arith.constant 0 : index
    %0 = vector.load %arg1[%c0, %c0_0, %c0_1] : memref<1x1x8xi32, #tpu.memory_space<vmem>>, vector<1x1x8xi32>
    %1 = vector.shape_cast %0 : vector<1x1x8xi32> to vector<1x8xi32>
    %c0_2 = arith.constant 0 : index
    %c0_3 = arith.constant 0 : index
    %c0_4 = arith.constant 0 : index
    %2 = vector.load %arg2[%c0_2, %c0_3, %c0_4] : memref<1x8x1xi32, #tpu.memory_space<vmem>>, vector<1x8x1xi32>
    %3 = vector.shape_cast %2 : vector<1x8x1xi32> to vector<8x1xi32>
    %4 = tpu.iota {dimensions = array<i32: 0>} : vector<16x8xi32>
    %5 = vector.broadcast %1 : vector<1x8xi32> to vector<16x8xi32>
    %6 = arith.cmpi eq, %4, %5 : vector<16x8xi32>
    %7 = arith.extui %6 : vector<16x8xi1> to vector<16x8xi32>
    %8 = arith.sitofp %7 : vector<16x8xi32> to vector<16x8xf32>
    %c1184 = arith.constant 1184 : index
    %c0_5 = arith.constant 0 : index
    %9 = vector.load %arg3[%c1184, %c0_5] : memref<1248x128xf32, #tpu.memory_space<vmem>>, vector<16x32xf32>
    %cst = arith.constant dense<0.000000e+00> : vector<8x32xf32>
    %10 = tpu.matmul %8, %9, %cst {dimension_numbers = #tpu.dot_dimension_numbers<[0], [0], [1], [1], [0, 1, 1, 1], [], []>} : vector<16x8xf32>, vector<16x32xf32>, vector<8x32xf32> -> vector<8x32xf32>
    %11 = tpu.iota {dimensions = array<i32: 1>} : vector<8x16xi32>
    %12 = vector.broadcast %3 : vector<8x1xi32> to vector<8x16xi32>
    %13 = arith.cmpi eq, %11, %12 : vector<8x16xi32>
    %14 = arith.extui %13 : vector<8x16xi1> to vector<8x16xi32>
    %15 = arith.sitofp %14 : vector<8x16xi32> to vector<8x16xf32>
    %c720 = arith.constant 720 : index
    %c0_6 = arith.constant 0 : index
    %16 = vector.load %arg3[%c720, %c0_6] : memref<1248x128xf32, #tpu.memory_space<vmem>>, vector<16x32xf32>
    %cst_7 = arith.constant dense<0.000000e+00> : vector<8x32xf32>
    %17 = tpu.matmul %15, %16, %cst_7 {dimension_numbers = #tpu.dot_dimension_numbers<[1], [0], [0], [1], [0, 0, 1, 1], [], []>} : vector<8x16xf32>, vector<16x32xf32>, vector<8x32xf32> -> vector<8x32xf32>
    %c1240 = arith.constant 1240 : index
    %c0_8 = arith.constant 0 : index
    %18 = vector.load %arg3[%c1240, %c0_8] : memref<1248x128xf32, #tpu.memory_space<vmem>>, vector<8x32xf32>
    %19 = arith.addf %10, %18 : vector<8x32xf32>
    %20 = arith.addf %17, %18 : vector<8x32xf32>
    %c0_i32 = arith.constant 0 : i32
    %21 = vector.broadcast %c0_i32 : i32 to vector<1x8xi32>
    %22 = arith.cmpi eq, %1, %21 : vector<1x8xi32>
    %cst_9 = arith.constant -1.000000e+09 : f32
    %cst_10 = arith.constant 0.000000e+00 : f32
    %23 = vector.broadcast %cst_9 : f32 to vector<1x8xf32>
    %24 = vector.broadcast %cst_10 : f32 to vector<1x8xf32>
    %25 = arith.select %22, %23, %24 : vector<1x8xi1>, vector<1x8xf32>
    %26 = tpu.iota {dimensions = array<i32: 0>} : vector<8x8xi32>
    %27 = tpu.iota {dimensions = array<i32: 1>} : vector<8x8xi32>
    %28 = arith.cmpi sle, %27, %26 : vector<8x8xi32>
    %c0_i32_11 = arith.constant 0 : i32
    %29 = vector.broadcast %c0_i32_11 : i32 to vector<8x1xi32>
    %30 = arith.cmpi ne, %3, %29 : vector<8x1xi32>
    %31 = vector.broadcast %30 : vector<8x1xi1> to vector<8x8xi1>
    %32 = arith.andi %28, %31 : vector<8x8xi1>
    %cst_12 = arith.constant 0.000000e+00 : f32
    %cst_13 = arith.constant -1.000000e+09 : f32
    %33 = vector.broadcast %cst_12 : f32 to vector<8x8xf32>
    %34 = vector.broadcast %cst_13 : f32 to vector<8x8xf32>
    %35 = arith.select %32, %33, %34 : vector<8x8xi1>, vector<8x8xf32>
    %c784 = arith.constant 784 : index
    %c0_14 = arith.constant 0 : index
    %36 = vector.load %arg3[%c784, %c0_14] : memref<1248x128xf32, #tpu.memory_space<vmem>>, vector<32x96xf32>
    %cst_15 = arith.constant dense<0.000000e+00> : vector<8x96xf32>
    %37 = tpu.matmul %19, %36, %cst_15 {dimension_numbers = #tpu.dot_dimension_numbers<[1], [0], [0], [1], [0, 0, 1, 1], [], []>} : vector<8x32xf32>, vector<32x96xf32>, vector<8x96xf32> -> vector<8x96xf32>
    %c744 = arith.constant 744 : index
    %c0_16 = arith.constant 0 : index
    %38 = vector.load %arg3[%c744, %c0_16] : memref<1248x128xf32, #tpu.memory_space<vmem>>, vector<1x96xf32>
    %39 = vector.broadcast %38 : vector<1x96xf32> to vector<8x96xf32>
    %40 = arith.addf %37, %39 : vector<8x96xf32>
    %41 = vector.extract_strided_slice %40 {offsets = [0, 0], sizes = [8, 32], strides = [1, 1]} : vector<8x96xf32> to vector<8x32xf32>
    %42 = vector.extract_strided_slice %40 {offsets = [0, 32], sizes = [8, 32], strides = [1, 1]} : vector<8x96xf32> to vector<8x32xf32>
    %43 = vector.extract_strided_slice %40 {offsets = [0, 64], sizes = [8, 32], strides = [1, 1]} : vector<8x96xf32> to vector<8x32xf32>
    %44 = vector.shape_cast %41 : vector<8x32xf32> to vector<8x4x8xf32>
    %45 = tpu.transpose %44, [1, 0, 2] : vector<8x4x8xf32> -> vector<4x8x8xf32>
    %46 = vector.shape_cast %42 : vector<8x32xf32> to vector<8x4x8xf32>
    %47 = tpu.transpose %46, [1, 0, 2] : vector<8x4x8xf32> -> vector<4x8x8xf32>
    %48 = vector.shape_cast %43 : vector<8x32xf32> to vector<8x4x8xf32>
    %49 = tpu.transpose %48, [1, 0, 2] : vector<8x4x8xf32> -> vector<4x8x8xf32>
    "tpu.trace_start"() <{level = 10 : i32, message = "hqd,hkd->hqk"}> : () -> ()
    %cst_17 = arith.constant dense<0.000000e+00> : vector<4x8x8xf32>
    %50 = tpu.matmul %45, %47, %cst_17 {dimension_numbers = #tpu.dot_dimension_numbers<[2], [2], [1], [1], [0, 0, 0, 1, 1, 1], [0], [0]>} : vector<4x8x8xf32>, vector<4x8x8xf32>, vector<4x8x8xf32> -> vector<4x8x8xf32>
    "tpu.trace_stop"() : () -> ()
    %cst_18 = arith.constant 0.353553385 : f32
    %51 = vector.broadcast %cst_18 : f32 to vector<4x8x8xf32>
    %52 = arith.mulf %50, %51 : vector<4x8x8xf32>
    %53 = vector.shape_cast %25 : vector<1x8xf32> to vector<1x1x8xf32>
    %54 = vector.broadcast %53 : vector<1x1x8xf32> to vector<4x8x8xf32>
    %55 = arith.addf %52, %54 : vector<4x8x8xf32>
    %cst_19 = arith.constant dense<0xFF800000> : vector<4x8xf32>
    %56 = vector.multi_reduction <maximumf>, %55, %cst_19 [2] : vector<4x8x8xf32> to vector<4x8xf32>
    %57 = vector.shape_cast %56 : vector<4x8xf32> to vector<4x8x1xf32>
    %58 = vector.broadcast %57 : vector<4x8x1xf32> to vector<4x8x8xf32>
    %59 = arith.subf %55, %58 : vector<4x8x8xf32>
    %60 = math.exp %59 : vector<4x8x8xf32>
    %cst_20 = arith.constant dense<0.000000e+00> : vector<4x8xf32>
    %61 = vector.multi_reduction <add>, %60, %cst_20 [2] : vector<4x8x8xf32> to vector<4x8xf32>
    %62 = vector.shape_cast %61 : vector<4x8xf32> to vector<4x8x1xf32>
    %63 = tpu.reciprocal %62 {approx = true} : vector<4x8x1xf32> -> vector<4x8x1xf32>
    %64 = vector.broadcast %63 : vector<4x8x1xf32> to vector<4x8x8xf32>
    %65 = arith.mulf %60, %64 : vector<4x8x8xf32>
    "tpu.trace_start"() <{level = 10 : i32, message = "hqk,hkd->hqd"}> : () -> ()
    %cst_21 = arith.constant dense<0.000000e+00> : vector<4x8x8xf32>
    %66 = tpu.matmul %65, %49, %cst_21 {dimension_numbers = #tpu.dot_dimension_numbers<[2], [1], [1], [2], [0, 0, 0, 1, 1, 2], [0], [0]>} : vector<4x8x8xf32>, vector<4x8x8xf32>, vector<4x8x8xf32> -> vector<4x8x8xf32>
    "tpu.trace_stop"() : () -> ()
    %67 = tpu.transpose %66, [1, 0, 2] : vector<4x8x8xf32> -> vector<8x4x8xf32>
    %68 = vector.shape_cast %67 : vector<8x4x8xf32> to vector<8x32xf32>
    %c752 = arith.constant 752 : index
    %c0_22 = arith.constant 0 : index
    %69 = vector.load %arg3[%c752, %c0_22] : memref<1248x128xf32, #tpu.memory_space<vmem>>, vector<32x32xf32>
    %cst_23 = arith.constant dense<0.000000e+00> : vector<8x32xf32>
    %70 = tpu.matmul %68, %69, %cst_23 {dimension_numbers = #tpu.dot_dimension_numbers<[1], [0], [0], [1], [0, 0, 1, 1], [], []>} : vector<8x32xf32>, vector<32x32xf32>, vector<8x32xf32> -> vector<8x32xf32>
    %c736 = arith.constant 736 : index
    %c0_24 = arith.constant 0 : index
    %71 = vector.load %arg3[%c736, %c0_24] : memref<1248x128xf32, #tpu.memory_space<vmem>>, vector<1x32xf32>
    %72 = vector.broadcast %71 : vector<1x32xf32> to vector<8x32xf32>
    %73 = arith.addf %70, %72 : vector<8x32xf32>
    %74 = arith.addf %19, %73 : vector<8x32xf32>
    %cst_25 = arith.constant dense<0.000000e+00> : vector<8xf32>
    %75 = vector.multi_reduction <add>, %74, %cst_25 [1] : vector<8x32xf32> to vector<8xf32>
    %76 = vector.shape_cast %75 : vector<8xf32> to vector<8x1xf32>
    %cst_26 = arith.constant 3.200000e+01 : f32
    %77 = vector.broadcast %cst_26 : f32 to vector<8x1xf32>
    %78 = arith.divf %76, %77 : vector<8x1xf32>
    %79 = arith.mulf %74, %74 : vector<8x32xf32>
    %cst_27 = arith.constant dense<0.000000e+00> : vector<8xf32>
    %80 = vector.multi_reduction <add>, %79, %cst_27 [1] : vector<8x32xf32> to vector<8xf32>
    %81 = vector.shape_cast %80 : vector<8xf32> to vector<8x1xf32>
    %cst_28 = arith.constant 3.200000e+01 : f32
    %82 = vector.broadcast %cst_28 : f32 to vector<8x1xf32>
    %83 = arith.divf %81, %82 : vector<8x1xf32>
    %84 = arith.mulf %78, %78 : vector<8x1xf32>
    %85 = arith.subf %83, %84 : vector<8x1xf32>
    %86 = vector.broadcast %78 : vector<8x1xf32> to vector<8x32xf32>
    %87 = arith.subf %74, %86 : vector<8x32xf32>
    %cst_29 = arith.constant 9.99999974E-6 : f32
    %88 = vector.broadcast %cst_29 : f32 to vector<8x1xf32>
    %89 = arith.addf %85, %88 : vector<8x1xf32>
    %90 = math.rsqrt %89 : vector<8x1xf32>
    %91 = vector.broadcast %90 : vector<8x1xf32> to vector<8x32xf32>
    %92 = arith.mulf %87, %91 : vector<8x32xf32>
    %c936 = arith.constant 936 : index
    %c0_30 = arith.constant 0 : index
    %93 = vector.load %arg3[%c936, %c0_30] : memref<1248x128xf32, #tpu.memory_space<vmem>>, vector<1x32xf32>
    %94 = vector.broadcast %93 : vector<1x32xf32> to vector<8x32xf32>
    %95 = arith.mulf %92, %94 : vector<8x32xf32>
    %c928 = arith.constant 928 : index
    %c0_31 = arith.constant 0 : index
    %96 = vector.load %arg3[%c928, %c0_31] : memref<1248x128xf32, #tpu.memory_space<vmem>>, vector<1x32xf32>
    %97 = vector.broadcast %96 : vector<1x32xf32> to vector<8x32xf32>
    %98 = arith.addf %95, %97 : vector<8x32xf32>
    %c832 = arith.constant 832 : index
    %c0_32 = arith.constant 0 : index
    %99 = vector.load %arg3[%c832, %c0_32] : memref<1248x128xf32, #tpu.memory_space<vmem>>, vector<32x64xf32>
    %cst_33 = arith.constant dense<0.000000e+00> : vector<8x64xf32>
    %100 = tpu.matmul %98, %99, %cst_33 {dimension_numbers = #tpu.dot_dimension_numbers<[1], [0], [0], [1], [0, 0, 1, 1], [], []>} : vector<8x32xf32>, vector<32x64xf32>, vector<8x64xf32> -> vector<8x64xf32>
    %c816 = arith.constant 816 : index
    %c0_34 = arith.constant 0 : index
    %101 = vector.load %arg3[%c816, %c0_34] : memref<1248x128xf32, #tpu.memory_space<vmem>>, vector<1x64xf32>
    %102 = vector.broadcast %101 : vector<1x64xf32> to vector<8x64xf32>
    %103 = arith.addf %100, %102 : vector<8x64xf32>
    %cst_35 = arith.constant 0.000000e+00 : f32
    %104 = vector.broadcast %cst_35 : f32 to vector<8x64xf32>
    %105 = arith.maximumf %103, %104 : vector<8x64xf32>
    %c864 = arith.constant 864 : index
    %c0_36 = arith.constant 0 : index
    %106 = vector.load %arg3[%c864, %c0_36] : memref<1248x128xf32, #tpu.memory_space<vmem>>, vector<64x32xf32>
    %cst_37 = arith.constant dense<0.000000e+00> : vector<8x32xf32>
    %107 = tpu.matmul %105, %106, %cst_37 {dimension_numbers = #tpu.dot_dimension_numbers<[1], [0], [0], [1], [0, 0, 1, 1], [], []>} : vector<8x64xf32>, vector<64x32xf32>, vector<8x32xf32> -> vector<8x32xf32>
    %c824 = arith.constant 824 : index
    %c0_38 = arith.constant 0 : index
    %108 = vector.load %arg3[%c824, %c0_38] : memref<1248x128xf32, #tpu.memory_space<vmem>>, vector<1x32xf32>
    %109 = vector.broadcast %108 : vector<1x32xf32> to vector<8x32xf32>
    %110 = arith.addf %107, %109 : vector<8x32xf32>
    %111 = arith.addf %98, %110 : vector<8x32xf32>
    %cst_39 = arith.constant dense<0.000000e+00> : vector<8xf32>
    %112 = vector.multi_reduction <add>, %111, %cst_39 [1] : vector<8x32xf32> to vector<8xf32>
    %113 = vector.shape_cast %112 : vector<8xf32> to vector<8x1xf32>
    %cst_40 = arith.constant 3.200000e+01 : f32
    %114 = vector.broadcast %cst_40 : f32 to vector<8x1xf32>
    %115 = arith.divf %113, %114 : vector<8x1xf32>
    %116 = arith.mulf %111, %111 : vector<8x32xf32>
    %cst_41 = arith.constant dense<0.000000e+00> : vector<8xf32>
    %117 = vector.multi_reduction <add>, %116, %cst_41 [1] : vector<8x32xf32> to vector<8xf32>
    %118 = vector.shape_cast %117 : vector<8xf32> to vector<8x1xf32>
    %cst_42 = arith.constant 3.200000e+01 : f32
    %119 = vector.broadcast %cst_42 : f32 to vector<8x1xf32>
    %120 = arith.divf %118, %119 : vector<8x1xf32>
    %121 = arith.mulf %115, %115 : vector<8x1xf32>
    %122 = arith.subf %120, %121 : vector<8x1xf32>
    %123 = vector.broadcast %115 : vector<8x1xf32> to vector<8x32xf32>
    %124 = arith.subf %111, %123 : vector<8x32xf32>
    %cst_43 = arith.constant 9.99999974E-6 : f32
    %125 = vector.broadcast %cst_43 : f32 to vector<8x1xf32>
    %126 = arith.addf %122, %125 : vector<8x1xf32>
    %127 = math.rsqrt %126 : vector<8x1xf32>
    %128 = vector.broadcast %127 : vector<8x1xf32> to vector<8x32xf32>
    %129 = arith.mulf %124, %128 : vector<8x32xf32>
    %c952 = arith.constant 952 : index
    %c0_44 = arith.constant 0 : index
    %130 = vector.load %arg3[%c952, %c0_44] : memref<1248x128xf32, #tpu.memory_space<vmem>>, vector<1x32xf32>
    %131 = vector.broadcast %130 : vector<1x32xf32> to vector<8x32xf32>
    %132 = arith.mulf %129, %131 : vector<8x32xf32>
    %c944 = arith.constant 944 : index
    %c0_45 = arith.constant 0 : index
    %133 = vector.load %arg3[%c944, %c0_45] : memref<1248x128xf32, #tpu.memory_space<vmem>>, vector<1x32xf32>
    %134 = vector.broadcast %133 : vector<1x32xf32> to vector<8x32xf32>
    %135 = arith.addf %132, %134 : vector<8x32xf32>
    %c1008 = arith.constant 1008 : index
    %c0_46 = arith.constant 0 : index
    %136 = vector.load %arg3[%c1008, %c0_46] : memref<1248x128xf32, #tpu.memory_space<vmem>>, vector<32x96xf32>
    %cst_47 = arith.constant dense<0.000000e+00> : vector<8x96xf32>
    %137 = tpu.matmul %135, %136, %cst_47 {dimension_numbers = #tpu.dot_dimension_numbers<[1], [0], [0], [1], [0, 0, 1, 1], [], []>} : vector<8x32xf32>, vector<32x96xf32>, vector<8x96xf32> -> vector<8x96xf32>
    %c968 = arith.constant 968 : index
    %c0_48 = arith.constant 0 : index
    %138 = vector.load %arg3[%c968, %c0_48] : memref<1248x128xf32, #tpu.memory_space<vmem>>, vector<1x96xf32>
    %139 = vector.broadcast %138 : vector<1x96xf32> to vector<8x96xf32>
    %140 = arith.addf %137, %139 : vector<8x96xf32>
    %141 = vector.extract_strided_slice %140 {offsets = [0, 0], sizes = [8, 32], strides = [1, 1]} : vector<8x96xf32> to vector<8x32xf32>
    %142 = vector.extract_strided_slice %140 {offsets = [0, 32], sizes = [8, 32], strides = [1, 1]} : vector<8x96xf32> to vector<8x32xf32>
    %143 = vector.extract_strided_slice %140 {offsets = [0, 64], sizes = [8, 32], strides = [1, 1]} : vector<8x96xf32> to vector<8x32xf32>
    %144 = vector.shape_cast %141 : vector<8x32xf32> to vector<8x4x8xf32>
    %145 = tpu.transpose %144, [1, 0, 2] : vector<8x4x8xf32> -> vector<4x8x8xf32>
    %146 = vector.shape_cast %142 : vector<8x32xf32> to vector<8x4x8xf32>
    %147 = tpu.transpose %146, [1, 0, 2] : vector<8x4x8xf32> -> vector<4x8x8xf32>
    %148 = vector.shape_cast %143 : vector<8x32xf32> to vector<8x4x8xf32>
    %149 = tpu.transpose %148, [1, 0, 2] : vector<8x4x8xf32> -> vector<4x8x8xf32>
    "tpu.trace_start"() <{level = 10 : i32, message = "hqd,hkd->hqk"}> : () -> ()
    %cst_49 = arith.constant dense<0.000000e+00> : vector<4x8x8xf32>
    %150 = tpu.matmul %145, %147, %cst_49 {dimension_numbers = #tpu.dot_dimension_numbers<[2], [2], [1], [1], [0, 0, 0, 1, 1, 1], [0], [0]>} : vector<4x8x8xf32>, vector<4x8x8xf32>, vector<4x8x8xf32> -> vector<4x8x8xf32>
    "tpu.trace_stop"() : () -> ()
    %cst_50 = arith.constant 0.353553385 : f32
    %151 = vector.broadcast %cst_50 : f32 to vector<4x8x8xf32>
    %152 = arith.mulf %150, %151 : vector<4x8x8xf32>
    %153 = vector.shape_cast %25 : vector<1x8xf32> to vector<1x1x8xf32>
    %154 = vector.broadcast %153 : vector<1x1x8xf32> to vector<4x8x8xf32>
    %155 = arith.addf %152, %154 : vector<4x8x8xf32>
    %cst_51 = arith.constant dense<0xFF800000> : vector<4x8xf32>
    %156 = vector.multi_reduction <maximumf>, %155, %cst_51 [2] : vector<4x8x8xf32> to vector<4x8xf32>
    %157 = vector.shape_cast %156 : vector<4x8xf32> to vector<4x8x1xf32>
    %158 = vector.broadcast %157 : vector<4x8x1xf32> to vector<4x8x8xf32>
    %159 = arith.subf %155, %158 : vector<4x8x8xf32>
    %160 = math.exp %159 : vector<4x8x8xf32>
    %cst_52 = arith.constant dense<0.000000e+00> : vector<4x8xf32>
    %161 = vector.multi_reduction <add>, %160, %cst_52 [2] : vector<4x8x8xf32> to vector<4x8xf32>
    %162 = vector.shape_cast %161 : vector<4x8xf32> to vector<4x8x1xf32>
    %163 = tpu.reciprocal %162 {approx = true} : vector<4x8x1xf32> -> vector<4x8x1xf32>
    %164 = vector.broadcast %163 : vector<4x8x1xf32> to vector<4x8x8xf32>
    %165 = arith.mulf %160, %164 : vector<4x8x8xf32>
    "tpu.trace_start"() <{level = 10 : i32, message = "hqk,hkd->hqd"}> : () -> ()
    %cst_53 = arith.constant dense<0.000000e+00> : vector<4x8x8xf32>
    %166 = tpu.matmul %165, %149, %cst_53 {dimension_numbers = #tpu.dot_dimension_numbers<[2], [1], [1], [2], [0, 0, 0, 1, 1, 2], [0], [0]>} : vector<4x8x8xf32>, vector<4x8x8xf32>, vector<4x8x8xf32> -> vector<4x8x8xf32>
    "tpu.trace_stop"() : () -> ()
    %167 = tpu.transpose %166, [1, 0, 2] : vector<4x8x8xf32> -> vector<8x4x8xf32>
    %168 = vector.shape_cast %167 : vector<8x4x8xf32> to vector<8x32xf32>
    %c976 = arith.constant 976 : index
    %c0_54 = arith.constant 0 : index
    %169 = vector.load %arg3[%c976, %c0_54] : memref<1248x128xf32, #tpu.memory_space<vmem>>, vector<32x32xf32>
    %cst_55 = arith.constant dense<0.000000e+00> : vector<8x32xf32>
    %170 = tpu.matmul %168, %169, %cst_55 {dimension_numbers = #tpu.dot_dimension_numbers<[1], [0], [0], [1], [0, 0, 1, 1], [], []>} : vector<8x32xf32>, vector<32x32xf32>, vector<8x32xf32> -> vector<8x32xf32>
    %c960 = arith.constant 960 : index
    %c0_56 = arith.constant 0 : index
    %171 = vector.load %arg3[%c960, %c0_56] : memref<1248x128xf32, #tpu.memory_space<vmem>>, vector<1x32xf32>
    %172 = vector.broadcast %171 : vector<1x32xf32> to vector<8x32xf32>
    %173 = arith.addf %170, %172 : vector<8x32xf32>
    %174 = arith.addf %135, %173 : vector<8x32xf32>
    %cst_57 = arith.constant dense<0.000000e+00> : vector<8xf32>
    %175 = vector.multi_reduction <add>, %174, %cst_57 [1] : vector<8x32xf32> to vector<8xf32>
    %176 = vector.shape_cast %175 : vector<8xf32> to vector<8x1xf32>
    %cst_58 = arith.constant 3.200000e+01 : f32
    %177 = vector.broadcast %cst_58 : f32 to vector<8x1xf32>
    %178 = arith.divf %176, %177 : vector<8x1xf32>
    %179 = arith.mulf %174, %174 : vector<8x32xf32>
    %cst_59 = arith.constant dense<0.000000e+00> : vector<8xf32>
    %180 = vector.multi_reduction <add>, %179, %cst_59 [1] : vector<8x32xf32> to vector<8xf32>
    %181 = vector.shape_cast %180 : vector<8xf32> to vector<8x1xf32>
    %cst_60 = arith.constant 3.200000e+01 : f32
    %182 = vector.broadcast %cst_60 : f32 to vector<8x1xf32>
    %183 = arith.divf %181, %182 : vector<8x1xf32>
    %184 = arith.mulf %178, %178 : vector<8x1xf32>
    %185 = arith.subf %183, %184 : vector<8x1xf32>
    %186 = vector.broadcast %178 : vector<8x1xf32> to vector<8x32xf32>
    %187 = arith.subf %174, %186 : vector<8x32xf32>
    %cst_61 = arith.constant 9.99999974E-6 : f32
    %188 = vector.broadcast %cst_61 : f32 to vector<8x1xf32>
    %189 = arith.addf %185, %188 : vector<8x1xf32>
    %190 = math.rsqrt %189 : vector<8x1xf32>
    %191 = vector.broadcast %190 : vector<8x1xf32> to vector<8x32xf32>
    %192 = arith.mulf %187, %191 : vector<8x32xf32>
    %c1160 = arith.constant 1160 : index
    %c0_62 = arith.constant 0 : index
    %193 = vector.load %arg3[%c1160, %c0_62] : memref<1248x128xf32, #tpu.memory_space<vmem>>, vector<1x32xf32>
    %194 = vector.broadcast %193 : vector<1x32xf32> to vector<8x32xf32>
    %195 = arith.mulf %192, %194 : vector<8x32xf32>
    %c1152 = arith.constant 1152 : index
    %c0_63 = arith.constant 0 : index
    %196 = vector.load %arg3[%c1152, %c0_63] : memref<1248x128xf32, #tpu.memory_space<vmem>>, vector<1x32xf32>
    %197 = vector.broadcast %196 : vector<1x32xf32> to vector<8x32xf32>
    %198 = arith.addf %195, %197 : vector<8x32xf32>
    %c1056 = arith.constant 1056 : index
    %c0_64 = arith.constant 0 : index
    %199 = vector.load %arg3[%c1056, %c0_64] : memref<1248x128xf32, #tpu.memory_space<vmem>>, vector<32x64xf32>
    %cst_65 = arith.constant dense<0.000000e+00> : vector<8x64xf32>
    %200 = tpu.matmul %198, %199, %cst_65 {dimension_numbers = #tpu.dot_dimension_numbers<[1], [0], [0], [1], [0, 0, 1, 1], [], []>} : vector<8x32xf32>, vector<32x64xf32>, vector<8x64xf32> -> vector<8x64xf32>
    %c1040 = arith.constant 1040 : index
    %c0_66 = arith.constant 0 : index
    %201 = vector.load %arg3[%c1040, %c0_66] : memref<1248x128xf32, #tpu.memory_space<vmem>>, vector<1x64xf32>
    %202 = vector.broadcast %201 : vector<1x64xf32> to vector<8x64xf32>
    %203 = arith.addf %200, %202 : vector<8x64xf32>
    %cst_67 = arith.constant 0.000000e+00 : f32
    %204 = vector.broadcast %cst_67 : f32 to vector<8x64xf32>
    %205 = arith.maximumf %203, %204 : vector<8x64xf32>
    %c1088 = arith.constant 1088 : index
    %c0_68 = arith.constant 0 : index
    %206 = vector.load %arg3[%c1088, %c0_68] : memref<1248x128xf32, #tpu.memory_space<vmem>>, vector<64x32xf32>
    %cst_69 = arith.constant dense<0.000000e+00> : vector<8x32xf32>
    %207 = tpu.matmul %205, %206, %cst_69 {dimension_numbers = #tpu.dot_dimension_numbers<[1], [0], [0], [1], [0, 0, 1, 1], [], []>} : vector<8x64xf32>, vector<64x32xf32>, vector<8x32xf32> -> vector<8x32xf32>
    %c1048 = arith.constant 1048 : index
    %c0_70 = arith.constant 0 : index
    %208 = vector.load %arg3[%c1048, %c0_70] : memref<1248x128xf32, #tpu.memory_space<vmem>>, vector<1x32xf32>
    %209 = vector.broadcast %208 : vector<1x32xf32> to vector<8x32xf32>
    %210 = arith.addf %207, %209 : vector<8x32xf32>
    %211 = arith.addf %198, %210 : vector<8x32xf32>
    %cst_71 = arith.constant dense<0.000000e+00> : vector<8xf32>
    %212 = vector.multi_reduction <add>, %211, %cst_71 [1] : vector<8x32xf32> to vector<8xf32>
    %213 = vector.shape_cast %212 : vector<8xf32> to vector<8x1xf32>
    %cst_72 = arith.constant 3.200000e+01 : f32
    %214 = vector.broadcast %cst_72 : f32 to vector<8x1xf32>
    %215 = arith.divf %213, %214 : vector<8x1xf32>
    %216 = arith.mulf %211, %211 : vector<8x32xf32>
    %cst_73 = arith.constant dense<0.000000e+00> : vector<8xf32>
    %217 = vector.multi_reduction <add>, %216, %cst_73 [1] : vector<8x32xf32> to vector<8xf32>
    %218 = vector.shape_cast %217 : vector<8xf32> to vector<8x1xf32>
    %cst_74 = arith.constant 3.200000e+01 : f32
    %219 = vector.broadcast %cst_74 : f32 to vector<8x1xf32>
    %220 = arith.divf %218, %219 : vector<8x1xf32>
    %221 = arith.mulf %215, %215 : vector<8x1xf32>
    %222 = arith.subf %220, %221 : vector<8x1xf32>
    %223 = vector.broadcast %215 : vector<8x1xf32> to vector<8x32xf32>
    %224 = arith.subf %211, %223 : vector<8x32xf32>
    %cst_75 = arith.constant 9.99999974E-6 : f32
    %225 = vector.broadcast %cst_75 : f32 to vector<8x1xf32>
    %226 = arith.addf %222, %225 : vector<8x1xf32>
    %227 = math.rsqrt %226 : vector<8x1xf32>
    %228 = vector.broadcast %227 : vector<8x1xf32> to vector<8x32xf32>
    %229 = arith.mulf %224, %228 : vector<8x32xf32>
    %c1176 = arith.constant 1176 : index
    %c0_76 = arith.constant 0 : index
    %230 = vector.load %arg3[%c1176, %c0_76] : memref<1248x128xf32, #tpu.memory_space<vmem>>, vector<1x32xf32>
    %231 = vector.broadcast %230 : vector<1x32xf32> to vector<8x32xf32>
    %232 = arith.mulf %229, %231 : vector<8x32xf32>
    %c1168 = arith.constant 1168 : index
    %c0_77 = arith.constant 0 : index
    %233 = vector.load %arg3[%c1168, %c0_77] : memref<1248x128xf32, #tpu.memory_space<vmem>>, vector<1x32xf32>
    %234 = vector.broadcast %233 : vector<1x32xf32> to vector<8x32xf32>
    %235 = arith.addf %232, %234 : vector<8x32xf32>
    %c328 = arith.constant 328 : index
    %c0_78 = arith.constant 0 : index
    %236 = vector.load %arg3[%c328, %c0_78] : memref<1248x128xf32, #tpu.memory_space<vmem>>, vector<32x96xf32>
    %cst_79 = arith.constant dense<0.000000e+00> : vector<8x96xf32>
    %237 = tpu.matmul %20, %236, %cst_79 {dimension_numbers = #tpu.dot_dimension_numbers<[1], [0], [0], [1], [0, 0, 1, 1], [], []>} : vector<8x32xf32>, vector<32x96xf32>, vector<8x96xf32> -> vector<8x96xf32>
    %c288 = arith.constant 288 : index
    %c0_80 = arith.constant 0 : index
    %238 = vector.load %arg3[%c288, %c0_80] : memref<1248x128xf32, #tpu.memory_space<vmem>>, vector<1x96xf32>
    %239 = vector.broadcast %238 : vector<1x96xf32> to vector<8x96xf32>
    %240 = arith.addf %237, %239 : vector<8x96xf32>
    %241 = vector.extract_strided_slice %240 {offsets = [0, 0], sizes = [8, 32], strides = [1, 1]} : vector<8x96xf32> to vector<8x32xf32>
    %242 = vector.extract_strided_slice %240 {offsets = [0, 32], sizes = [8, 32], strides = [1, 1]} : vector<8x96xf32> to vector<8x32xf32>
    %243 = vector.extract_strided_slice %240 {offsets = [0, 64], sizes = [8, 32], strides = [1, 1]} : vector<8x96xf32> to vector<8x32xf32>
    %244 = vector.shape_cast %241 : vector<8x32xf32> to vector<8x4x8xf32>
    %245 = tpu.transpose %244, [1, 0, 2] : vector<8x4x8xf32> -> vector<4x8x8xf32>
    %246 = vector.shape_cast %242 : vector<8x32xf32> to vector<8x4x8xf32>
    %247 = tpu.transpose %246, [1, 0, 2] : vector<8x4x8xf32> -> vector<4x8x8xf32>
    %248 = vector.shape_cast %243 : vector<8x32xf32> to vector<8x4x8xf32>
    %249 = tpu.transpose %248, [1, 0, 2] : vector<8x4x8xf32> -> vector<4x8x8xf32>
    "tpu.trace_start"() <{level = 10 : i32, message = "hqd,hkd->hqk"}> : () -> ()
    %cst_81 = arith.constant dense<0.000000e+00> : vector<4x8x8xf32>
    %250 = tpu.matmul %245, %247, %cst_81 {dimension_numbers = #tpu.dot_dimension_numbers<[2], [2], [1], [1], [0, 0, 0, 1, 1, 1], [0], [0]>} : vector<4x8x8xf32>, vector<4x8x8xf32>, vector<4x8x8xf32> -> vector<4x8x8xf32>
    "tpu.trace_stop"() : () -> ()
    %cst_82 = arith.constant 0.353553385 : f32
    %251 = vector.broadcast %cst_82 : f32 to vector<4x8x8xf32>
    %252 = arith.mulf %250, %251 : vector<4x8x8xf32>
    %253 = vector.shape_cast %35 : vector<8x8xf32> to vector<1x8x8xf32>
    %254 = vector.broadcast %253 : vector<1x8x8xf32> to vector<4x8x8xf32>
    %255 = arith.addf %252, %254 : vector<4x8x8xf32>
    %cst_83 = arith.constant dense<0xFF800000> : vector<4x8xf32>
    %256 = vector.multi_reduction <maximumf>, %255, %cst_83 [2] : vector<4x8x8xf32> to vector<4x8xf32>
    %257 = vector.shape_cast %256 : vector<4x8xf32> to vector<4x8x1xf32>
    %258 = vector.broadcast %257 : vector<4x8x1xf32> to vector<4x8x8xf32>
    %259 = arith.subf %255, %258 : vector<4x8x8xf32>
    %260 = math.exp %259 : vector<4x8x8xf32>
    %cst_84 = arith.constant dense<0.000000e+00> : vector<4x8xf32>
    %261 = vector.multi_reduction <add>, %260, %cst_84 [2] : vector<4x8x8xf32> to vector<4x8xf32>
    %262 = vector.shape_cast %261 : vector<4x8xf32> to vector<4x8x1xf32>
    %263 = tpu.reciprocal %262 {approx = true} : vector<4x8x1xf32> -> vector<4x8x1xf32>
    %264 = vector.broadcast %263 : vector<4x8x1xf32> to vector<4x8x8xf32>
    %265 = arith.mulf %260, %264 : vector<4x8x8xf32>
    "tpu.trace_start"() <{level = 10 : i32, message = "hqk,hkd->hqd"}> : () -> ()
    %cst_85 = arith.constant dense<0.000000e+00> : vector<4x8x8xf32>
    %266 = tpu.matmul %265, %249, %cst_85 {dimension_numbers = #tpu.dot_dimension_numbers<[2], [1], [1], [2], [0, 0, 0, 1, 1, 2], [0], [0]>} : vector<4x8x8xf32>, vector<4x8x8xf32>, vector<4x8x8xf32> -> vector<4x8x8xf32>
    "tpu.trace_stop"() : () -> ()
    %267 = tpu.transpose %266, [1, 0, 2] : vector<4x8x8xf32> -> vector<8x4x8xf32>
    %268 = vector.shape_cast %267 : vector<8x4x8xf32> to vector<8x32xf32>
    %c296 = arith.constant 296 : index
    %c0_86 = arith.constant 0 : index
    %269 = vector.load %arg3[%c296, %c0_86] : memref<1248x128xf32, #tpu.memory_space<vmem>>, vector<32x32xf32>
    %cst_87 = arith.constant dense<0.000000e+00> : vector<8x32xf32>
    %270 = tpu.matmul %268, %269, %cst_87 {dimension_numbers = #tpu.dot_dimension_numbers<[1], [0], [0], [1], [0, 0, 1, 1], [], []>} : vector<8x32xf32>, vector<32x32xf32>, vector<8x32xf32> -> vector<8x32xf32>
    %c280 = arith.constant 280 : index
    %c0_88 = arith.constant 0 : index
    %271 = vector.load %arg3[%c280, %c0_88] : memref<1248x128xf32, #tpu.memory_space<vmem>>, vector<1x32xf32>
    %272 = vector.broadcast %271 : vector<1x32xf32> to vector<8x32xf32>
    %273 = arith.addf %270, %272 : vector<8x32xf32>
    %274 = arith.addf %20, %273 : vector<8x32xf32>
    %cst_89 = arith.constant dense<0.000000e+00> : vector<8xf32>
    %275 = vector.multi_reduction <add>, %274, %cst_89 [1] : vector<8x32xf32> to vector<8xf32>
    %276 = vector.shape_cast %275 : vector<8xf32> to vector<8x1xf32>
    %cst_90 = arith.constant 3.200000e+01 : f32
    %277 = vector.broadcast %cst_90 : f32 to vector<8x1xf32>
    %278 = arith.divf %276, %277 : vector<8x1xf32>
    %279 = arith.mulf %274, %274 : vector<8x32xf32>
    %cst_91 = arith.constant dense<0.000000e+00> : vector<8xf32>
    %280 = vector.multi_reduction <add>, %279, %cst_91 [1] : vector<8x32xf32> to vector<8xf32>
    %281 = vector.shape_cast %280 : vector<8xf32> to vector<8x1xf32>
    %cst_92 = arith.constant 3.200000e+01 : f32
    %282 = vector.broadcast %cst_92 : f32 to vector<8x1xf32>
    %283 = arith.divf %281, %282 : vector<8x1xf32>
    %284 = arith.mulf %278, %278 : vector<8x1xf32>
    %285 = arith.subf %283, %284 : vector<8x1xf32>
    %286 = vector.broadcast %278 : vector<8x1xf32> to vector<8x32xf32>
    %287 = arith.subf %274, %286 : vector<8x32xf32>
    %cst_93 = arith.constant 9.99999974E-6 : f32
    %288 = vector.broadcast %cst_93 : f32 to vector<8x1xf32>
    %289 = arith.addf %285, %288 : vector<8x1xf32>
    %290 = math.rsqrt %289 : vector<8x1xf32>
    %291 = vector.broadcast %290 : vector<8x1xf32> to vector<8x32xf32>
    %292 = arith.mulf %287, %291 : vector<8x32xf32>
    %c240 = arith.constant 240 : index
    %c0_94 = arith.constant 0 : index
    %293 = vector.load %arg3[%c240, %c0_94] : memref<1248x128xf32, #tpu.memory_space<vmem>>, vector<1x32xf32>
    %294 = vector.broadcast %293 : vector<1x32xf32> to vector<8x32xf32>
    %295 = arith.mulf %292, %294 : vector<8x32xf32>
    %c232 = arith.constant 232 : index
    %c0_95 = arith.constant 0 : index
    %296 = vector.load %arg3[%c232, %c0_95] : memref<1248x128xf32, #tpu.memory_space<vmem>>, vector<1x32xf32>
    %297 = vector.broadcast %296 : vector<1x32xf32> to vector<8x32xf32>
    %298 = arith.addf %295, %297 : vector<8x32xf32>
    %c88 = arith.constant 88 : index
    %c0_96 = arith.constant 0 : index
    %299 = vector.load %arg3[%c88, %c0_96] : memref<1248x128xf32, #tpu.memory_space<vmem>>, vector<32x32xf32>
    %cst_97 = arith.constant dense<0.000000e+00> : vector<8x32xf32>
    %300 = tpu.matmul %298, %299, %cst_97 {dimension_numbers = #tpu.dot_dimension_numbers<[1], [0], [0], [1], [0, 0, 1, 1], [], []>} : vector<8x32xf32>, vector<32x32xf32>, vector<8x32xf32> -> vector<8x32xf32>
    %c16 = arith.constant 16 : index
    %c0_98 = arith.constant 0 : index
    %301 = vector.load %arg3[%c16, %c0_98] : memref<1248x128xf32, #tpu.memory_space<vmem>>, vector<1x32xf32>
    %302 = vector.broadcast %301 : vector<1x32xf32> to vector<8x32xf32>
    %303 = arith.addf %300, %302 : vector<8x32xf32>
    %c24 = arith.constant 24 : index
    %c0_99 = arith.constant 0 : index
    %304 = vector.load %arg3[%c24, %c0_99] : memref<1248x128xf32, #tpu.memory_space<vmem>>, vector<32x64xf32>
    %cst_100 = arith.constant dense<0.000000e+00> : vector<8x64xf32>
    %305 = tpu.matmul %235, %304, %cst_100 {dimension_numbers = #tpu.dot_dimension_numbers<[1], [0], [0], [1], [0, 0, 1, 1], [], []>} : vector<8x32xf32>, vector<32x64xf32>, vector<8x64xf32> -> vector<8x64xf32>
    %c0_101 = arith.constant 0 : index
    %c0_102 = arith.constant 0 : index
    %306 = vector.load %arg3[%c0_101, %c0_102] : memref<1248x128xf32, #tpu.memory_space<vmem>>, vector<1x64xf32>
    %307 = vector.broadcast %306 : vector<1x64xf32> to vector<8x64xf32>
    %308 = arith.addf %305, %307 : vector<8x64xf32>
    %309 = vector.extract_strided_slice %308 {offsets = [0, 0], sizes = [8, 32], strides = [1, 1]} : vector<8x64xf32> to vector<8x32xf32>
    %310 = vector.extract_strided_slice %308 {offsets = [0, 32], sizes = [8, 32], strides = [1, 1]} : vector<8x64xf32> to vector<8x32xf32>
    %311 = vector.shape_cast %303 : vector<8x32xf32> to vector<8x4x8xf32>
    %312 = tpu.transpose %311, [1, 0, 2] : vector<8x4x8xf32> -> vector<4x8x8xf32>
    %313 = vector.shape_cast %309 : vector<8x32xf32> to vector<8x4x8xf32>
    %314 = tpu.transpose %313, [1, 0, 2] : vector<8x4x8xf32> -> vector<4x8x8xf32>
    %315 = vector.shape_cast %310 : vector<8x32xf32> to vector<8x4x8xf32>
    %316 = tpu.transpose %315, [1, 0, 2] : vector<8x4x8xf32> -> vector<4x8x8xf32>
    "tpu.trace_start"() <{level = 10 : i32, message = "hqd,hkd->hqk"}> : () -> ()
    %cst_103 = arith.constant dense<0.000000e+00> : vector<4x8x8xf32>
    %317 = tpu.matmul %312, %314, %cst_103 {dimension_numbers = #tpu.dot_dimension_numbers<[2], [2], [1], [1], [0, 0, 0, 1, 1, 1], [0], [0]>} : vector<4x8x8xf32>, vector<4x8x8xf32>, vector<4x8x8xf32> -> vector<4x8x8xf32>
    "tpu.trace_stop"() : () -> ()
    %cst_104 = arith.constant 0.353553385 : f32
    %318 = vector.broadcast %cst_104 : f32 to vector<4x8x8xf32>
    %319 = arith.mulf %317, %318 : vector<4x8x8xf32>
    %320 = vector.shape_cast %25 : vector<1x8xf32> to vector<1x1x8xf32>
    %321 = vector.broadcast %320 : vector<1x1x8xf32> to vector<4x8x8xf32>
    %322 = arith.addf %319, %321 : vector<4x8x8xf32>
    %cst_105 = arith.constant dense<0xFF800000> : vector<4x8xf32>
    %323 = vector.multi_reduction <maximumf>, %322, %cst_105 [2] : vector<4x8x8xf32> to vector<4x8xf32>
    %324 = vector.shape_cast %323 : vector<4x8xf32> to vector<4x8x1xf32>
    %325 = vector.broadcast %324 : vector<4x8x1xf32> to vector<4x8x8xf32>
    %326 = arith.subf %322, %325 : vector<4x8x8xf32>
    %327 = math.exp %326 : vector<4x8x8xf32>
    %cst_106 = arith.constant dense<0.000000e+00> : vector<4x8xf32>
    %328 = vector.multi_reduction <add>, %327, %cst_106 [2] : vector<4x8x8xf32> to vector<4x8xf32>
    %329 = vector.shape_cast %328 : vector<4x8xf32> to vector<4x8x1xf32>
    %330 = tpu.reciprocal %329 {approx = true} : vector<4x8x1xf32> -> vector<4x8x1xf32>
    %331 = vector.broadcast %330 : vector<4x8x1xf32> to vector<4x8x8xf32>
    %332 = arith.mulf %327, %331 : vector<4x8x8xf32>
    "tpu.trace_start"() <{level = 10 : i32, message = "hqk,hkd->hqd"}> : () -> ()
    %cst_107 = arith.constant dense<0.000000e+00> : vector<4x8x8xf32>
    %333 = tpu.matmul %332, %316, %cst_107 {dimension_numbers = #tpu.dot_dimension_numbers<[2], [1], [1], [2], [0, 0, 0, 1, 1, 2], [0], [0]>} : vector<4x8x8xf32>, vector<4x8x8xf32>, vector<4x8x8xf32> -> vector<4x8x8xf32>
    "tpu.trace_stop"() : () -> ()
    %334 = tpu.transpose %333, [1, 0, 2] : vector<4x8x8xf32> -> vector<8x4x8xf32>
    %335 = vector.shape_cast %334 : vector<8x4x8xf32> to vector<8x32xf32>
    %c56 = arith.constant 56 : index
    %c0_108 = arith.constant 0 : index
    %336 = vector.load %arg3[%c56, %c0_108] : memref<1248x128xf32, #tpu.memory_space<vmem>>, vector<32x32xf32>
    %cst_109 = arith.constant dense<0.000000e+00> : vector<8x32xf32>
    %337 = tpu.matmul %335, %336, %cst_109 {dimension_numbers = #tpu.dot_dimension_numbers<[1], [0], [0], [1], [0, 0, 1, 1], [], []>} : vector<8x32xf32>, vector<32x32xf32>, vector<8x32xf32> -> vector<8x32xf32>
    %c8 = arith.constant 8 : index
    %c0_110 = arith.constant 0 : index
    %338 = vector.load %arg3[%c8, %c0_110] : memref<1248x128xf32, #tpu.memory_space<vmem>>, vector<1x32xf32>
    %339 = vector.broadcast %338 : vector<1x32xf32> to vector<8x32xf32>
    %340 = arith.addf %337, %339 : vector<8x32xf32>
    %341 = arith.addf %298, %340 : vector<8x32xf32>
    %cst_111 = arith.constant dense<0.000000e+00> : vector<8xf32>
    %342 = vector.multi_reduction <add>, %341, %cst_111 [1] : vector<8x32xf32> to vector<8xf32>
    %343 = vector.shape_cast %342 : vector<8xf32> to vector<8x1xf32>
    %cst_112 = arith.constant 3.200000e+01 : f32
    %344 = vector.broadcast %cst_112 : f32 to vector<8x1xf32>
    %345 = arith.divf %343, %344 : vector<8x1xf32>
    %346 = arith.mulf %341, %341 : vector<8x32xf32>
    %cst_113 = arith.constant dense<0.000000e+00> : vector<8xf32>
    %347 = vector.multi_reduction <add>, %346, %cst_113 [1] : vector<8x32xf32> to vector<8xf32>
    %348 = vector.shape_cast %347 : vector<8xf32> to vector<8x1xf32>
    %cst_114 = arith.constant 3.200000e+01 : f32
    %349 = vector.broadcast %cst_114 : f32 to vector<8x1xf32>
    %350 = arith.divf %348, %349 : vector<8x1xf32>
    %351 = arith.mulf %345, %345 : vector<8x1xf32>
    %352 = arith.subf %350, %351 : vector<8x1xf32>
    %353 = vector.broadcast %345 : vector<8x1xf32> to vector<8x32xf32>
    %354 = arith.subf %341, %353 : vector<8x32xf32>
    %cst_115 = arith.constant 9.99999974E-6 : f32
    %355 = vector.broadcast %cst_115 : f32 to vector<8x1xf32>
    %356 = arith.addf %352, %355 : vector<8x1xf32>
    %357 = math.rsqrt %356 : vector<8x1xf32>
    %358 = vector.broadcast %357 : vector<8x1xf32> to vector<8x32xf32>
    %359 = arith.mulf %354, %358 : vector<8x32xf32>
    %c256 = arith.constant 256 : index
    %c0_116 = arith.constant 0 : index
    %360 = vector.load %arg3[%c256, %c0_116] : memref<1248x128xf32, #tpu.memory_space<vmem>>, vector<1x32xf32>
    %361 = vector.broadcast %360 : vector<1x32xf32> to vector<8x32xf32>
    %362 = arith.mulf %359, %361 : vector<8x32xf32>
    %c248 = arith.constant 248 : index
    %c0_117 = arith.constant 0 : index
    %363 = vector.load %arg3[%c248, %c0_117] : memref<1248x128xf32, #tpu.memory_space<vmem>>, vector<1x32xf32>
    %364 = vector.broadcast %363 : vector<1x32xf32> to vector<8x32xf32>
    %365 = arith.addf %362, %364 : vector<8x32xf32>
    %c136 = arith.constant 136 : index
    %c0_118 = arith.constant 0 : index
    %366 = vector.load %arg3[%c136, %c0_118] : memref<1248x128xf32, #tpu.memory_space<vmem>>, vector<32x64xf32>
    %cst_119 = arith.constant dense<0.000000e+00> : vector<8x64xf32>
    %367 = tpu.matmul %365, %366, %cst_119 {dimension_numbers = #tpu.dot_dimension_numbers<[1], [0], [0], [1], [0, 0, 1, 1], [], []>} : vector<8x32xf32>, vector<32x64xf32>, vector<8x64xf32> -> vector<8x64xf32>
    %c120 = arith.constant 120 : index
    %c0_120 = arith.constant 0 : index
    %368 = vector.load %arg3[%c120, %c0_120] : memref<1248x128xf32, #tpu.memory_space<vmem>>, vector<1x64xf32>
    %369 = vector.broadcast %368 : vector<1x64xf32> to vector<8x64xf32>
    %370 = arith.addf %367, %369 : vector<8x64xf32>
    %cst_121 = arith.constant 0.000000e+00 : f32
    %371 = vector.broadcast %cst_121 : f32 to vector<8x64xf32>
    %372 = arith.maximumf %370, %371 : vector<8x64xf32>
    %c168 = arith.constant 168 : index
    %c0_122 = arith.constant 0 : index
    %373 = vector.load %arg3[%c168, %c0_122] : memref<1248x128xf32, #tpu.memory_space<vmem>>, vector<64x32xf32>
    %cst_123 = arith.constant dense<0.000000e+00> : vector<8x32xf32>
    %374 = tpu.matmul %372, %373, %cst_123 {dimension_numbers = #tpu.dot_dimension_numbers<[1], [0], [0], [1], [0, 0, 1, 1], [], []>} : vector<8x64xf32>, vector<64x32xf32>, vector<8x32xf32> -> vector<8x32xf32>
    %c128 = arith.constant 128 : index
    %c0_124 = arith.constant 0 : index
    %375 = vector.load %arg3[%c128, %c0_124] : memref<1248x128xf32, #tpu.memory_space<vmem>>, vector<1x32xf32>
    %376 = vector.broadcast %375 : vector<1x32xf32> to vector<8x32xf32>
    %377 = arith.addf %374, %376 : vector<8x32xf32>
    %378 = arith.addf %365, %377 : vector<8x32xf32>
    %cst_125 = arith.constant dense<0.000000e+00> : vector<8xf32>
    %379 = vector.multi_reduction <add>, %378, %cst_125 [1] : vector<8x32xf32> to vector<8xf32>
    %380 = vector.shape_cast %379 : vector<8xf32> to vector<8x1xf32>
    %cst_126 = arith.constant 3.200000e+01 : f32
    %381 = vector.broadcast %cst_126 : f32 to vector<8x1xf32>
    %382 = arith.divf %380, %381 : vector<8x1xf32>
    %383 = arith.mulf %378, %378 : vector<8x32xf32>
    %cst_127 = arith.constant dense<0.000000e+00> : vector<8xf32>
    %384 = vector.multi_reduction <add>, %383, %cst_127 [1] : vector<8x32xf32> to vector<8xf32>
    %385 = vector.shape_cast %384 : vector<8xf32> to vector<8x1xf32>
    %cst_128 = arith.constant 3.200000e+01 : f32
    %386 = vector.broadcast %cst_128 : f32 to vector<8x1xf32>
    %387 = arith.divf %385, %386 : vector<8x1xf32>
    %388 = arith.mulf %382, %382 : vector<8x1xf32>
    %389 = arith.subf %387, %388 : vector<8x1xf32>
    %390 = vector.broadcast %382 : vector<8x1xf32> to vector<8x32xf32>
    %391 = arith.subf %378, %390 : vector<8x32xf32>
    %cst_129 = arith.constant 9.99999974E-6 : f32
    %392 = vector.broadcast %cst_129 : f32 to vector<8x1xf32>
    %393 = arith.addf %389, %392 : vector<8x1xf32>
    %394 = math.rsqrt %393 : vector<8x1xf32>
    %395 = vector.broadcast %394 : vector<8x1xf32> to vector<8x32xf32>
    %396 = arith.mulf %391, %395 : vector<8x32xf32>
    %c272 = arith.constant 272 : index
    %c0_130 = arith.constant 0 : index
    %397 = vector.load %arg3[%c272, %c0_130] : memref<1248x128xf32, #tpu.memory_space<vmem>>, vector<1x32xf32>
    %398 = vector.broadcast %397 : vector<1x32xf32> to vector<8x32xf32>
    %399 = arith.mulf %396, %398 : vector<8x32xf32>
    %c264 = arith.constant 264 : index
    %c0_131 = arith.constant 0 : index
    %400 = vector.load %arg3[%c264, %c0_131] : memref<1248x128xf32, #tpu.memory_space<vmem>>, vector<1x32xf32>
    %401 = vector.broadcast %400 : vector<1x32xf32> to vector<8x32xf32>
    %402 = arith.addf %399, %401 : vector<8x32xf32>
    %c688 = arith.constant 688 : index
    %c0_132 = arith.constant 0 : index
    %403 = vector.load %arg3[%c688, %c0_132] : memref<1248x128xf32, #tpu.memory_space<vmem>>, vector<32x96xf32>
    %cst_133 = arith.constant dense<0.000000e+00> : vector<8x96xf32>
    %404 = tpu.matmul %402, %403, %cst_133 {dimension_numbers = #tpu.dot_dimension_numbers<[1], [0], [0], [1], [0, 0, 1, 1], [], []>} : vector<8x32xf32>, vector<32x96xf32>, vector<8x96xf32> -> vector<8x96xf32>
    %c648 = arith.constant 648 : index
    %c0_134 = arith.constant 0 : index
    %405 = vector.load %arg3[%c648, %c0_134] : memref<1248x128xf32, #tpu.memory_space<vmem>>, vector<1x96xf32>
    %406 = vector.broadcast %405 : vector<1x96xf32> to vector<8x96xf32>
    %407 = arith.addf %404, %406 : vector<8x96xf32>
    %408 = vector.extract_strided_slice %407 {offsets = [0, 0], sizes = [8, 32], strides = [1, 1]} : vector<8x96xf32> to vector<8x32xf32>
    %409 = vector.extract_strided_slice %407 {offsets = [0, 32], sizes = [8, 32], strides = [1, 1]} : vector<8x96xf32> to vector<8x32xf32>
    %410 = vector.extract_strided_slice %407 {offsets = [0, 64], sizes = [8, 32], strides = [1, 1]} : vector<8x96xf32> to vector<8x32xf32>
    %411 = vector.shape_cast %408 : vector<8x32xf32> to vector<8x4x8xf32>
    %412 = tpu.transpose %411, [1, 0, 2] : vector<8x4x8xf32> -> vector<4x8x8xf32>
    %413 = vector.shape_cast %409 : vector<8x32xf32> to vector<8x4x8xf32>
    %414 = tpu.transpose %413, [1, 0, 2] : vector<8x4x8xf32> -> vector<4x8x8xf32>
    %415 = vector.shape_cast %410 : vector<8x32xf32> to vector<8x4x8xf32>
    %416 = tpu.transpose %415, [1, 0, 2] : vector<8x4x8xf32> -> vector<4x8x8xf32>
    "tpu.trace_start"() <{level = 10 : i32, message = "hqd,hkd->hqk"}> : () -> ()
    %cst_135 = arith.constant dense<0.000000e+00> : vector<4x8x8xf32>
    %417 = tpu.matmul %412, %414, %cst_135 {dimension_numbers = #tpu.dot_dimension_numbers<[2], [2], [1], [1], [0, 0, 0, 1, 1, 1], [0], [0]>} : vector<4x8x8xf32>, vector<4x8x8xf32>, vector<4x8x8xf32> -> vector<4x8x8xf32>
    "tpu.trace_stop"() : () -> ()
    %cst_136 = arith.constant 0.353553385 : f32
    %418 = vector.broadcast %cst_136 : f32 to vector<4x8x8xf32>
    %419 = arith.mulf %417, %418 : vector<4x8x8xf32>
    %420 = vector.shape_cast %35 : vector<8x8xf32> to vector<1x8x8xf32>
    %421 = vector.broadcast %420 : vector<1x8x8xf32> to vector<4x8x8xf32>
    %422 = arith.addf %419, %421 : vector<4x8x8xf32>
    %cst_137 = arith.constant dense<0xFF800000> : vector<4x8xf32>
    %423 = vector.multi_reduction <maximumf>, %422, %cst_137 [2] : vector<4x8x8xf32> to vector<4x8xf32>
    %424 = vector.shape_cast %423 : vector<4x8xf32> to vector<4x8x1xf32>
    %425 = vector.broadcast %424 : vector<4x8x1xf32> to vector<4x8x8xf32>
    %426 = arith.subf %422, %425 : vector<4x8x8xf32>
    %427 = math.exp %426 : vector<4x8x8xf32>
    %cst_138 = arith.constant dense<0.000000e+00> : vector<4x8xf32>
    %428 = vector.multi_reduction <add>, %427, %cst_138 [2] : vector<4x8x8xf32> to vector<4x8xf32>
    %429 = vector.shape_cast %428 : vector<4x8xf32> to vector<4x8x1xf32>
    %430 = tpu.reciprocal %429 {approx = true} : vector<4x8x1xf32> -> vector<4x8x1xf32>
    %431 = vector.broadcast %430 : vector<4x8x1xf32> to vector<4x8x8xf32>
    %432 = arith.mulf %427, %431 : vector<4x8x8xf32>
    "tpu.trace_start"() <{level = 10 : i32, message = "hqk,hkd->hqd"}> : () -> ()
    %cst_139 = arith.constant dense<0.000000e+00> : vector<4x8x8xf32>
    %433 = tpu.matmul %432, %416, %cst_139 {dimension_numbers = #tpu.dot_dimension_numbers<[2], [1], [1], [2], [0, 0, 0, 1, 1, 2], [0], [0]>} : vector<4x8x8xf32>, vector<4x8x8xf32>, vector<4x8x8xf32> -> vector<4x8x8xf32>
    "tpu.trace_stop"() : () -> ()
    %434 = tpu.transpose %433, [1, 0, 2] : vector<4x8x8xf32> -> vector<8x4x8xf32>
    %435 = vector.shape_cast %434 : vector<8x4x8xf32> to vector<8x32xf32>
    %c656 = arith.constant 656 : index
    %c0_140 = arith.constant 0 : index
    %436 = vector.load %arg3[%c656, %c0_140] : memref<1248x128xf32, #tpu.memory_space<vmem>>, vector<32x32xf32>
    %cst_141 = arith.constant dense<0.000000e+00> : vector<8x32xf32>
    %437 = tpu.matmul %435, %436, %cst_141 {dimension_numbers = #tpu.dot_dimension_numbers<[1], [0], [0], [1], [0, 0, 1, 1], [], []>} : vector<8x32xf32>, vector<32x32xf32>, vector<8x32xf32> -> vector<8x32xf32>
    %c640 = arith.constant 640 : index
    %c0_142 = arith.constant 0 : index
    %438 = vector.load %arg3[%c640, %c0_142] : memref<1248x128xf32, #tpu.memory_space<vmem>>, vector<1x32xf32>
    %439 = vector.broadcast %438 : vector<1x32xf32> to vector<8x32xf32>
    %440 = arith.addf %437, %439 : vector<8x32xf32>
    %441 = arith.addf %402, %440 : vector<8x32xf32>
    %cst_143 = arith.constant dense<0.000000e+00> : vector<8xf32>
    %442 = vector.multi_reduction <add>, %441, %cst_143 [1] : vector<8x32xf32> to vector<8xf32>
    %443 = vector.shape_cast %442 : vector<8xf32> to vector<8x1xf32>
    %cst_144 = arith.constant 3.200000e+01 : f32
    %444 = vector.broadcast %cst_144 : f32 to vector<8x1xf32>
    %445 = arith.divf %443, %444 : vector<8x1xf32>
    %446 = arith.mulf %441, %441 : vector<8x32xf32>
    %cst_145 = arith.constant dense<0.000000e+00> : vector<8xf32>
    %447 = vector.multi_reduction <add>, %446, %cst_145 [1] : vector<8x32xf32> to vector<8xf32>
    %448 = vector.shape_cast %447 : vector<8xf32> to vector<8x1xf32>
    %cst_146 = arith.constant 3.200000e+01 : f32
    %449 = vector.broadcast %cst_146 : f32 to vector<8x1xf32>
    %450 = arith.divf %448, %449 : vector<8x1xf32>
    %451 = arith.mulf %445, %445 : vector<8x1xf32>
    %452 = arith.subf %450, %451 : vector<8x1xf32>
    %453 = vector.broadcast %445 : vector<8x1xf32> to vector<8x32xf32>
    %454 = arith.subf %441, %453 : vector<8x32xf32>
    %cst_147 = arith.constant 9.99999974E-6 : f32
    %455 = vector.broadcast %cst_147 : f32 to vector<8x1xf32>
    %456 = arith.addf %452, %455 : vector<8x1xf32>
    %457 = math.rsqrt %456 : vector<8x1xf32>
    %458 = vector.broadcast %457 : vector<8x1xf32> to vector<8x32xf32>
    %459 = arith.mulf %454, %458 : vector<8x32xf32>
    %c600 = arith.constant 600 : index
    %c0_148 = arith.constant 0 : index
    %460 = vector.load %arg3[%c600, %c0_148] : memref<1248x128xf32, #tpu.memory_space<vmem>>, vector<1x32xf32>
    %461 = vector.broadcast %460 : vector<1x32xf32> to vector<8x32xf32>
    %462 = arith.mulf %459, %461 : vector<8x32xf32>
    %c592 = arith.constant 592 : index
    %c0_149 = arith.constant 0 : index
    %463 = vector.load %arg3[%c592, %c0_149] : memref<1248x128xf32, #tpu.memory_space<vmem>>, vector<1x32xf32>
    %464 = vector.broadcast %463 : vector<1x32xf32> to vector<8x32xf32>
    %465 = arith.addf %462, %464 : vector<8x32xf32>
    %c448 = arith.constant 448 : index
    %c0_150 = arith.constant 0 : index
    %466 = vector.load %arg3[%c448, %c0_150] : memref<1248x128xf32, #tpu.memory_space<vmem>>, vector<32x32xf32>
    %cst_151 = arith.constant dense<0.000000e+00> : vector<8x32xf32>
    %467 = tpu.matmul %465, %466, %cst_151 {dimension_numbers = #tpu.dot_dimension_numbers<[1], [0], [0], [1], [0, 0, 1, 1], [], []>} : vector<8x32xf32>, vector<32x32xf32>, vector<8x32xf32> -> vector<8x32xf32>
    %c376 = arith.constant 376 : index
    %c0_152 = arith.constant 0 : index
    %468 = vector.load %arg3[%c376, %c0_152] : memref<1248x128xf32, #tpu.memory_space<vmem>>, vector<1x32xf32>
    %469 = vector.broadcast %468 : vector<1x32xf32> to vector<8x32xf32>
    %470 = arith.addf %467, %469 : vector<8x32xf32>
    %c384 = arith.constant 384 : index
    %c0_153 = arith.constant 0 : index
    %471 = vector.load %arg3[%c384, %c0_153] : memref<1248x128xf32, #tpu.memory_space<vmem>>, vector<32x64xf32>
    %cst_154 = arith.constant dense<0.000000e+00> : vector<8x64xf32>
    %472 = tpu.matmul %235, %471, %cst_154 {dimension_numbers = #tpu.dot_dimension_numbers<[1], [0], [0], [1], [0, 0, 1, 1], [], []>} : vector<8x32xf32>, vector<32x64xf32>, vector<8x64xf32> -> vector<8x64xf32>
    %c360 = arith.constant 360 : index
    %c0_155 = arith.constant 0 : index
    %473 = vector.load %arg3[%c360, %c0_155] : memref<1248x128xf32, #tpu.memory_space<vmem>>, vector<1x64xf32>
    %474 = vector.broadcast %473 : vector<1x64xf32> to vector<8x64xf32>
    %475 = arith.addf %472, %474 : vector<8x64xf32>
    %476 = vector.extract_strided_slice %475 {offsets = [0, 0], sizes = [8, 32], strides = [1, 1]} : vector<8x64xf32> to vector<8x32xf32>
    %477 = vector.extract_strided_slice %475 {offsets = [0, 32], sizes = [8, 32], strides = [1, 1]} : vector<8x64xf32> to vector<8x32xf32>
    %478 = vector.shape_cast %470 : vector<8x32xf32> to vector<8x4x8xf32>
    %479 = tpu.transpose %478, [1, 0, 2] : vector<8x4x8xf32> -> vector<4x8x8xf32>
    %480 = vector.shape_cast %476 : vector<8x32xf32> to vector<8x4x8xf32>
    %481 = tpu.transpose %480, [1, 0, 2] : vector<8x4x8xf32> -> vector<4x8x8xf32>
    %482 = vector.shape_cast %477 : vector<8x32xf32> to vector<8x4x8xf32>
    %483 = tpu.transpose %482, [1, 0, 2] : vector<8x4x8xf32> -> vector<4x8x8xf32>
    "tpu.trace_start"() <{level = 10 : i32, message = "hqd,hkd->hqk"}> : () -> ()
    %cst_156 = arith.constant dense<0.000000e+00> : vector<4x8x8xf32>
    %484 = tpu.matmul %479, %481, %cst_156 {dimension_numbers = #tpu.dot_dimension_numbers<[2], [2], [1], [1], [0, 0, 0, 1, 1, 1], [0], [0]>} : vector<4x8x8xf32>, vector<4x8x8xf32>, vector<4x8x8xf32> -> vector<4x8x8xf32>
    "tpu.trace_stop"() : () -> ()
    %cst_157 = arith.constant 0.353553385 : f32
    %485 = vector.broadcast %cst_157 : f32 to vector<4x8x8xf32>
    %486 = arith.mulf %484, %485 : vector<4x8x8xf32>
    %487 = vector.shape_cast %25 : vector<1x8xf32> to vector<1x1x8xf32>
    %488 = vector.broadcast %487 : vector<1x1x8xf32> to vector<4x8x8xf32>
    %489 = arith.addf %486, %488 : vector<4x8x8xf32>
    %cst_158 = arith.constant dense<0xFF800000> : vector<4x8xf32>
    %490 = vector.multi_reduction <maximumf>, %489, %cst_158 [2] : vector<4x8x8xf32> to vector<4x8xf32>
    %491 = vector.shape_cast %490 : vector<4x8xf32> to vector<4x8x1xf32>
    %492 = vector.broadcast %491 : vector<4x8x1xf32> to vector<4x8x8xf32>
    %493 = arith.subf %489, %492 : vector<4x8x8xf32>
    %494 = math.exp %493 : vector<4x8x8xf32>
    %cst_159 = arith.constant dense<0.000000e+00> : vector<4x8xf32>
    %495 = vector.multi_reduction <add>, %494, %cst_159 [2] : vector<4x8x8xf32> to vector<4x8xf32>
    %496 = vector.shape_cast %495 : vector<4x8xf32> to vector<4x8x1xf32>
    %497 = tpu.reciprocal %496 {approx = true} : vector<4x8x1xf32> -> vector<4x8x1xf32>
    %498 = vector.broadcast %497 : vector<4x8x1xf32> to vector<4x8x8xf32>
    %499 = arith.mulf %494, %498 : vector<4x8x8xf32>
    "tpu.trace_start"() <{level = 10 : i32, message = "hqk,hkd->hqd"}> : () -> ()
    %cst_160 = arith.constant dense<0.000000e+00> : vector<4x8x8xf32>
    %500 = tpu.matmul %499, %483, %cst_160 {dimension_numbers = #tpu.dot_dimension_numbers<[2], [1], [1], [2], [0, 0, 0, 1, 1, 2], [0], [0]>} : vector<4x8x8xf32>, vector<4x8x8xf32>, vector<4x8x8xf32> -> vector<4x8x8xf32>
    "tpu.trace_stop"() : () -> ()
    %501 = tpu.transpose %500, [1, 0, 2] : vector<4x8x8xf32> -> vector<8x4x8xf32>
    %502 = vector.shape_cast %501 : vector<8x4x8xf32> to vector<8x32xf32>
    %c416 = arith.constant 416 : index
    %c0_161 = arith.constant 0 : index
    %503 = vector.load %arg3[%c416, %c0_161] : memref<1248x128xf32, #tpu.memory_space<vmem>>, vector<32x32xf32>
    %cst_162 = arith.constant dense<0.000000e+00> : vector<8x32xf32>
    %504 = tpu.matmul %502, %503, %cst_162 {dimension_numbers = #tpu.dot_dimension_numbers<[1], [0], [0], [1], [0, 0, 1, 1], [], []>} : vector<8x32xf32>, vector<32x32xf32>, vector<8x32xf32> -> vector<8x32xf32>
    %c368 = arith.constant 368 : index
    %c0_163 = arith.constant 0 : index
    %505 = vector.load %arg3[%c368, %c0_163] : memref<1248x128xf32, #tpu.memory_space<vmem>>, vector<1x32xf32>
    %506 = vector.broadcast %505 : vector<1x32xf32> to vector<8x32xf32>
    %507 = arith.addf %504, %506 : vector<8x32xf32>
    %508 = arith.addf %465, %507 : vector<8x32xf32>
    %cst_164 = arith.constant dense<0.000000e+00> : vector<8xf32>
    %509 = vector.multi_reduction <add>, %508, %cst_164 [1] : vector<8x32xf32> to vector<8xf32>
    %510 = vector.shape_cast %509 : vector<8xf32> to vector<8x1xf32>
    %cst_165 = arith.constant 3.200000e+01 : f32
    %511 = vector.broadcast %cst_165 : f32 to vector<8x1xf32>
    %512 = arith.divf %510, %511 : vector<8x1xf32>
    %513 = arith.mulf %508, %508 : vector<8x32xf32>
    %cst_166 = arith.constant dense<0.000000e+00> : vector<8xf32>
    %514 = vector.multi_reduction <add>, %513, %cst_166 [1] : vector<8x32xf32> to vector<8xf32>
    %515 = vector.shape_cast %514 : vector<8xf32> to vector<8x1xf32>
    %cst_167 = arith.constant 3.200000e+01 : f32
    %516 = vector.broadcast %cst_167 : f32 to vector<8x1xf32>
    %517 = arith.divf %515, %516 : vector<8x1xf32>
    %518 = arith.mulf %512, %512 : vector<8x1xf32>
    %519 = arith.subf %517, %518 : vector<8x1xf32>
    %520 = vector.broadcast %512 : vector<8x1xf32> to vector<8x32xf32>
    %521 = arith.subf %508, %520 : vector<8x32xf32>
    %cst_168 = arith.constant 9.99999974E-6 : f32
    %522 = vector.broadcast %cst_168 : f32 to vector<8x1xf32>
    %523 = arith.addf %519, %522 : vector<8x1xf32>
    %524 = math.rsqrt %523 : vector<8x1xf32>
    %525 = vector.broadcast %524 : vector<8x1xf32> to vector<8x32xf32>
    %526 = arith.mulf %521, %525 : vector<8x32xf32>
    %c616 = arith.constant 616 : index
    %c0_169 = arith.constant 0 : index
    %527 = vector.load %arg3[%c616, %c0_169] : memref<1248x128xf32, #tpu.memory_space<vmem>>, vector<1x32xf32>
    %528 = vector.broadcast %527 : vector<1x32xf32> to vector<8x32xf32>
    %529 = arith.mulf %526, %528 : vector<8x32xf32>
    %c608 = arith.constant 608 : index
    %c0_170 = arith.constant 0 : index
    %530 = vector.load %arg3[%c608, %c0_170] : memref<1248x128xf32, #tpu.memory_space<vmem>>, vector<1x32xf32>
    %531 = vector.broadcast %530 : vector<1x32xf32> to vector<8x32xf32>
    %532 = arith.addf %529, %531 : vector<8x32xf32>
    %c496 = arith.constant 496 : index
    %c0_171 = arith.constant 0 : index
    %533 = vector.load %arg3[%c496, %c0_171] : memref<1248x128xf32, #tpu.memory_space<vmem>>, vector<32x64xf32>
    %cst_172 = arith.constant dense<0.000000e+00> : vector<8x64xf32>
    %534 = tpu.matmul %532, %533, %cst_172 {dimension_numbers = #tpu.dot_dimension_numbers<[1], [0], [0], [1], [0, 0, 1, 1], [], []>} : vector<8x32xf32>, vector<32x64xf32>, vector<8x64xf32> -> vector<8x64xf32>
    %c480 = arith.constant 480 : index
    %c0_173 = arith.constant 0 : index
    %535 = vector.load %arg3[%c480, %c0_173] : memref<1248x128xf32, #tpu.memory_space<vmem>>, vector<1x64xf32>
    %536 = vector.broadcast %535 : vector<1x64xf32> to vector<8x64xf32>
    %537 = arith.addf %534, %536 : vector<8x64xf32>
    %cst_174 = arith.constant 0.000000e+00 : f32
    %538 = vector.broadcast %cst_174 : f32 to vector<8x64xf32>
    %539 = arith.maximumf %537, %538 : vector<8x64xf32>
    %c528 = arith.constant 528 : index
    %c0_175 = arith.constant 0 : index
    %540 = vector.load %arg3[%c528, %c0_175] : memref<1248x128xf32, #tpu.memory_space<vmem>>, vector<64x32xf32>
    %cst_176 = arith.constant dense<0.000000e+00> : vector<8x32xf32>
    %541 = tpu.matmul %539, %540, %cst_176 {dimension_numbers = #tpu.dot_dimension_numbers<[1], [0], [0], [1], [0, 0, 1, 1], [], []>} : vector<8x64xf32>, vector<64x32xf32>, vector<8x32xf32> -> vector<8x32xf32>
    %c488 = arith.constant 488 : index
    %c0_177 = arith.constant 0 : index
    %542 = vector.load %arg3[%c488, %c0_177] : memref<1248x128xf32, #tpu.memory_space<vmem>>, vector<1x32xf32>
    %543 = vector.broadcast %542 : vector<1x32xf32> to vector<8x32xf32>
    %544 = arith.addf %541, %543 : vector<8x32xf32>
    %545 = arith.addf %532, %544 : vector<8x32xf32>
    %cst_178 = arith.constant dense<0.000000e+00> : vector<8xf32>
    %546 = vector.multi_reduction <add>, %545, %cst_178 [1] : vector<8x32xf32> to vector<8xf32>
    %547 = vector.shape_cast %546 : vector<8xf32> to vector<8x1xf32>
    %cst_179 = arith.constant 3.200000e+01 : f32
    %548 = vector.broadcast %cst_179 : f32 to vector<8x1xf32>
    %549 = arith.divf %547, %548 : vector<8x1xf32>
    %550 = arith.mulf %545, %545 : vector<8x32xf32>
    %cst_180 = arith.constant dense<0.000000e+00> : vector<8xf32>
    %551 = vector.multi_reduction <add>, %550, %cst_180 [1] : vector<8x32xf32> to vector<8xf32>
    %552 = vector.shape_cast %551 : vector<8xf32> to vector<8x1xf32>
    %cst_181 = arith.constant 3.200000e+01 : f32
    %553 = vector.broadcast %cst_181 : f32 to vector<8x1xf32>
    %554 = arith.divf %552, %553 : vector<8x1xf32>
    %555 = arith.mulf %549, %549 : vector<8x1xf32>
    %556 = arith.subf %554, %555 : vector<8x1xf32>
    %557 = vector.broadcast %549 : vector<8x1xf32> to vector<8x32xf32>
    %558 = arith.subf %545, %557 : vector<8x32xf32>
    %cst_182 = arith.constant 9.99999974E-6 : f32
    %559 = vector.broadcast %cst_182 : f32 to vector<8x1xf32>
    %560 = arith.addf %556, %559 : vector<8x1xf32>
    %561 = math.rsqrt %560 : vector<8x1xf32>
    %562 = vector.broadcast %561 : vector<8x1xf32> to vector<8x32xf32>
    %563 = arith.mulf %558, %562 : vector<8x32xf32>
    %c632 = arith.constant 632 : index
    %c0_183 = arith.constant 0 : index
    %564 = vector.load %arg3[%c632, %c0_183] : memref<1248x128xf32, #tpu.memory_space<vmem>>, vector<1x32xf32>
    %565 = vector.broadcast %564 : vector<1x32xf32> to vector<8x32xf32>
    %566 = arith.mulf %563, %565 : vector<8x32xf32>
    %c624 = arith.constant 624 : index
    %c0_184 = arith.constant 0 : index
    %567 = vector.load %arg3[%c624, %c0_184] : memref<1248x128xf32, #tpu.memory_space<vmem>>, vector<1x32xf32>
    %568 = vector.broadcast %567 : vector<1x32xf32> to vector<8x32xf32>
    %569 = arith.addf %566, %568 : vector<8x32xf32>
    %c1208 = arith.constant 1208 : index
    %c0_185 = arith.constant 0 : index
    %570 = vector.load %arg3[%c1208, %c0_185] : memref<1248x128xf32, #tpu.memory_space<vmem>>, vector<32x128xf32>
    %cst_186 = arith.constant dense<0.000000e+00> : vector<8x128xf32>
    %571 = tpu.matmul %569, %570, %cst_186 {dimension_numbers = #tpu.dot_dimension_numbers<[1], [0], [0], [1], [0, 0, 1, 1], [], []>} : vector<8x32xf32>, vector<32x128xf32>, vector<8x128xf32> -> vector<8x128xf32>
    %c1200 = arith.constant 1200 : index
    %c0_187 = arith.constant 0 : index
    %572 = vector.load %arg3[%c1200, %c0_187] : memref<1248x128xf32, #tpu.memory_space<vmem>>, vector<1x128xf32>
    %573 = vector.broadcast %572 : vector<1x128xf32> to vector<8x128xf32>
    %574 = arith.addf %571, %573 : vector<8x128xf32>
    %c0_188 = arith.constant 0 : index
    %c0_189 = arith.constant 0 : index
    %c0_190 = arith.constant 0 : index
    %575 = vector.load %arg4[%c0_188, %c0_189, %c0_190] : memref<1x8x128xf32, #tpu.memory_space<vmem>>, vector<1x8x128xf32>
    %576 = vector.shape_cast %575 : vector<1x8x128xf32> to vector<8x128xf32>
    %577 = vector.shape_cast %574 : vector<8x128xf32> to vector<1x8x128xf32>
    tpu.vector_store %arg4[%c0_188, %c0_189, %c0_190], %577 {strides = array<i32>} : memref<1x8x128xf32, #tpu.memory_space<vmem>>, vector<1x8x128xf32>,
    return
  }
  func.func @transform_0(%arg0: i32) -> (i32, i32, i32) {
    %c0_i32 = arith.constant 0 : i32
    %c0_i32_0 = arith.constant 0 : i32
    %c0_i32_1 = arith.constant 0 : i32
    return %arg0, %c0_i32, %c0_i32_0 : i32, i32, i32
  }
  func.func @transform_1(%arg0: i32) -> (i32, i32, i32) {
    %c0_i32 = arith.constant 0 : i32
    %c0_i32_0 = arith.constant 0 : i32
    %c0_i32_1 = arith.constant 0 : i32
    return %arg0, %c0_i32, %c0_i32_0 : i32, i32, i32
  }
  func.func @transform_2(%arg0: i32) -> (i32, i32) {
    %c0_i32 = arith.constant 0 : i32
    %c0_i32_0 = arith.constant 0 : i32
    %c0_i32_1 = arith.constant 0 : i32
    return %c0_i32, %c0_i32_0 : i32, i32
  }
  func.func @transform_3(%arg0: i32) -> (i32, i32, i32) {
    %c0_i32 = arith.constant 0 : i32
    %c0_i32_0 = arith.constant 0 : i32
    %c0_i32_1 = arith.constant 0 : i32
    return %arg0, %c0_i32, %c0_i32_0 : i32, i32, i32
  }
}

</mosaic_0001>

<bundles_post_ra>
// kernel: forward.1
= control target key start
LH: loop header
LB: loop body
LE: loop exit
PB: predicated region body
PF: predicated region fallthrough
CT: control target
= control target key end

     0   :  { %8 = vsyncpa [#allocation3], 0  ;;  %s12983_s0 = inlined_call_operand.vmem [shape: s32[2,1,8], index: 0, kind: input, shape index: {}]   ;;  %s12984_s1 = inlined_call_operand.vmem [shape: s32[2,8,1], index: 1, kind: input, shape index: {}]   ;;  %s12985_s2 = inlined_call_operand.hbm [shape: f32[1248,128], index: 2, kind: input, shape index: {}]   ;;  %s12986_s3 = inlined_call_operand.hbm [shape: f32[2,8,128], index: 3, kind: output, shape index: {}]  }
   0x1   :  { %9 = vsyncpa [#allocation4], 0 }
   0x2   :  { %11 = vsyncpa [#allocation4 + $0x1], 0  ;;  %s11609_s12 = smov 0   ;;  %s11611_s13 = smov 0  }
   0x3   :  { %s11613_s14 = smov 0   ;;  %s11615_s15 = smov 0  }
   0x4 LB: > { %s11630_s16 = sadd.s32 4294967295, %s11568_s15   ;;  %s10144_s17 = sadd.s32 4294967294, %s11568_s15   ;;  %s11568_s15 = sphi %s11615_s15, %s13002_s15   ;;  %s11564_s14 = sphi %s11613_s14, %s13001_s14   ;;  %s11560_s13 = sphi %s11611_s13, %s13000_s13   ;;  %s11556_s12 = sphi %s11609_s12, %s12999_s12  }
   0x5   : > { %s11634_s18 = sadd.s32 1, %s11568_s15   ;;  %s97_s19 = sadd.s32 1, %s11564_s14 }
   0x6   : > { %s94_s20 = ssub.s32 %s11568_s15, %s11634_s18  ;;  %p107_p0 = scmp.ne.s32.totalorder %s11564_s14, %s11560_s13 }
   0x7   : > { %p95_p1 = scmp.eq.s32.totalorder %s94_s20, 0  ;;  %p108_p2 = scmp.eq.s32.totalorder %s11630_s16, 1 }
   0x8   : > { %p113_p3 = scmp.ne.s32.totalorder %s11560_s13, %s11556_s12  ;;  %p114_p4 = scmp.eq.s32.totalorder %s10144_s17, 1 }
   0x9   : > { %s11645_s21 = scalar_select %p95_p1, %s11564_s14, %s97_s19  }
   0xa   : > { %p11647_p5 = por %p108_p2, %p107_p0  ;;  %p11651_p6 = por %p114_p4, %p113_p3 }
   0xb   : > { %p10145_p7 = scmp.ge.s32.totalorder %s11568_s15, 1  ;;  %p121_p8 = scmp.lt.s32.totalorder %s11568_s15, 3 }
   0xc   : > { %s12990_s22 = scalar_select %p11647_p5, 1, 0 }
   0xd   : > { %s12991_s23 = scalar_select %p11651_p6, 1, 0 }
   0xe   : > { %p12987_p9 = scmp.eq.s32.totalorder %s11630_s16, 0  ;;  %p11658_p10 = pnand %p10145_p7, %p121_p8 }
   0xf   : > { %s11570_s25 = smov [#allocation2]   ;;  %s11474_s30 = scalar_lea.hbm %s12985_s2, 19968 }
  0x10   : > { %s12992_s24 = scalar_select %p11658_p10, 1, 0 }
  0x11   : > { %s133_s26 = sshll.u32 %s11570_s25, 4  ;;  %p11293_p11 = pneg %p11658_p10  ;;  %s134_s26 = int_to_ptr.vmem [resolvable:$true] %s133_s26 }
  0x12   : > { %p11475_p13 = scmp.ne.s32.totalorder %s12985_s2, %s11474_s30  ;;  %p11481_p3 = scmp.lt.u32.totalorder %s11474_s30, %s12985_s2 }
  0x13   : > { %p11666_p12 = pnand %p12987_p9, %p11293_p11 }
  0x15   : > { %p11476_p0 = pneg %p11666_p12 }
  0x17   : > { %p11477_p1 = pnand %p11476_p0, %p11475_p13 }
  0x19   : > { %p11478_p2 = pneg %p11477_p1 }
  0x1b   : > { %p11483_p4 = pnand %p11481_p3, %p11478_p2 }
  0x1d   : > { %11486 = shalt.err (!%p11483_p4)
}
  0x1e   : > { %s11487_s8 = scalar_lea.vmem %s134_s26, 19968  ;;  %p11495_p9 = scmp.lt.s32.totalorder %s134_s26, %s134_s26 }
  0x1f   : > { %p11488_p7 = scmp.ne.s32.totalorder %s134_s26, %s11487_s8  ;;  %p11496_p6 = scmp.lt.s32.totalorder %s11487_s8, %s11487_s8 }
  0x21   : > { %p11490_p8 = pnand %p11488_p7, %p11476_p0  ;;  %p11497_p5 = por %p11496_p6, %p11495_p9 }
  0x23   : > { %p11491_p11 = pneg %p11490_p8 }
  0x25   : > { %p11498_p10 = pnand %p11497_p5, %p11491_p11 }
  0x27   : > { %11501 = shalt.err (!%p11498_p10)
}
  0x28   : > { %s11571_s9 = smov 128   ;;  %s11572_s10 = smov 8  }
  0x29   : > { %11296 = dma.hbm_to_vmem [thread:$0]  (!%p11666_p12), %s12985_s2, 19968, %s134_s26, [#allocation3], %s11571_s9, %s11571_s9, %s11572_s10  }
  0x2a   : > { %p12994_p13 = scmp.ne.s32.totalorder %s12992_s24, 0 }
  0x2b   : > { %p12995_p1 = scmp.eq.s32.totalorder (!%p12994_p13), %s11630_s16, 0 }
  0x2c   : > { %162 = sbr.rel (%p12994_p13) target bundleno = 12805 (0x3205), region = 32 }
  0x33   : > { %11547 = dma.done.wait (%p12995_p1), [#allocation3], 19968   ;;  %p12996_p0 = pmov %p12995_p1 }
  0x34   : > { %p188_p5 = scmp.lt.s32.totalorder %s11630_s16, 1  ;;  %v197_v0 = vlaneseq  ;;  %v11573_v2 = vmov 0.0|0.0   ;;  %vm11574_vm0 = vmmov 0   ;;  %v11575_v3 = vmov 0.0   ;;  %v210_v7 = vld [vmem:[#allocation2 + $0x4a0] sm:$0xff]  ;;  %v211_v8 = vld [vmem:[#allocation2 + $0x4a8] sm:$0xff] }
  0x35   : > { %11549 = vsyncadd (%p12996_p0), [#allocation3], 4294947328  ;;  %11119 = vmatprep.subr.bf16.mxu1 %v11573_v2  ;;  %10584 = vmatprep.mubr.msk.f32.mxu1 %vm11574_vm0, %v11575_v3  ;;  %v11120_v10 = vpack.c.bf16 %v211_v8, %v210_v7  ;;  %v413_v15 = vld [vmem:[#allocation2 + $0x310] sm:$0xff]  ;;  %v414_v16 = vld [vmem:[#allocation2 + $0x318] sm:$0xff]  ;;  %vm255_vm4 = vcmask 130048   ;;  %vm422_vm5 = vcmask 261120  }
  0x36   : > { %s11694_s19 = scalar_select %p188_p5, %s11630_s16, 1  ;;  %v11697_v1 = vshrl.u32 %v197_v0, 7  ;;  %11125 = vmatprep.subr.bf16.mxu0 %v11573_v2  ;;  %10602 = vmatprep.mubr.msk.f32.mxu0 %vm11574_vm0, %v11575_v3  ;;  %v11126_v17 = vpack.c.bf16 %v414_v16, %v413_v15  ;;  %v415_v19 = vld [vmem:[#allocation2 + $0x320] sm:$0xff]  ;;  %v416_v20 = vld [vmem:[#allocation2 + $0x328] sm:$0xff]  ;;  %v222_v22 = vld [vmem:[#allocation2 + $0x4d8] sm:$0xff]  ;;  %v11576_v30 = vmov 0  }
  0x37   : > { %11121 = vmatpush3.bf16.msra.mxu1 %v11120_v10  ;;  %v11129_v21 = vpack.c.bf16 %v416_v20, %v415_v19  ;;  %v10157_v26 = vld [vmem:[#allocation2 + $0x2e8] ss:$0 sm:$0xff]  ;;  %11354 = vset.pattern.permute.xlu1 %v11576_v30  ;;  %s11577_s26 = smov 104   ;;  %s11578_s27 = smov 120   ;;  %v220_v32 = vld [vmem:[#allocation2 + $0x2d0] sm:$0xff]  ;;  %v221_v33 = vld [vmem:[#allocation2 + $0x2d8] sm:$0xff] }
  0x38   : > { %s190_s25 = scalar_lea.vmem %s12983_s0, %s11694_s19  ;;  %v202_v4 = vsub.s32 0, %v11697_v1  ;;  %v199_v5 = vadd.s32 8, %v11697_v1  ;;  %11122 = vmatprep.subr.bf16.mxu1 %v11573_v2  ;;  %11127 = vmatpush3.bf16.msra.mxu0 %v11126_v17  ;;  %s11579_s28 = smov 112   ;;  %v11123_v35 = vpack.c.bf16 %v221_v33, %v220_v32  ;;  %v11581_v38 = vmov 1983009808  }
  0x39   : > { %v195_v6 = vld [vmem:[%s190_s25] sm:$0x1]  ;;  %11128 = vmatprep.subr.bf16.mxu0 %v11573_v2  ;;  %s11580_s29 = smov 96   ;;  %s10151_s30 = sshll.u32 %s11694_s19, 3  ;;  %v509_v39 = vunpack.c.l.s4 %v11581_v38  ;;  %v11582_v41 = vmov 1934713408  }
  0x3a   : > { %v203_v9 = vrot.slane %v195_v6, %v202_v4  ;;  %vm402_vm1 = vcmp.eq.s32.totalorder %v195_v6, 0  ;;  %s11753_s6 = scalar_lea.vmem %s12984_s1, %s10151_s30  ;;  %v541_v42 = vunpack.c.l.s4 %v11582_v41  ;;  %vm938_vm6 = vcmask 64512   ;;  %s11583_s7 = smov 64  }
  0x3b   : > { %v403_v11 = vsel %vm402_vm1, -1e+09, %v11575_v3  ;;  %v196_v37 = vld [vmem:[%s11753_s6] sm:$0xff]  ;;  %v510_v40 = vunpack.c.0.s8 %v509_v39  ;;  %s11584_s8 = smov 16   ;;  %s11585_s9 = smov 8   ;;  %vm1743_vm8 = vcmask 195584  }
  0x3c   : > { %vm204_vm2 = vcmp.eq.s32.totalorder %v11697_v1, %v203_v9  ;;  %v11713_v12 = vrot.slane %v403_v11, %v202_v4  ;;  %vm205_vm3 = vcmp.eq.s32.totalorder %v199_v5, %v203_v9  ;;  %11130 = vmatpush3.bf16.msra.mxu0 %v11129_v21  ;;  %v542_v49 = vunpack.c.0.s8 %v541_v42  ;;  %s11586_s10 = smov 24   ;;  %s185_s11 = sand.u32 1, %s11560_s13  }
  0x3d   : > { %v10152_v13 = vsel %vm204_vm2, 1.0, %v11575_v3  ;;  %v10153_v14 = vsel %vm205_vm3, 1.0, %v11575_v3  ;;  %10615 = vmatprep.subr.mxu0 %v11575_v3  ;;  %v11766_v46 = vsub.s32 %v510_v40, %v11697_v1  ;;  %vm1952_vm9 = vcmask 523264   ;;  %s10150_s17 = sshll.u32 %s185_s11, 3  ;;  %s10344_s19 = sshll.u32 %s11630_s16, 7 }
  0x3e   : > { %223 = vxpose.xlu0.b32.start [1/2] (short) (narrow) %v10152_v13, 8  ;;  %v11777_v55 = vsub.s32 %v542_v49, %v11697_v1  ;;  %s187_s20 = scalar_lea.vmem [#allocation5], %s10150_s17  ;;  %p12997_p9 = scmp.ne.s32.totalorder %s12990_s22, 0 }
  0x3f   : > { %s10064_s24 = sshll.u32 %s187_s20, 4  ;;  %s11588_s16 = smov [#allocation5]   ;;  %s12943_s24 = int_to_ptr.vmem [resolvable:$true] %s10064_s24 }
  0x40   : > { %s11506_s30 = sshll.u32 %s11588_s16, 4  ;;  %s11507_s30 = int_to_ptr.vmem [resolvable:$false] %s11506_s30 }
  0x41   : > { %s11508_s4 = scalar_lea.vmem %s11507_s30, 256  ;;  %p11509_p2 = scmp.lt.s32.totalorder %s12943_s24, %s11507_s30 }
  0x42   : > { %224 = vxpose.xlu0.b32.end [2/2] (short) (narrow) %v10153_v14, 8 }
  0x6b   : > { %11355 = vset.pattern.permute.xlu0 %v11576_v30 }
  0xbe   : > { %v239_v18 = vpop.trf.xlu0 }
  0xbf   : > { %10585 = vmatmul.mubr.msk.f32.vlgmr.msra.gmra.mrb[0].mxu1 %vm255_vm4, %v239_v18 }
  0xc0   : > { %10591 = vmatprep.mubr.msk.f32.mxu1 %vm11574_vm0, %v11575_v3  ;;  %11124 = vmatpush3.bf16.msra.mxu1 %v11123_v35 }
  0xc1   : > { %10605 = vmatprep.subr.mxu1 %v11575_v3 }
 0x192   : > { %v325_v23 = vpop.f32.mrb[0].mxu1 }
 0x193   : > { %v11723_v24 = vadd.f32 %v325_v23, %v222_v22  ;;  %v10586_v25 = vpop.f32.mrb[1].mxu1 }
 0x195   : > { %10603 = vmatmul.mubr.msk.f32.vlgmr.msra.gmra.mrb[0].mxu0 %vm422_vm5, %v11723_v24 }
 0x196   : > { %10617 = vmatprep.mubr.msk.f32.mxu0 %vm11574_vm0, %v11575_v3 }
 0x268   : > { %v492_v27 = vpop.f32.mrb[0].mxu0 }
 0x269   : > { %v11729_v28 = vadd.f32 %v10157_v26, %v492_v27  ;;  %v10604_v29 = vpop.f32.mrb[1].mxu0 }
 0x26b   : > { %503 = vrot.lane.b32.xlu0 %v11729_v28, %s11577_s26  ;;  %497 = vrot.lane.b32.xlu1 %v11729_v28, %s11578_s27 }
 0x26f   : > { %500 = vrot.lane.b32.xlu1 %v11729_v28, %s11579_s28 }
 0x273   : > { %642 = vrot.lane.b32.xlu1 %v11729_v28, %s11580_s29 }
 0x2dd   : > { %v11741_v31 = vpop.permute.xlu1 %497  ;;  %v11756_v36 = vpop.permute.xlu0 %503 }
 0x2de   : > { %644 = vrot.lane.b32.xlu1 %v11741_v31, %s11580_s29  ;;  %v522_v47 = vcombine.low %v11741_v31, %v11756_v36  ;;  %v523_v48 = vcombine.high %v11741_v31, %v11756_v36 }
 0x2e0   : > { %v530_v53 = vrot.slane %v522_v47, %v11766_v46  ;;  %v537_v54 = vrot.slane %v523_v48, %v11766_v46 }
 0x2e1   : > { %v11745_v34 = vpop.permute.xlu1 %500 }
 0x2e2   : > { %646 = vrot.lane.b32.xlu1 %v11745_v34, %s11580_s29  ;;  %v506_v43 = vcombine.low %v11729_v28, %v11745_v34  ;;  %v507_v44 = vcombine.high %v11729_v28, %v11745_v34 }
 0x2e4   : > { %v514_v50 = vrot.slane %v506_v43, %v11766_v46  ;;  %v521_v51 = vrot.slane %v507_v44, %v11766_v46 }
 0x2e5   : > { %v643_v45 = vpop.permute.xlu1 %642 }
 0x2e6   : > { %648 = vrot.lane.b32.xlu1 %v11756_v36, %s11580_s29  ;;  %v538_v56 = vcombine.low %v514_v50, %v530_v53  ;;  %v539_v57 = vcombine.high %v514_v50, %v530_v53  ;;  %v554_v58 = vcombine.low %v521_v51, %v537_v54  ;;  %v555_v59 = vcombine.high %v521_v51, %v537_v54 }
 0x2e8   : > { %v546_v63 = vrot.slane %v538_v56, %v11777_v55  ;;  %v553_v4 = vrot.slane %v539_v57, %v11777_v55  ;;  %v562_v5 = vrot.slane %v554_v58, %v11777_v55  ;;  %v569_v6 = vrot.slane %v555_v59, %v11777_v55 }
 0x2ea   : > { %215 = vperm.xlu1 %11354, %v196_v37   ;;  %v574_v15 = vcombine.low %v546_v63, %v553_v4  ;;  %v10159_v16 = vcombine.high %v546_v63, %v553_v4  ;;  %v590_v17 = vcombine.low %v562_v5, %v569_v6  ;;  %v10160_v18 = vcombine.high %v562_v5, %v569_v6 }
 0x2ec   : > { %v581_v29 = vrot.slane %v574_v15, %v11766_v46  ;;  %v589_v32 = vrot.slane %v10159_v16, %v11766_v46  ;;  %v597_v33 = vrot.slane %v590_v17, %v11766_v46  ;;  %v605_v35 = vrot.slane %v10160_v18, %v11766_v46 }
 0x2ee   : > { %v623_v47 = vcombine.high %v597_v33, %v605_v35  ;;  %v606_v53 = vcombine.low %v581_v29, %v589_v32  ;;  %v622_v54 = vcombine.low %v597_v33, %v605_v35 }
 0x2f0   : > { %v630_v5 = vrot.slane %v622_v54, %v11777_v55 }
 0x350   : > { %v645_v52 = vpop.permute.xlu1 %644 }
 0x354   : > { %v647_v60 = vpop.permute.xlu1 %646 }
 0x355   : > { %v654_v61 = vcombine.low %v643_v45, %v647_v60  ;;  %v655_v62 = vcombine.high %v643_v45, %v647_v60  ;;  %v607_v45 = vcombine.high %v581_v29, %v589_v32 }
 0x357   : > { %v662_v10 = vrot.slane %v654_v61, %v11766_v46  ;;  %v669_v11 = vrot.slane %v655_v62, %v11766_v46  ;;  %v621_v60 = vrot.slane %v607_v45, %v11777_v55  ;;  %v637_v61 = vrot.slane %v623_v47, %v11777_v55 }
 0x358   : > { %v649_v7 = vpop.permute.xlu1 %648 }
 0x359   : > { %v670_v8 = vcombine.low %v645_v52, %v649_v7  ;;  %v671_v9 = vcombine.high %v645_v52, %v649_v7  ;;  %v11800_v52 = vand.u32 127, %v197_v0  ;;  %v614_v0 = vrot.slane %v606_v53, %v11777_v55 }
 0x35a   : > { %v640_v7 = vcombine.low %v621_v60, %v637_v61 }
 0x35b   : > { %v678_v13 = vrot.slane %v670_v8, %v11766_v46  ;;  %v685_v14 = vrot.slane %v671_v9, %v11766_v46  ;;  %v638_v8 = vcombine.low %v614_v0, %v630_v5  ;;  %vm404_vm11 = vcmp.le.s32.totalorder %v11800_v52, %v11697_v1 }
 0x35d   : > { %v686_v19 = vcombine.low %v662_v10, %v678_v13  ;;  %v687_v20 = vcombine.high %v662_v10, %v678_v13  ;;  %v702_v21 = vcombine.low %v669_v11, %v685_v14  ;;  %v703_v22 = vcombine.high %v669_v11, %v685_v14 }
 0x35e   : > { %v639_v10 = vcombine.high %v614_v0, %v630_v5  ;;  %v641_v13 = vcombine.high %v621_v60, %v637_v61 }
 0x35f   : > { %v694_v23 = vrot.slane %v686_v19, %v11777_v55  ;;  %v701_v25 = vrot.slane %v687_v20, %v11777_v55  ;;  %v710_v26 = vrot.slane %v702_v21, %v11777_v55  ;;  %v717_v27 = vrot.slane %v703_v22, %v11777_v55 }
 0x361   : > { %v722_v37 = vcombine.low %v694_v23, %v701_v25  ;;  %v10161_v38 = vcombine.high %v694_v23, %v701_v25  ;;  %v738_v39 = vcombine.low %v710_v26, %v717_v27  ;;  %v10162_v40 = vcombine.high %v710_v26, %v717_v27 }
 0x363   : > { %v729_v41 = vrot.slane %v722_v37, %v11766_v46  ;;  %v737_v42 = vrot.slane %v10161_v38, %v11766_v46  ;;  %v745_v43 = vrot.slane %v738_v39, %v11766_v46  ;;  %v753_v44 = vrot.slane %v10162_v40, %v11766_v46 }
 0x365   : > { %v754_v48 = vcombine.low %v729_v41, %v737_v42  ;;  %v755_v49 = vcombine.high %v729_v41, %v737_v42  ;;  %v770_v50 = vcombine.low %v745_v43, %v753_v44  ;;  %v771_v51 = vcombine.high %v745_v43, %v753_v44 }
 0x367   : > { %v769_v56 = vrot.slane %v755_v49, %v11777_v55  ;;  %v785_v57 = vrot.slane %v771_v51, %v11777_v55  ;;  %v762_v58 = vrot.slane %v754_v48, %v11777_v55  ;;  %v778_v59 = vrot.slane %v770_v50, %v11777_v55 }
 0x369   : > { %v216_v62 = vpop.permute.xlu1 %215  ;;  %v788_v63 = vcombine.low %v769_v56, %v785_v57  ;;  %v786_v4 = vcombine.low %v762_v58, %v778_v59  ;;  %v787_v9 = vcombine.high %v762_v58, %v778_v59  ;;  %v789_v11 = vcombine.high %v769_v56, %v785_v57 }
 0x36a   : > { %vm217_vm7 = vcmp.eq.s32.totalorder %v11800_v52, %v216_v62 }
 0x36b   : > { %v10154_v6 = vsel %vm217_vm7, 1.0, %v11575_v3  ;;  %10616 = vmatpush3.xpose.msk.msra.mxu0 %vm938_vm6, %v788_v63 }
 0x36c   : > { %10592 = vmatmul.mubr.msk.f32.vlgmr.msra.gmra.mrb[2].mxu1 %vm255_vm4, %v10154_v6  ;;  %10625 = vmatprep.subr.mxu0 %v11575_v3 }
 0x36d   : > { %10606 = vmatpush3.xpose.msk.msra.mxu1 %vm938_vm6, %v786_v4  ;;  %10607 = vmatprep.mubr.msk.f32.mxu1 %vm11574_vm0, %v11575_v3 }
 0x36e   : > { %10618 = vmatmul.mubr.msk.f32.vlgmr.msra.gmra.mrb[2].mxu0 %vm938_vm6, %v640_v7  ;;  %10610 = vmatprep.subr.mxu1 %v11575_v3 }
 0x36f   : > { %10627 = vmatprep.mubr.msk.f32.mxu0 %vm11574_vm0, %v11575_v3 }
 0x370   : > { %10608 = vmatmul.mubr.msk.f32.vlgmr.msra.gmra.mrb[4].mxu1 %vm938_vm6, %v638_v8 }
 0x371   : > { %10611 = vmatpush3.xpose.msk.msra.mxu1 %vm938_vm6, %v787_v9  ;;  %10612 = vmatprep.mubr.msk.f32.mxu1 %vm11574_vm0, %v11575_v3 }
 0x372   : > { %10620 = vmatprep.subr.mxu1 %v11575_v3 }
 0x374   : > { %10613 = vmatmul.mubr.msk.f32.vlgmr.msra.gmra.mrb[6].mxu1 %vm938_vm6, %v639_v10 }
 0x375   : > { %10621 = vmatpush3.xpose.msk.msra.mxu1 %vm938_vm6, %v789_v11  ;;  %10622 = vmatprep.mubr.msk.f32.mxu1 %vm11574_vm0, %v11575_v3 }
 0x376   : > { %10630 = vmatprep.subr.mxu1 %v11575_v3 }
 0x378   : > { %10623 = vmatmul.mubr.msk.f32.vlgmr.msra.gmra.mrb[8].mxu1 %vm938_vm6, %v641_v13 }
 0x379   : > { %10632 = vmatprep.mubr.msk.f32.mxu1 %vm11574_vm0, %v11575_v3 }
 0x43f   : > { %v11835_v14 = vpop.f32.mrb[2].mxu1 }
 0x440   : > { %v10593_v15 = vpop.f32.mrb[3].mxu1 }
 0x441   : > { %v1163_v16 = vpop.f32.mrb[2].mxu0 }
 0x442   : > { %v10619_v17 = vpop.f32.mrb[3].mxu0  ;;  %v1245_v19 = vmul.f32 0.35355338, %v1163_v16 }
 0x443   : > { %v1011_v18 = vpop.f32.mrb[4].mxu1 }
 0x444   : > { %v1243_v20 = vmul.f32 0.35355338, %v1011_v18  ;;  %v10609_v21 = vpop.f32.mrb[5].mxu1  ;;  %v1255_v29 = vadd.f32 %v11713_v12, %v1245_v19 }
 0x446   : > { %v1253_v22 = vadd.f32 %v11713_v12, %v1243_v20  ;;  %v1263_v38 = vsel %vm938_vm6, %v1255_v29, -inf }
 0x447   : > { %v1087_v23 = vpop.f32.mrb[6].mxu1 }
 0x448   : > { %v1244_v25 = vmul.f32 0.35355338, %v1087_v23  ;;  %v10614_v26 = vpop.f32.mrb[7].mxu1  ;;  %v1257_v27 = vsel %vm938_vm6, %v1253_v22, -inf }
 0x449   : > { %1258 = vmax.xlane.f32.xlu1 %v1257_v27 }
 0x44a   : > { %v1254_v32 = vadd.f32 %v11713_v12, %v1244_v25 }
 0x44b   : > { %v1239_v33 = vpop.f32.mrb[8].mxu1 }
 0x44c   : > { %v1246_v35 = vmul.f32 0.35355338, %v1239_v33  ;;  %v10624_v37 = vpop.f32.mrb[9].mxu1  ;;  %v1260_v39 = vsel %vm938_vm6, %v1254_v32, -inf }
 0x44d   : > { %1264 = vmax.xlane.f32.xlu1 %v1263_v38  ;;  %1261 = vmax.xlane.f32.xlu0 %v1260_v39 }
 0x44e   : > { %v1256_v40 = vadd.f32 %v11713_v12, %v1246_v35 }
 0x450   : > { %v1266_v41 = vsel %vm938_vm6, %v1256_v40, -inf }
 0x451   : > { %1267 = vmax.xlane.f32.xlu1 %v1266_v41 }
 0x4d6   : > { %v1259_v42 = vpop.xlane.xlu1 %1258 }
 0x4d7   : > { %v1269_v43 = vsub.f32 %v1253_v22, %v1259_v42 }
 0x4d9   : > { %v1273_v44 = vmul.f32 1.442695, %v1269_v43 }
 0x4da   : > { %v1265_v45 = vpop.xlane.xlu1 %1264  ;;  %v1262_v54 = vpop.xlane.xlu0 %1261 }
 0x4db   : > { %11356 = vpow2.f32 %v1273_v44  ;;  %v1271_v47 = vsub.f32 %v1255_v29, %v1265_v45  ;;  %v1270_v56 = vsub.f32 %v1254_v32, %v1262_v54 }
 0x4dd   : > { %v1277_v48 = vmul.f32 1.442695, %v1271_v47  ;;  %v1275_v58 = vmul.f32 1.442695, %v1270_v56 }
 0x4de   : > { %v1268_v57 = vpop.xlane.xlu1 %1267 }
 0x4df   : > { %11358 = vpow2.f32 %v1277_v48  ;;  %v1272_v59 = vsub.f32 %v1256_v40, %v1268_v57 }
 0x4e0   : > { %11360 = vpow2.f32 %v1275_v58 }
 0x4e1   : > { %v1279_v60 = vmul.f32 1.442695, %v1272_v59 }
 0x4e3   : > { %11362 = vpow2.f32 %v1279_v60 }
 0x4e5   : > { %v11845_v49 = vpop.eup %11356 }
 0x4e6   : > { %v1281_v50 = vsel %vm938_vm6, %v11845_v49, 0.0 }
 0x4e7   : > { %1282 = vadd.xlane.f32.xlu1 %v1281_v50 }
 0x4e9   : > { %v11849_v51 = vpop.eup %11358 }
 0x4ea   : > { %v1287_v53 = vsel %vm938_vm6, %v11849_v51, 0.0  ;;  %v11361_v61 = vpop.eup %11360 }
 0x4eb   : > { %1288 = vadd.xlane.f32.xlu0 %v1287_v53  ;;  %v1284_v62 = vsel %vm938_vm6, %v11361_v61, 0.0 }
 0x4ed   : > { %v11860_v63 = vpop.eup %11362 }
 0x4f8   : > { %792 = vrot.lane.b32.xlu1 %v11741_v31, %s11583_s7  ;;  %v1290_v31 = vsel %vm938_vm6, %v11860_v63, 0.0 }
 0x4fc   : > { %794 = vrot.lane.b32.xlu1 %v11745_v34, %s11583_s7 }
 0x501   : > { %790 = vrot.lane.b32.xlu0 %v11729_v28, %s11583_s7 }
 0x520   : > { %1285 = vadd.xlane.f32.xlu1 %v1284_v62 }
 0x524   : > { %1291 = vadd.xlane.f32.xlu1 %v1290_v31 }
 0x535   : > { %796 = vrot.lane.b32.xlu1 %v11756_v36, %s11583_s7 }
 0x574   : > { %v1283_v28 = vpop.xlane.xlu1 %1282 }
 0x575   : > { %11364 = vrcp.f32 %v1283_v28 }
 0x578   : > { %v793_v34 = vpop.permute.xlu1 %792  ;;  %v1289_v0 = vpop.xlane.xlu0 %1288 }
 0x57c   : > { %v795_v4 = vpop.permute.xlu1 %794  ;;  %v791_v6 = vpop.permute.xlu0 %790 }
 0x57d   : > { %v802_v8 = vcombine.low %v791_v6, %v795_v4  ;;  %v803_v9 = vcombine.high %v791_v6, %v795_v4 }
 0x57f   : > { %v810_v15 = vrot.slane %v802_v8, %v11766_v46  ;;  %v817_v16 = vrot.slane %v803_v9, %v11766_v46  ;;  %v11365_v40 = vpop.eup %11364 }
 0x580   : > { %v1297_v59 = vmul.f32 %v11365_v40, %v11845_v49  ;;  %v1745_v49 = vld [vmem:[#allocation2 + $0x2f0] sm:$0xff] }
 0x5ad   : > { %v1286_v5 = vpop.xlane.xlu1 %1285 }
 0x5ae   : > { %11366 = vrcp.f32 %v1286_v5 }
 0x5af   : > { %11368 = vrcp.f32 %v1289_v0 }
 0x5b1   : > { %v1292_v7 = vpop.xlane.xlu1 %1291 }
 0x5b2   : > { %11370 = vrcp.f32 %v1292_v7 }
 0x5b5   : > { %v797_v10 = vpop.permute.xlu1 %796 }
 0x5b6   : > { %v818_v11 = vcombine.low %v793_v34, %v797_v10  ;;  %v819_v13 = vcombine.high %v793_v34, %v797_v10 }
 0x5b8   : > { %v826_v17 = vrot.slane %v818_v11, %v11766_v46  ;;  %v833_v36 = vrot.slane %v819_v13, %v11766_v46  ;;  %v11367_v45 = vpop.eup %11366 }
 0x5b9   : > { %v11369_v50 = vpop.eup %11368  ;;  %v1298_v60 = vmul.f32 %v11367_v45, %v11361_v61 }
 0x5ba   : > { %v834_v18 = vcombine.low %v810_v15, %v826_v17  ;;  %v835_v19 = vcombine.high %v810_v15, %v826_v17  ;;  %v850_v20 = vcombine.low %v817_v16, %v833_v36  ;;  %v851_v21 = vcombine.high %v817_v16, %v833_v36 }
 0x5bb   : > { %v1299_v28 = vmul.f32 %v11369_v50, %v11849_v51  ;;  %v1746_v51 = vld [vmem:[#allocation2 + $0x2f8] sm:$0xff] }
 0x5bc   : > { %v842_v22 = vrot.slane %v834_v18, %v11777_v55  ;;  %v849_v23 = vrot.slane %v835_v19, %v11777_v55  ;;  %v858_v25 = vrot.slane %v850_v20, %v11777_v55  ;;  %v865_v26 = vrot.slane %v851_v21, %v11777_v55  ;;  %v11371_v58 = vpop.eup %11370 }
 0x5bd   : > { %v1300_v34 = vmul.f32 %v11371_v58, %v11860_v63  ;;  %v11132_v61 = vpack.c.bf16 %v1746_v51, %v1745_v49 }
 0x5be   : > { %v870_v27 = vcombine.low %v842_v22, %v849_v23  ;;  %v10163_v29 = vcombine.high %v842_v22, %v849_v23  ;;  %v886_v32 = vcombine.low %v858_v25, %v865_v26  ;;  %v10164_v33 = vcombine.high %v858_v25, %v865_v26  ;;  %v1747_v23 = vld [vmem:[#allocation2 + $0x300] sm:$0xff]  ;;  %v1748_v25 = vld [vmem:[#allocation2 + $0x308] sm:$0xff] }
 0x5c0   : > { %v877_v35 = vrot.slane %v870_v27, %v11766_v46  ;;  %v885_v37 = vrot.slane %v10163_v29, %v11766_v46  ;;  %v893_v38 = vrot.slane %v886_v32, %v11766_v46  ;;  %v901_v39 = vrot.slane %v10164_v33, %v11766_v46 }
 0x5c1   : > { %v11135_v33 = vpack.c.bf16 %v1748_v25, %v1747_v23 }
 0x5c2   : > { %v902_v41 = vcombine.low %v877_v35, %v885_v37  ;;  %v918_v42 = vcombine.low %v893_v38, %v901_v39  ;;  %v903_v43 = vcombine.high %v877_v35, %v885_v37  ;;  %v919_v44 = vcombine.high %v893_v38, %v901_v39 }
 0x5c4   : > { %v910_v47 = vrot.slane %v902_v41, %v11777_v55  ;;  %v926_v48 = vrot.slane %v918_v42, %v11777_v55  ;;  %v917_v53 = vrot.slane %v903_v43, %v11777_v55  ;;  %v933_v54 = vrot.slane %v919_v44, %v11777_v55 }
 0x5c6   : > { %v934_v56 = vcombine.low %v910_v47, %v926_v48  ;;  %v935_v57 = vcombine.high %v910_v47, %v926_v48  ;;  %v936_v62 = vcombine.low %v917_v53, %v933_v54  ;;  %v937_v31 = vcombine.high %v917_v53, %v933_v54 }
 0x5c8   : > { %10626 = vmatpush3.msra.mxu0 %v934_v56  ;;  %10631 = vmatpush3.msra.mxu1 %v935_v57 }
 0x5c9   : > { %10628 = vmatmul.mubr.msk.f32.vlgmr.msra.gmra.mrb[4].mxu0 %vm938_vm6, %v1297_v59  ;;  %10633 = vmatmul.mubr.msk.f32.vlgmr.msra.gmra.mrb[10].mxu1 %vm938_vm6, %v1298_v60 }
 0x5ca   : > { %10635 = vmatprep.subr.mxu0 %v11575_v3  ;;  %10640 = vmatprep.subr.mxu1 %v11575_v3 }
 0x5cb   : > { %10636 = vmatpush3.msra.mxu0 %v936_v62  ;;  %10641 = vmatpush3.msra.mxu1 %v937_v31 }
 0x5cc   : > { %10637 = vmatprep.mubr.msk.f32.mxu0 %vm11574_vm0, %v11575_v3  ;;  %10642 = vmatprep.mubr.msk.f32.mxu1 %vm11574_vm0, %v11575_v3 }
 0x5cd   : > { %10638 = vmatmul.mubr.msk.f32.vlgmr.msra.gmra.mrb[6].mxu0 %vm938_vm6, %v1299_v28  ;;  %10643 = vmatmul.mubr.msk.f32.vlgmr.msra.gmra.mrb[12].mxu1 %vm938_vm6, %v1300_v34 }
 0x5ce   : > { %11131 = vmatprep.subr.bf16.mxu0 %v11573_v2  ;;  %10653 = vmatprep.mubr.msk.f32.mxu0 %vm11574_vm0, %v11575_v3 }
 0x5cf   : > { %11137 = vmatprep.subr.bf16.mxu1 %v11573_v2  ;;  %10664 = vmatprep.mubr.msk.f32.mxu1 %vm11574_vm0, %v11575_v3 }
 0x5d0   : > { %11133 = vmatpush3.bf16.msra.mxu0 %v11132_v61  ;;  %v10179_v61 = vld [vmem:[#allocation2 + $0x2e0] ss:$0 sm:$0xff] }
 0x5d1   : > { %11134 = vmatprep.subr.bf16.mxu0 %v11573_v2 }
 0x5d4   : > { %11136 = vmatpush3.bf16.msra.mxu0 %v11135_v33 }
 0x5d5   : > { %11143 = vmatprep.subr.bf16.mxu0 %v11573_v2 }
 0x69c   : > { %v1370_v63 = vpop.f32.mrb[4].mxu0  ;;  %v1443_v4 = vpop.f32.mrb[10].mxu1 }
 0x69d   : > { %v10629_v0 = vpop.f32.mrb[5].mxu0  ;;  %v10634_v5 = vpop.f32.mrb[11].mxu1 }
 0x6a0   : > { %v1516_v6 = vpop.f32.mrb[6].mxu0  ;;  %v1589_v7 = vpop.f32.mrb[12].mxu1 }
 0x6a1   : > { %v1593_v8 = vcombine.low %v1370_v63, %v1516_v6  ;;  %v1594_v9 = vcombine.high %v1370_v63, %v1516_v6  ;;  %v1609_v10 = vcombine.low %v1443_v4, %v1589_v7  ;;  %v1610_v11 = vcombine.high %v1443_v4, %v1589_v7  ;;  %v10639_v13 = vpop.f32.mrb[7].mxu0  ;;  %v10644_v15 = vpop.f32.mrb[13].mxu1 }
 0x6a2   : > { %v1858_v13 = vld [vmem:[#allocation2 + $0x350] sm:$0xff]  ;;  %v1859_v15 = vld [vmem:[#allocation2 + $0x358] sm:$0xff] }
 0x6a3   : > { %v1601_v16 = vrot.slane %v1593_v8, %v11766_v46  ;;  %v1608_v17 = vrot.slane %v1594_v9, %v11766_v46  ;;  %v1617_v36 = vrot.slane %v1609_v10, %v11766_v46  ;;  %v1624_v18 = vrot.slane %v1610_v11, %v11766_v46  ;;  %v1856_v9 = vld [vmem:[#allocation2 + $0x340] sm:$0xff]  ;;  %v1857_v10 = vld [vmem:[#allocation2 + $0x348] sm:$0xff] }
 0x6a4   : > { %v11138_v11 = vpack.c.bf16 %v1857_v10, %v1856_v9 }
 0x6a5   : > { %v1625_v19 = vcombine.low %v1601_v16, %v1617_v36  ;;  %v1626_v20 = vcombine.high %v1601_v16, %v1617_v36  ;;  %v1641_v21 = vcombine.low %v1608_v17, %v1624_v18  ;;  %v1642_v22 = vcombine.high %v1608_v17, %v1624_v18  ;;  %v1940_v17 = vld [vmem:[#allocation2 + $0x368] sm:$0xff]  ;;  %v1941_v36 = vld [vmem:[#allocation2 + $0x370] sm:$0xff] }
 0x6a6   : > { %11139 = vmatpush3.bf16.msra.mxu1 %v11138_v11  ;;  %v11141_v16 = vpack.c.bf16 %v1859_v15, %v1858_v13 }
 0x6a7   : > { %v1633_v26 = vrot.slane %v1625_v19, %v11777_v55  ;;  %v1640_v27 = vrot.slane %v1626_v20, %v11777_v55  ;;  %v1649_v29 = vrot.slane %v1641_v21, %v11777_v55  ;;  %v1656_v32 = vrot.slane %v1642_v22, %v11777_v55  ;;  %11140 = vmatprep.subr.bf16.mxu1 %v11573_v2  ;;  %v1942_v19 = vld [vmem:[#allocation2 + $0x378] sm:$0xff]  ;;  %v1943_v21 = vld [vmem:[#allocation2 + $0x380] sm:$0xff]  ;;  %v1944_v22 = vld [vmem:[#allocation2 + $0x388] sm:$0xff] }
 0x6a8   : > { %v11147_v20 = vpack.c.bf16 %v1942_v19, %v1941_v36  ;;  %v11150_v23 = vpack.c.bf16 %v1944_v22, %v1943_v21  ;;  %v10189_v19 = vld [vmem:[#allocation2 + $0x3c8] ss:$0 sm:$0xff] }
 0x6a9   : > { %v1661_v35 = vcombine.low %v1633_v26, %v1640_v27  ;;  %v10177_v37 = vcombine.high %v1633_v26, %v1640_v27  ;;  %v1677_v38 = vcombine.low %v1649_v29, %v1656_v32  ;;  %v10178_v39 = vcombine.high %v1649_v29, %v1656_v32 }
 0x6aa   : > { %11142 = vmatpush3.bf16.msra.mxu1 %v11141_v16  ;;  %v10187_v16 = vld [vmem:[#allocation2 + $0x3b8] ss:$0 sm:$0xff] }
 0x6ab   : > { %v1668_v40 = vrot.slane %v1661_v35, %v11766_v46  ;;  %v1676_v41 = vrot.slane %v10177_v37, %v11766_v46  ;;  %v1684_v42 = vrot.slane %v1677_v38, %v11766_v46  ;;  %v1692_v43 = vrot.slane %v10178_v39, %v11766_v46  ;;  %11155 = vmatprep.subr.bf16.mxu1 %v11573_v2  ;;  %v10181_v39 = vld [vmem:[#allocation2 + $0x3a8] ss:$0 sm:$0xff] }
 0x6ad   : > { %v1694_v44 = vcombine.high %v1668_v40, %v1676_v41  ;;  %v1710_v45 = vcombine.high %v1684_v42, %v1692_v43  ;;  %v1693_v47 = vcombine.low %v1668_v40, %v1676_v41  ;;  %v1709_v48 = vcombine.low %v1684_v42, %v1692_v43  ;;  %v10182_v41 = vld [vmem:[#allocation2 + $0x3a0] ss:$0 sm:$0xff] }
 0x6af   : > { %v1708_v50 = vrot.slane %v1694_v44, %v11777_v55  ;;  %v1724_v53 = vrot.slane %v1710_v45, %v11777_v55  ;;  %v1701_v54 = vrot.slane %v1693_v47, %v11777_v55  ;;  %v1717_v56 = vrot.slane %v1709_v48, %v11777_v55  ;;  %v1945_v44 = vld [vmem:[#allocation2 + $0x390] sm:$0xff]  ;;  %v1946_v45 = vld [vmem:[#allocation2 + $0x398] sm:$0xff] }
 0x6b0   : > { %v11153_v47 = vpack.c.bf16 %v1946_v45, %v1945_v44  ;;  %v10183_v48 = vld [vmem:[#allocation2 + $0x330] ss:$0 sm:$0xff] }
 0x6b1   : > { %v1727_v57 = vcombine.low %v1708_v50, %v1724_v53  ;;  %v1726_v58 = vcombine.high %v1701_v54, %v1717_v56  ;;  %v1728_v59 = vcombine.high %v1708_v50, %v1724_v53  ;;  %v1725_v60 = vcombine.low %v1701_v54, %v1717_v56 }
 0x6b3   : > { %1734 = vrot.lane.b32.xlu1 %v1727_v57, %s11584_s8  ;;  %1730 = vrot.lane.b32.xlu0 %v1726_v58, %s11585_s9  ;;  %v10185_v57 = vld [vmem:[#allocation2 + $0x338] ss:$0 sm:$0xff] }
 0x6b7   : > { %1738 = vrot.lane.b32.xlu0 %v1728_v59, %s11586_s10 }
 0x725   : > { %v1731_v62 = vpop.permute.xlu0 %1730  ;;  %v1735_v31 = vpop.permute.xlu1 %1734 }
 0x726   : > { %v1741_v28 = vsel %vm938_vm6, %v1725_v60, %v1731_v62 }
 0x727   : > { %v1742_v49 = vsel %vm255_vm4, %v1741_v28, %v1735_v31 }
 0x729   : > { %v1739_v34 = vpop.permute.xlu0 %1738 }
 0x72a   : > { %v1744_v51 = vsel %vm1743_vm8, %v1742_v49, %v1739_v34  ;;  %v2054_v49 = vld [vmem:[#allocation2 + $0x3f0] sm:$0xff] }
 0x72b   : > { %10654 = vmatmul.mubr.msk.f32.vlgmr.msra.gmra.mrb[8].mxu0 %vm422_vm5, %v1744_v51  ;;  %v2055_v51 = vld [vmem:[#allocation2 + $0x3f8] sm:$0xff] }
 0x72c   : > { %10683 = vmatprep.mubr.msk.f32.mxu0 %vm11574_vm0, %v11575_v3 }
 0x7fe   : > { %v1823_v63 = vpop.f32.mrb[8].mxu0 }
 0x7ff   : > { %v1824_v4 = vadd.f32 %v10179_v61, %v1823_v63  ;;  %v10655_v0 = vpop.f32.mrb[9].mxu0  ;;  %v11156_v61 = vpack.c.bf16 %v2055_v51, %v2054_v49  ;;  %v2056_v63 = vld [vmem:[#allocation2 + $0x400] sm:$0xff] }
 0x801   : > { %v1827_v5 = vadd.f32 %v1824_v4, %v11723_v24  ;;  %v1939_v24 = vld [vmem:[#allocation2 + $0x360] sm:$0xff]  ;;  %v2057_v4 = vld [vmem:[#allocation2 + $0x408] sm:$0xff] }
 0x802   : > { %v11144_v18 = vpack.c.bf16 %v1940_v17, %v1939_v24  ;;  %v11159_v0 = vpack.c.bf16 %v2057_v4, %v2056_v63  ;;  %v10188_v17 = vld [vmem:[#allocation2 + $0x3b0] ss:$0 sm:$0xff] }
 0x803   : > { %v1828_v6 = vsel %vm422_vm5, %v1827_v5, 0.0  ;;  %v1833_v7 = vmul.f32 %v1827_v5, %v1827_v5 }
 0x804   : > { %1829 = vadd.xlane.f32.xlu1 %v1828_v6  ;;  %11145 = vmatpush3.bf16.msra.mxu0 %v11144_v18 }
 0x805   : > { %v1834_v8 = vsel %vm422_vm5, %v1833_v7, 0.0  ;;  %11146 = vmatprep.subr.bf16.mxu0 %v11573_v2 }
 0x806   : > { %1835 = vadd.xlane.f32.xlu0 %v1834_v8 }
 0x808   : > { %11148 = vmatpush3.bf16.msra.mxu0 %v11147_v20 }
 0x809   : > { %11149 = vmatprep.subr.bf16.mxu0 %v11573_v2 }
 0x80c   : > { %11151 = vmatpush3.bf16.msra.mxu0 %v11150_v23 }
 0x80d   : > { %11152 = vmatprep.subr.bf16.mxu0 %v11573_v2 }
 0x810   : > { %11154 = vmatpush3.bf16.msra.mxu0 %v11153_v47 }
 0x811   : > { %10707 = vmatprep.subr.mxu0 %v11575_v3 }
 0x891   : > { %v1830_v25 = vpop.xlane.xlu1 %1829 }
 0x892   : > { %v1832_v26 = vmul.f32 0.03125, %v1830_v25 }
 0x893   : > { %v1836_v27 = vpop.xlane.xlu0 %1835 }
 0x894   : > { %v1838_v29 = vmul.f32 %v1832_v26, %v1832_v26  ;;  %v1837_v32 = vmul.f32 0.03125, %v1836_v27  ;;  %v1840_v37 = vsub.f32 %v1827_v5, %v1832_v26 }
 0x896   : > { %v1839_v33 = vsub.f32 %v1837_v32, %v1838_v29 }
 0x898   : > { %v1841_v35 = vadd.f32 1e-05, %v1839_v33 }
 0x89a   : > { %11372 = vrsqrt.f32 %v1841_v35 }
 0x8a4   : > { %v11373_v38 = vpop.eup %11372 }
 0x8a5   : > { %v1843_v40 = vmul.f32 %v11373_v38, %v1840_v37 }
 0x8a7   : > { %v1849_v42 = vmul.f32 %v10181_v39, %v1843_v40 }
 0x8a9   : > { %v1855_v43 = vadd.f32 %v10182_v41, %v1849_v42 }
 0x8ab   : > { %10665 = vmatmul.mubr.msk.f32.vlgmr.msra.gmra.mrb[14].mxu1 %vm422_vm5, %v1855_v43 }
 0x8ac   : > { %10694 = vmatprep.mubr.msk.f32.mxu1 %vm11574_vm0, %v11575_v3  ;;  %11157 = vmatpush3.bf16.msra.mxu1 %v11156_v61 }
 0x8ad   : > { %11158 = vmatprep.subr.bf16.mxu1 %v11573_v2 }
 0x8b0   : > { %11160 = vmatpush3.bf16.msra.mxu1 %v11159_v0 }
 0x8b1   : > { %10697 = vmatprep.subr.mxu1 %v11575_v3 }
 0x97e   : > { %v1934_v50 = vpop.f32.mrb[14].mxu1 }
 0x97f   : > { %v1935_v53 = vadd.f32 %v10183_v48, %v1934_v50  ;;  %v10666_v54 = vpop.f32.mrb[15].mxu1 }
 0x981   : > { %v1938_v56 = vmax.f32 %v1935_v53, 0.0 }
 0x983   : > { %10684 = vmatmul.mubr.msk.f32.vlgmr.msra.gmra.mrb[10].mxu0 %vm1952_vm9, %v1938_v56 }
 0x984   : > { %10709 = vmatprep.mubr.msk.f32.mxu0 %vm11574_vm0, %v11575_v3 }
 0xa56   : > { %v2022_v58 = vpop.f32.mrb[10].mxu0 }
 0xa57   : > { %v2023_v59 = vadd.f32 %v10185_v57, %v2022_v58  ;;  %v10685_v60 = vpop.f32.mrb[11].mxu0 }
 0xa59   : > { %v2026_v62 = vadd.f32 %v2023_v59, %v1855_v43 }
 0xa5b   : > { %v2027_v31 = vsel %vm422_vm5, %v2026_v62, 0.0  ;;  %v2031_v28 = vmul.f32 %v2026_v62, %v2026_v62 }
 0xa5c   : > { %2028 = vadd.xlane.f32.xlu0 %v2027_v31 }
 0xa5d   : > { %v2032_v34 = vsel %vm422_vm5, %v2031_v28, 0.0 }
 0xa60   : > { %2033 = vadd.xlane.f32.xlu0 %v2032_v34 }
 0xae9   : > { %v2029_v5 = vpop.xlane.xlu0 %2028 }
 0xaea   : > { %v2030_v6 = vmul.f32 0.03125, %v2029_v5 }
 0xaec   : > { %v2036_v8 = vmul.f32 %v2030_v6, %v2030_v6  ;;  %v2038_v13 = vsub.f32 %v2026_v62, %v2030_v6 }
 0xaed   : > { %v2034_v7 = vpop.xlane.xlu0 %2033 }
 0xaee   : > { %v2035_v9 = vmul.f32 0.03125, %v2034_v7 }
 0xaf0   : > { %v2037_v10 = vsub.f32 %v2035_v9, %v2036_v8 }
 0xaf2   : > { %v2039_v11 = vadd.f32 1e-05, %v2037_v10 }
 0xaf4   : > { %11374 = vrsqrt.f32 %v2039_v11 }
 0xafe   : > { %v11375_v15 = vpop.eup %11374 }
 0xaff   : > { %v2041_v24 = vmul.f32 %v11375_v15, %v2038_v13 }
 0xb01   : > { %v2047_v36 = vmul.f32 %v10187_v16, %v2041_v24 }
 0xb03   : > { %v11947_v18 = vadd.f32 %v10188_v17, %v2047_v36 }
 0xb05   : > { %10695 = vmatmul.mubr.msk.f32.vlgmr.msra.gmra.mrb[16].mxu1 %vm422_vm5, %v11947_v18 }
 0xb06   : > { %10699 = vmatprep.mubr.msk.f32.mxu1 %vm11574_vm0, %v11575_v3 }
 0xbd8   : > { %v2132_v20 = vpop.f32.mrb[16].mxu1 }
 0xbd9   : > { %v11953_v21 = vadd.f32 %v10189_v19, %v2132_v20  ;;  %v10696_v22 = vpop.f32.mrb[17].mxu1 }
 0xbdb   : > { %2140 = vrot.lane.b32.xlu0 %v11953_v21, %s11579_s28  ;;  %2137 = vrot.lane.b32.xlu1 %v11953_v21, %s11578_s27 }
 0xbdf   : > { %2143 = vrot.lane.b32.xlu1 %v11953_v21, %s11577_s26 }
 0xbe3   : > { %2282 = vrot.lane.b32.xlu1 %v11953_v21, %s11580_s29 }
 0xc4d   : > { %v11963_v23 = vpop.permute.xlu0 %2140  ;;  %v11965_v25 = vpop.permute.xlu1 %2137 }
 0xc4e   : > { %2286 = vrot.lane.b32.xlu0 %v11963_v23, %s11580_s29  ;;  %2284 = vrot.lane.b32.xlu1 %v11965_v25, %s11580_s29  ;;  %v2146_v32 = vcombine.low %v11953_v21, %v11963_v23  ;;  %v2147_v33 = vcombine.high %v11953_v21, %v11963_v23 }
 0xc50   : > { %v2154_v39 = vrot.slane %v2146_v32, %v11766_v46  ;;  %v2161_v40 = vrot.slane %v2147_v33, %v11766_v46 }
 0xc51   : > { %v11971_v26 = vpop.permute.xlu1 %2143 }
 0xc52   : > { %2288 = vrot.lane.b32.xlu1 %v11971_v26, %s11580_s29  ;;  %v2162_v27 = vcombine.low %v11965_v25, %v11971_v26  ;;  %v2163_v29 = vcombine.high %v11965_v25, %v11971_v26 }
 0xc54   : > { %v2170_v35 = vrot.slane %v2162_v27, %v11766_v46  ;;  %v2177_v37 = vrot.slane %v2163_v29, %v11766_v46 }
 0xc55   : > { %v2283_v38 = vpop.permute.xlu1 %2282 }
 0xc56   : > { %v2178_v41 = vcombine.low %v2154_v39, %v2170_v35  ;;  %v2179_v42 = vcombine.high %v2154_v39, %v2170_v35  ;;  %v2194_v43 = vcombine.low %v2161_v40, %v2177_v37  ;;  %v2195_v44 = vcombine.high %v2161_v40, %v2177_v37 }
 0xc58   : > { %v2186_v53 = vrot.slane %v2178_v41, %v11777_v55  ;;  %v2193_v54 = vrot.slane %v2179_v42, %v11777_v55  ;;  %v2202_v56 = vrot.slane %v2194_v43, %v11777_v55  ;;  %v2209_v57 = vrot.slane %v2195_v44, %v11777_v55 }
 0xc5a   : > { %v2214_v49 = vcombine.low %v2186_v53, %v2193_v54  ;;  %v10191_v51 = vcombine.high %v2186_v53, %v2193_v54  ;;  %v2230_v61 = vcombine.low %v2202_v56, %v2209_v57  ;;  %v10192_v63 = vcombine.high %v2202_v56, %v2209_v57 }
 0xc5c   : > { %v2221_v11 = vrot.slane %v2214_v49, %v11766_v46  ;;  %v2229_v13 = vrot.slane %v10191_v51, %v11766_v46  ;;  %v2237_v15 = vrot.slane %v2230_v61, %v11766_v46  ;;  %v2245_v16 = vrot.slane %v10192_v63, %v11766_v46 }
 0xc5e   : > { %v2246_v32 = vcombine.low %v2221_v11, %v2229_v13  ;;  %v2262_v33 = vcombine.low %v2237_v15, %v2245_v16  ;;  %v2247_v35 = vcombine.high %v2221_v11, %v2229_v13  ;;  %v2263_v37 = vcombine.high %v2237_v15, %v2245_v16 }
 0xc60   : > { %v2277_v53 = vrot.slane %v2263_v37, %v11777_v55 }
 0xcc0   : > { %v2287_v45 = vpop.permute.xlu0 %2286  ;;  %v2285_v47 = vpop.permute.xlu1 %2284 }
 0xcc1   : > { %v2294_v48 = vcombine.low %v2283_v38, %v2287_v45  ;;  %v2295_v50 = vcombine.high %v2283_v38, %v2287_v45 }
 0xcc3   : > { %v2302_v62 = vrot.slane %v2294_v48, %v11766_v46  ;;  %v2309_v31 = vrot.slane %v2295_v50, %v11766_v46  ;;  %v2270_v48 = vrot.slane %v2262_v33, %v11777_v55  ;;  %v2261_v50 = vrot.slane %v2247_v35, %v11777_v55 }
 0xcc4   : > { %v2289_v58 = vpop.permute.xlu1 %2288 }
 0xcc5   : > { %v2310_v59 = vcombine.low %v2285_v47, %v2289_v58  ;;  %v2311_v60 = vcombine.high %v2285_v47, %v2289_v58  ;;  %v2254_v47 = vrot.slane %v2246_v32, %v11777_v55  ;;  %v2280_v58 = vcombine.low %v2261_v50, %v2277_v53 }
 0xcc7   : > { %v2318_v28 = vrot.slane %v2310_v59, %v11766_v46  ;;  %v2325_v34 = vrot.slane %v2311_v60, %v11766_v46  ;;  %v2278_v57 = vcombine.low %v2254_v47, %v2270_v48  ;;  %v2279_v60 = vcombine.high %v2254_v47, %v2270_v48 }
 0xcc9   : > { %v2326_v4 = vcombine.low %v2302_v62, %v2318_v28  ;;  %v2327_v0 = vcombine.high %v2302_v62, %v2318_v28  ;;  %v2342_v5 = vcombine.low %v2309_v31, %v2325_v34  ;;  %v2343_v6 = vcombine.high %v2309_v31, %v2325_v34 }
 0xcca   : > { %v2281_v31 = vcombine.high %v2261_v50, %v2277_v53 }
 0xccb   : > { %v2334_v7 = vrot.slane %v2326_v4, %v11777_v55  ;;  %v2341_v8 = vrot.slane %v2327_v0, %v11777_v55  ;;  %v2350_v9 = vrot.slane %v2342_v5, %v11777_v55  ;;  %v2357_v10 = vrot.slane %v2343_v6, %v11777_v55 }
 0xccd   : > { %v2362_v24 = vcombine.low %v2334_v7, %v2341_v8  ;;  %v10193_v17 = vcombine.high %v2334_v7, %v2341_v8  ;;  %v2378_v36 = vcombine.low %v2350_v9, %v2357_v10  ;;  %v10194_v19 = vcombine.high %v2350_v9, %v2357_v10 }
 0xccf   : > { %v2369_v20 = vrot.slane %v2362_v24, %v11766_v46  ;;  %v2377_v22 = vrot.slane %v10193_v17, %v11766_v46  ;;  %v2385_v27 = vrot.slane %v2378_v36, %v11766_v46  ;;  %v2393_v29 = vrot.slane %v10194_v19, %v11766_v46 }
 0xcd1   : > { %v2394_v38 = vcombine.low %v2369_v20, %v2377_v22  ;;  %v2395_v39 = vcombine.high %v2369_v20, %v2377_v22  ;;  %v2410_v40 = vcombine.low %v2385_v27, %v2393_v29  ;;  %v2411_v41 = vcombine.high %v2385_v27, %v2393_v29 }
 0xcd3   : > { %v2402_v42 = vrot.slane %v2394_v38, %v11777_v55  ;;  %v2418_v43 = vrot.slane %v2410_v40, %v11777_v55  ;;  %v2409_v44 = vrot.slane %v2395_v39, %v11777_v55  ;;  %v2425_v45 = vrot.slane %v2411_v41, %v11777_v55 }
 0xcd5   : > { %v2426_v54 = vcombine.low %v2402_v42, %v2418_v43  ;;  %v2428_v56 = vcombine.low %v2409_v44, %v2425_v45  ;;  %v2427_v59 = vcombine.high %v2402_v42, %v2418_v43  ;;  %v2429_v62 = vcombine.high %v2409_v44, %v2425_v45 }
 0xcd7   : > { %10698 = vmatpush3.xpose.msk.msra.mxu1 %vm938_vm6, %v2426_v54  ;;  %10708 = vmatpush3.xpose.msk.msra.mxu0 %vm938_vm6, %v2428_v56 }
 0xcd8   : > { %10702 = vmatprep.subr.mxu1 %v11575_v3  ;;  %10717 = vmatprep.subr.mxu0 %v11575_v3 }
 0xcda   : > { %10700 = vmatmul.mubr.msk.f32.vlgmr.msra.gmra.mrb[18].mxu1 %vm938_vm6, %v2278_v57  ;;  %10710 = vmatmul.mubr.msk.f32.vlgmr.msra.gmra.mrb[12].mxu0 %vm938_vm6, %v2280_v58 }
 0xcdb   : > { %10703 = vmatpush3.xpose.msk.msra.mxu1 %vm938_vm6, %v2427_v59  ;;  %10704 = vmatprep.mubr.msk.f32.mxu1 %vm11574_vm0, %v11575_v3 }
 0xcdc   : > { %10712 = vmatprep.subr.mxu1 %v11575_v3  ;;  %10719 = vmatprep.mubr.msk.f32.mxu0 %vm11574_vm0, %v11575_v3 }
 0xcde   : > { %10705 = vmatmul.mubr.msk.f32.vlgmr.msra.gmra.mrb[20].mxu1 %vm938_vm6, %v2279_v60 }
 0xcdf   : > { %10713 = vmatpush3.xpose.msk.msra.mxu1 %vm938_vm6, %v2429_v62  ;;  %10714 = vmatprep.mubr.msk.f32.mxu1 %vm11574_vm0, %v11575_v3 }
 0xce0   : > { %10722 = vmatprep.subr.mxu1 %v11575_v3 }
 0xce2   : > { %10715 = vmatmul.mubr.msk.f32.vlgmr.msra.gmra.mrb[22].mxu1 %vm938_vm6, %v2281_v31 }
 0xce3   : > { %10724 = vmatprep.mubr.msk.f32.mxu1 %vm11574_vm0, %v11575_v3 }
 0xdad   : > { %v2650_v28 = vpop.f32.mrb[18].mxu1  ;;  %v2802_v34 = vpop.f32.mrb[12].mxu0 }
 0xdae   : > { %v2882_v49 = vmul.f32 0.35355338, %v2650_v28  ;;  %v2884_v51 = vmul.f32 0.35355338, %v2802_v34  ;;  %v10701_v61 = vpop.f32.mrb[19].mxu1  ;;  %v10711_v63 = vpop.f32.mrb[13].mxu0 }
 0xdb0   : > { %v2886_v4 = vadd.f32 %v2882_v49, %v11713_v12  ;;  %v2888_v8 = vadd.f32 %v2884_v51, %v11713_v12 }
 0xdb1   : > { %v2726_v0 = vpop.f32.mrb[20].mxu1 }
 0xdb2   : > { %v2883_v5 = vmul.f32 0.35355338, %v2726_v0  ;;  %v10706_v6 = vpop.f32.mrb[21].mxu1  ;;  %v2890_v7 = vsel %vm938_vm6, %v2886_v4, -inf  ;;  %v2896_v15 = vsel %vm938_vm6, %v2888_v8, -inf }
 0xdb3   : > { %2891 = vmax.xlane.f32.xlu0 %v2890_v7 }
 0xdb4   : > { %v2887_v9 = vadd.f32 %v2883_v5, %v11713_v12 }
 0xdb5   : > { %v2878_v10 = vpop.f32.mrb[22].mxu1 }
 0xdb6   : > { %v2885_v11 = vmul.f32 0.35355338, %v2878_v10  ;;  %v10716_v13 = vpop.f32.mrb[23].mxu1  ;;  %v2893_v16 = vsel %vm938_vm6, %v2887_v9, -inf }
 0xdb7   : > { %2897 = vmax.xlane.f32.xlu0 %v2896_v15  ;;  %2894 = vmax.xlane.f32.xlu1 %v2893_v16 }
 0xdb8   : > { %v2889_v24 = vadd.f32 %v2885_v11, %v11713_v12 }
 0xdba   : > { %v2899_v17 = vsel %vm938_vm6, %v2889_v24, -inf }
 0xdbb   : > { %2900 = vmax.xlane.f32.xlu0 %v2899_v17 }
 0xdc8   : > { %2432 = vrot.lane.b32.xlu1 %v11965_v25, %s11583_s7 }
 0xdcc   : > { %2434 = vrot.lane.b32.xlu1 %v11963_v23, %s11583_s7 }
 0xe40   : > { %v2892_v36 = vpop.xlane.xlu0 %2891 }
 0xe41   : > { %v2902_v19 = vsub.f32 %v2886_v4, %v2892_v36 }
 0xe43   : > { %v2906_v20 = vmul.f32 1.442695, %v2902_v19 }
 0xe44   : > { %v2898_v22 = vpop.xlane.xlu0 %2897  ;;  %v2895_v27 = vpop.xlane.xlu1 %2894 }
 0xe45   : > { %11376 = vpow2.f32 %v2906_v20  ;;  %v2904_v29 = vsub.f32 %v2888_v8, %v2898_v22  ;;  %v2903_v32 = vsub.f32 %v2887_v9, %v2895_v27 }
 0xe47   : > { %v2910_v33 = vmul.f32 1.442695, %v2904_v29  ;;  %v2908_v35 = vmul.f32 1.442695, %v2903_v32 }
 0xe48   : > { %v2901_v37 = vpop.xlane.xlu0 %2900  ;;  %v2433_v47 = vpop.permute.xlu1 %2432 }
 0xe49   : > { %11378 = vpow2.f32 %v2910_v33  ;;  %v2905_v38 = vsub.f32 %v2889_v24, %v2901_v37 }
 0xe4a   : > { %11380 = vpow2.f32 %v2908_v35 }
 0xe4b   : > { %v2912_v39 = vmul.f32 1.442695, %v2905_v38 }
 0xe4c   : > { %v2435_v50 = vpop.permute.xlu1 %2434 }
 0xe4d   : > { %11382 = vpow2.f32 %v2912_v39 }
 0xe4f   : > { %v12047_v25 = vpop.eup %11376 }
 0xe50   : > { %v2914_v23 = vsel %vm938_vm6, %v12047_v25, 0.0 }
 0xe51   : > { %2915 = vadd.xlane.f32.xlu0 %v2914_v23 }
 0xe53   : > { %v12051_v40 = vpop.eup %11378 }
 0xe54   : > { %v11381_v41 = vpop.eup %11380  ;;  %v2920_v42 = vsel %vm938_vm6, %v12051_v40, 0.0 }
 0xe55   : > { %v2917_v43 = vsel %vm938_vm6, %v11381_v41, 0.0  ;;  %2921 = vadd.xlane.f32.xlu0 %v2920_v42 }
 0xe56   : > { %2918 = vadd.xlane.f32.xlu1 %v2917_v43 }
 0xe57   : > { %v12056_v44 = vpop.eup %11382 }
 0xe58   : > { %v2923_v45 = vsel %vm938_vm6, %v12056_v44, 0.0 }
 0xe5a   : > { %2924 = vadd.xlane.f32.xlu1 %v2923_v45 }
 0xe6b   : > { %2436 = vrot.lane.b32.xlu1 %v11971_v26, %s11583_s7  ;;  %2430 = vrot.lane.b32.xlu0 %v11953_v21, %s11583_s7 }
 0xede   : > { %v2916_v48 = vpop.xlane.xlu0 %2915 }
 0xedf   : > { %11384 = vrcp.f32 %v2916_v48 }
 0xee2   : > { %v2922_v53 = vpop.xlane.xlu0 %2921 }
 0xee3   : > { %v2919_v54 = vpop.xlane.xlu1 %2918 }
 0xee4   : > { %11386 = vrcp.f32 %v2919_v54 }
 0xee5   : > { %11388 = vrcp.f32 %v2922_v53 }
 0xee6   : > { %v2431_v57 = vpop.permute.xlu0 %2430 }
 0xee7   : > { %v2925_v56 = vpop.xlane.xlu1 %2924  ;;  %v2442_v58 = vcombine.low %v2431_v57, %v2435_v50  ;;  %v2443_v59 = vcombine.high %v2431_v57, %v2435_v50 }
 0xee8   : > { %11390 = vrcp.f32 %v2925_v56 }
 0xee9   : > { %v2450_v28 = vrot.slane %v2442_v58, %v11766_v46  ;;  %v2457_v26 = vrot.slane %v2443_v59, %v11766_v46  ;;  %v11385_v24 = vpop.eup %11384 }
 0xeea   : > { %v2930_v23 = vmul.f32 %v11385_v24, %v12047_v25  ;;  %v3377_v25 = vld [vmem:[#allocation2 + $0x3d0] sm:$0xff] }
 0xeeb   : > { %v2437_v60 = vpop.permute.xlu1 %2436 }
 0xeec   : > { %v2458_v62 = vcombine.low %v2433_v47, %v2437_v60  ;;  %v2459_v31 = vcombine.high %v2433_v47, %v2437_v60 }
 0xeee   : > { %v2466_v34 = vrot.slane %v2458_v62, %v11766_v46  ;;  %v2473_v21 = vrot.slane %v2459_v31, %v11766_v46  ;;  %v11387_v22 = vpop.eup %11386 }
 0xeef   : > { %v11389_v32 = vpop.eup %11388  ;;  %v2931_v42 = vmul.f32 %v11387_v22, %v11381_v41 }
 0xef0   : > { %v2474_v49 = vcombine.low %v2450_v28, %v2466_v34  ;;  %v2475_v51 = vcombine.high %v2450_v28, %v2466_v34  ;;  %v2490_v61 = vcombine.low %v2457_v26, %v2473_v21  ;;  %v2491_v63 = vcombine.high %v2457_v26, %v2473_v21 }
 0xef1   : > { %v2932_v47 = vmul.f32 %v11389_v32, %v12051_v40  ;;  %v3378_v40 = vld [vmem:[#allocation2 + $0x3d8] sm:$0xff] }
 0xef2   : > { %v2482_v4 = vrot.slane %v2474_v49, %v11777_v55  ;;  %v2489_v0 = vrot.slane %v2475_v51, %v11777_v55  ;;  %v2498_v5 = vrot.slane %v2490_v61, %v11777_v55  ;;  %v2505_v6 = vrot.slane %v2491_v63, %v11777_v55  ;;  %v11391_v39 = vpop.eup %11390 }
 0xef3   : > { %v2933_v48 = vmul.f32 %v11391_v39, %v12056_v44  ;;  %v11162_v41 = vpack.c.bf16 %v3378_v40, %v3377_v25 }
 0xef4   : > { %v2510_v7 = vcombine.low %v2482_v4, %v2489_v0  ;;  %v10195_v8 = vcombine.high %v2482_v4, %v2489_v0  ;;  %v2526_v9 = vcombine.low %v2498_v5, %v2505_v6  ;;  %v10196_v10 = vcombine.high %v2498_v5, %v2505_v6  ;;  %v3379_v0 = vld [vmem:[#allocation2 + $0x3e0] sm:$0xff]  ;;  %v3380_v5 = vld [vmem:[#allocation2 + $0x3e8] sm:$0xff] }
 0xef6   : > { %v2517_v11 = vrot.slane %v2510_v7, %v11766_v46  ;;  %v2525_v13 = vrot.slane %v10195_v8, %v11766_v46  ;;  %v2533_v15 = vrot.slane %v2526_v9, %v11766_v46  ;;  %v2541_v16 = vrot.slane %v10196_v10, %v11766_v46 }
 0xef7   : > { %v11165_v10 = vpack.c.bf16 %v3380_v5, %v3379_v0 }
 0xef8   : > { %v2542_v17 = vcombine.low %v2517_v11, %v2525_v13  ;;  %v2558_v36 = vcombine.low %v2533_v15, %v2541_v16  ;;  %v2543_v19 = vcombine.high %v2517_v11, %v2525_v13  ;;  %v2559_v20 = vcombine.high %v2533_v15, %v2541_v16 }
 0xefa   : > { %v2550_v27 = vrot.slane %v2542_v17, %v11777_v55  ;;  %v2566_v29 = vrot.slane %v2558_v36, %v11777_v55  ;;  %v2557_v33 = vrot.slane %v2543_v19, %v11777_v55  ;;  %v2573_v35 = vrot.slane %v2559_v20, %v11777_v55 }
 0xefc   : > { %v2574_v37 = vcombine.low %v2550_v27, %v2566_v29  ;;  %v2575_v38 = vcombine.high %v2550_v27, %v2566_v29  ;;  %v2576_v43 = vcombine.low %v2557_v33, %v2573_v35  ;;  %v2577_v45 = vcombine.high %v2557_v33, %v2573_v35 }
 0xefe   : > { %10718 = vmatpush3.msra.mxu0 %v2574_v37  ;;  %10723 = vmatpush3.msra.mxu1 %v2575_v38 }
 0xeff   : > { %10720 = vmatmul.mubr.msk.f32.vlgmr.msra.gmra.mrb[14].mxu0 %vm938_vm6, %v2930_v23  ;;  %10725 = vmatmul.mubr.msk.f32.vlgmr.msra.gmra.mrb[24].mxu1 %vm938_vm6, %v2931_v42 }
 0xf00   : > { %10727 = vmatprep.subr.mxu0 %v11575_v3  ;;  %10732 = vmatprep.subr.mxu1 %v11575_v3 }
 0xf01   : > { %10728 = vmatpush3.msra.mxu0 %v2576_v43  ;;  %10733 = vmatpush3.msra.mxu1 %v2577_v45 }
 0xf02   : > { %10729 = vmatprep.mubr.msk.f32.mxu0 %vm11574_vm0, %v11575_v3  ;;  %10734 = vmatprep.mubr.msk.f32.mxu1 %vm11574_vm0, %v11575_v3 }
 0xf03   : > { %10730 = vmatmul.mubr.msk.f32.vlgmr.msra.gmra.mrb[16].mxu0 %vm938_vm6, %v2932_v47  ;;  %10735 = vmatmul.mubr.msk.f32.vlgmr.msra.gmra.mrb[26].mxu1 %vm938_vm6, %v2933_v48 }
 0xf04   : > { %11161 = vmatprep.subr.bf16.mxu0 %v11573_v2  ;;  %10745 = vmatprep.mubr.msk.f32.mxu0 %vm11574_vm0, %v11575_v3 }
 0xf05   : > { %11167 = vmatprep.subr.bf16.mxu1 %v11573_v2  ;;  %10756 = vmatprep.mubr.msk.f32.mxu1 %vm11574_vm0, %v11575_v3 }
 0xf06   : > { %11163 = vmatpush3.bf16.msra.mxu0 %v11162_v41  ;;  %v10211_v41 = vld [vmem:[#allocation2 + $0x3c0] ss:$0 sm:$0xff] }
 0xf07   : > { %11164 = vmatprep.subr.bf16.mxu0 %v11573_v2 }
 0xf0a   : > { %11166 = vmatpush3.bf16.msra.mxu0 %v11165_v10 }
 0xf0b   : > { %11173 = vmatprep.subr.bf16.mxu0 %v11573_v2 }
 0xfd2   : > { %v3003_v44 = vpop.f32.mrb[14].mxu0  ;;  %v3076_v50 = vpop.f32.mrb[24].mxu1 }
 0xfd3   : > { %v10721_v53 = vpop.f32.mrb[15].mxu0  ;;  %v10726_v54 = vpop.f32.mrb[25].mxu1 }
 0xfd6   : > { %v3149_v56 = vpop.f32.mrb[16].mxu0  ;;  %v3222_v57 = vpop.f32.mrb[26].mxu1 }
 0xfd7   : > { %v3226_v58 = vcombine.low %v3003_v44, %v3149_v56  ;;  %v3227_v59 = vcombine.high %v3003_v44, %v3149_v56  ;;  %v3242_v60 = vcombine.low %v3076_v50, %v3222_v57  ;;  %v3243_v62 = vcombine.high %v3076_v50, %v3222_v57  ;;  %v10731_v31 = vpop.f32.mrb[17].mxu0  ;;  %v10736_v28 = vpop.f32.mrb[27].mxu1 }
 0xfd8   : > { %v3489_v31 = vld [vmem:[#allocation2 + $0x430] sm:$0xff]  ;;  %v3490_v28 = vld [vmem:[#allocation2 + $0x438] sm:$0xff] }
 0xfd9   : > { %v3234_v26 = vrot.slane %v3226_v58, %v11766_v46  ;;  %v3241_v34 = vrot.slane %v3227_v59, %v11766_v46  ;;  %v3250_v21 = vrot.slane %v3242_v60, %v11766_v46  ;;  %v3257_v49 = vrot.slane %v3243_v62, %v11766_v46  ;;  %v3487_v59 = vld [vmem:[#allocation2 + $0x420] sm:$0xff]  ;;  %v3488_v60 = vld [vmem:[#allocation2 + $0x428] sm:$0xff] }
 0xfda   : > { %v11168_v62 = vpack.c.bf16 %v3488_v60, %v3487_v59 }
 0xfdb   : > { %v3258_v51 = vcombine.low %v3234_v26, %v3250_v21  ;;  %v3259_v61 = vcombine.high %v3234_v26, %v3250_v21  ;;  %v3274_v63 = vcombine.low %v3241_v34, %v3257_v49  ;;  %v3275_v4 = vcombine.high %v3241_v34, %v3257_v49  ;;  %v3571_v34 = vld [vmem:[#allocation2 + $0x448] sm:$0xff]  ;;  %v3572_v21 = vld [vmem:[#allocation2 + $0x450] sm:$0xff] }
 0xfdc   : > { %11169 = vmatpush3.bf16.msra.mxu1 %v11168_v62  ;;  %v11171_v26 = vpack.c.bf16 %v3490_v28, %v3489_v31 }
 0xfdd   : > { %v3266_v6 = vrot.slane %v3258_v51, %v11777_v55  ;;  %v3273_v7 = vrot.slane %v3259_v61, %v11777_v55  ;;  %v3282_v8 = vrot.slane %v3274_v63, %v11777_v55  ;;  %v3289_v9 = vrot.slane %v3275_v4, %v11777_v55  ;;  %11170 = vmatprep.subr.bf16.mxu1 %v11573_v2  ;;  %v3573_v51 = vld [vmem:[#allocation2 + $0x458] sm:$0xff]  ;;  %v3574_v63 = vld [vmem:[#allocation2 + $0x460] sm:$0xff]  ;;  %v3575_v4 = vld [vmem:[#allocation2 + $0x468] sm:$0xff] }
 0xfde   : > { %v11177_v61 = vpack.c.bf16 %v3573_v51, %v3572_v21  ;;  %v11180_v0 = vpack.c.bf16 %v3575_v4, %v3574_v63 }
 0xfdf   : > { %v3294_v11 = vcombine.low %v3266_v6, %v3273_v7  ;;  %v10209_v13 = vcombine.high %v3266_v6, %v3273_v7  ;;  %v3310_v15 = vcombine.low %v3282_v8, %v3289_v9  ;;  %v10210_v16 = vcombine.high %v3282_v8, %v3289_v9 }
 0xfe0   : > { %11172 = vmatpush3.bf16.msra.mxu1 %v11171_v26 }
 0xfe1   : > { %v3301_v24 = vrot.slane %v3294_v11, %v11766_v46  ;;  %v3309_v17 = vrot.slane %v10209_v13, %v11766_v46  ;;  %v3317_v36 = vrot.slane %v3310_v15, %v11766_v46  ;;  %v3325_v19 = vrot.slane %v10210_v16, %v11766_v46  ;;  %11185 = vmatprep.subr.bf16.mxu1 %v11573_v2  ;;  %v10213_v16 = vld [vmem:[#allocation2 + $0x488] ss:$0 sm:$0xff] }
 0xfe3   : > { %v3327_v20 = vcombine.high %v3301_v24, %v3309_v17  ;;  %v3343_v22 = vcombine.high %v3317_v36, %v3325_v19  ;;  %v3326_v27 = vcombine.low %v3301_v24, %v3309_v17  ;;  %v3342_v29 = vcombine.low %v3317_v36, %v3325_v19  ;;  %v3684_v17 = vld [vmem:[#allocation2 + $0x148] sm:$0xff]  ;;  %v3685_v36 = vld [vmem:[#allocation2 + $0x150] sm:$0xff]  ;;  %v10214_v19 = vld [vmem:[#allocation2 + $0x480] ss:$0 sm:$0xff] }
 0xfe5   : > { %v3341_v32 = vrot.slane %v3327_v20, %v11777_v55  ;;  %v3357_v33 = vrot.slane %v3343_v22, %v11777_v55  ;;  %v3334_v35 = vrot.slane %v3326_v27, %v11777_v55  ;;  %v3350_v37 = vrot.slane %v3342_v29, %v11777_v55  ;;  %v3686_v29 = vld [vmem:[#allocation2 + $0x158] sm:$0xff] }
 0xfe6   : > { %v11186_v22 = vpack.c.bf16 %v3685_v36, %v3684_v17 }
 0xfe7   : > { %v3360_v38 = vcombine.low %v3341_v32, %v3357_v33  ;;  %v3359_v39 = vcombine.high %v3334_v35, %v3350_v37  ;;  %v3361_v23 = vcombine.high %v3341_v32, %v3357_v33  ;;  %v3358_v42 = vcombine.low %v3334_v35, %v3350_v37  ;;  %v3687_v32 = vld [vmem:[#allocation2 + $0x160] sm:$0xff]  ;;  %v11472_v35 = vld [vmem:[#allocation2 + $0x4d8] sm:$0xff] }
 0xfe8   : > { %v11189_v33 = vpack.c.bf16 %v3687_v32, %v3686_v29  ;;  %v12142_v37 = vadd.f32 %v11472_v35, %v11835_v14 }
 0xfe9   : > { %3367 = vrot.lane.b32.xlu1 %v3360_v38, %s11584_s8  ;;  %3363 = vrot.lane.b32.xlu0 %v3359_v39, %s11585_s9  ;;  %v3576_v38 = vld [vmem:[#allocation2 + $0x470] sm:$0xff]  ;;  %v3577_v39 = vld [vmem:[#allocation2 + $0x478] sm:$0xff] }
 0xfed   : > { %3371 = vrot.lane.b32.xlu0 %v3361_v23, %s11586_s10  ;;  %v11183_v23 = vpack.c.bf16 %v3577_v39, %v3576_v38 }
0x105b   : > { %v3364_v43 = vpop.permute.xlu0 %3363  ;;  %v3368_v45 = vpop.permute.xlu1 %3367 }
0x105c   : > { %v3374_v47 = vsel %vm938_vm6, %v3358_v42, %v3364_v43  ;;  %v10215_v42 = vld [vmem:[#allocation2 + $0x410] ss:$0 sm:$0xff] }
0x105d   : > { %v3375_v25 = vsel %vm255_vm4, %v3374_v47, %v3368_v45 }
0x105f   : > { %v3372_v48 = vpop.permute.xlu0 %3371 }
0x1060   : > { %v3376_v40 = vsel %vm1743_vm8, %v3375_v25, %v3372_v48  ;;  %v10221_v48 = vld [vmem:[#allocation2 + $0x120] ss:$0 sm:$0xff] }
0x1061   : > { %10746 = vmatmul.mubr.msk.f32.vlgmr.msra.gmra.mrb[18].mxu0 %vm422_vm5, %v3376_v40 }
0x1062   : > { %10775 = vmatprep.mubr.msk.f32.mxu0 %vm11574_vm0, %v11575_v3 }
0x1134   : > { %v3455_v44 = vpop.f32.mrb[18].mxu0 }
0x1135   : > { %v3456_v50 = vadd.f32 %v10211_v41, %v3455_v44  ;;  %v10747_v53 = vpop.f32.mrb[19].mxu0 }
0x1137   : > { %v3459_v54 = vadd.f32 %v3456_v50, %v11947_v18  ;;  %v3570_v18 = vld [vmem:[#allocation2 + $0x440] sm:$0xff] }
0x1138   : > { %v11174_v49 = vpack.c.bf16 %v3571_v34, %v3570_v18 }
0x1139   : > { %v3460_v56 = vsel %vm422_vm5, %v3459_v54, 0.0  ;;  %v3464_v57 = vmul.f32 %v3459_v54, %v3459_v54 }
0x113a   : > { %3461 = vadd.xlane.f32.xlu1 %v3460_v56  ;;  %11175 = vmatpush3.bf16.msra.mxu0 %v11174_v49 }
0x113b   : > { %v3465_v58 = vsel %vm422_vm5, %v3464_v57, 0.0  ;;  %11176 = vmatprep.subr.bf16.mxu0 %v11573_v2 }
0x113c   : > { %3466 = vadd.xlane.f32.xlu0 %v3465_v58 }
0x113e   : > { %11178 = vmatpush3.bf16.msra.mxu0 %v11177_v61 }
0x113f   : > { %11179 = vmatprep.subr.bf16.mxu0 %v11573_v2 }
0x1142   : > { %11181 = vmatpush3.bf16.msra.mxu0 %v11180_v0 }
0x1143   : > { %11182 = vmatprep.subr.bf16.mxu0 %v11573_v2 }
0x1146   : > { %11184 = vmatpush3.bf16.msra.mxu0 %v11183_v23 }
0x1147   : > { %10799 = vmatprep.subr.mxu0 %v11575_v3 }
0x11c7   : > { %v3462_v5 = vpop.xlane.xlu1 %3461 }
0x11c8   : > { %v3463_v6 = vmul.f32 0.03125, %v3462_v5 }
0x11c9   : > { %v3467_v7 = vpop.xlane.xlu0 %3466 }
0x11ca   : > { %v3469_v8 = vmul.f32 %v3463_v6, %v3463_v6  ;;  %v3468_v9 = vmul.f32 0.03125, %v3467_v7  ;;  %v3471_v13 = vsub.f32 %v3459_v54, %v3463_v6  ;;  %v11473_v54 = vld [vmem:[%s11753_s6] sm:$0xff] }
0x11cb   : > { %vm405_vm10 = vcmp.ne.s32.totalorder %v11473_v54, 0 }
0x11cc   : > { %v3470_v10 = vsub.f32 %v3468_v9, %v3469_v8  ;;  %v406_v56 = vsel %vm405_vm10, 1, %v11576_v30 }
0x11ce   : > { %v3472_v11 = vadd.f32 1e-05, %v3470_v10 }
0x11d0   : > { %11392 = vrsqrt.f32 %v3472_v11 }
0x11da   : > { %v11393_v15 = vpop.eup %11392 }
0x11db   : > { %v3474_v24 = vmul.f32 %v11393_v15, %v3471_v13 }
0x11dd   : > { %v3480_v20 = vmul.f32 %v10213_v16, %v3474_v24 }
0x11df   : > { %v12134_v27 = vadd.f32 %v10214_v19, %v3480_v20 }
0x11e1   : > { %10757 = vmatmul.mubr.msk.f32.vlgmr.msra.gmra.mrb[28].mxu1 %vm422_vm5, %v12134_v27 }
0x11e2   : > { %11187 = vmatpush3.bf16.msra.mxu1 %v11186_v22  ;;  %10786 = vmatprep.mubr.msk.f32.mxu1 %vm11574_vm0, %v11575_v3 }
0x11e3   : > { %11188 = vmatprep.subr.bf16.mxu1 %v11573_v2 }
0x11e6   : > { %11190 = vmatpush3.bf16.msra.mxu1 %v11189_v33 }
0x11e7   : > { %10789 = vmatprep.subr.mxu1 %v11575_v3 }
0x11e9   : > { %10787 = vmatmul.mubr.msk.f32.vlgmr.msra.gmra.mrb[30].mxu1 %vm422_vm5, %v12142_v37 }
0x11ea   : > { %10791 = vmatprep.mubr.msk.f32.mxu1 %vm11574_vm0, %v11575_v3 }
0x12b4   : > { %v3565_v43 = vpop.f32.mrb[28].mxu1 }
0x12b5   : > { %v3566_v45 = vadd.f32 %v10215_v42, %v3565_v43  ;;  %v10758_v47 = vpop.f32.mrb[29].mxu1 }
0x12b7   : > { %v3569_v14 = vmax.f32 %v3566_v45, 0.0 }
0x12b9   : > { %10776 = vmatmul.mubr.msk.f32.vlgmr.msra.gmra.mrb[20].mxu0 %vm1952_vm9, %v3569_v14 }
0x12ba   : > { %10801 = vmatprep.mubr.msk.f32.mxu0 %vm11574_vm0, %v11575_v3 }
0x12bc   : > { %v3762_v25 = vpop.f32.mrb[30].mxu1 }
0x12bd   : > { %v12153_v40 = vadd.f32 %v10221_v48, %v3762_v25  ;;  %v10788_v41 = vpop.f32.mrb[31].mxu1 }
0x12bf   : > { %3770 = vrot.lane.b32.xlu1 %v12153_v40, %s11579_s28  ;;  %3767 = vrot.lane.b32.xlu0 %v12153_v40, %s11578_s27 }
0x12c3   : > { %3773 = vrot.lane.b32.xlu1 %v12153_v40, %s11577_s26  ;;  %3912 = vrot.lane.b32.xlu0 %v12153_v40, %s11580_s29 }
0x1331   : > { %v12163_v44 = vpop.permute.xlu1 %3770  ;;  %v12165_v50 = vpop.permute.xlu0 %3767 }
0x1332   : > { %3916 = vrot.lane.b32.xlu0 %v12163_v44, %s11580_s29  ;;  %3914 = vrot.lane.b32.xlu1 %v12165_v50, %s11580_s29  ;;  %v3776_v62 = vcombine.low %v12153_v40, %v12163_v44  ;;  %v3777_v31 = vcombine.high %v12153_v40, %v12163_v44 }
0x1334   : > { %v3784_v18 = vrot.slane %v3776_v62, %v11766_v46  ;;  %v3791_v34 = vrot.slane %v3777_v31, %v11766_v46 }
0x1335   : > { %v12171_v53 = vpop.permute.xlu1 %3773  ;;  %v3913_v26 = vpop.permute.xlu0 %3912 }
0x1336   : > { %3918 = vrot.lane.b32.xlu1 %v12171_v53, %s11580_s29  ;;  %408 = vperm.xlu0 %11355, %v406_v56   ;;  %v3792_v59 = vcombine.low %v12165_v50, %v12171_v53  ;;  %v3793_v60 = vcombine.high %v12165_v50, %v12171_v53 }
0x1338   : > { %v3800_v28 = vrot.slane %v3792_v59, %v11766_v46  ;;  %v3807_v30 = vrot.slane %v3793_v60, %v11766_v46 }
0x133a   : > { %v3808_v21 = vcombine.low %v3784_v18, %v3800_v28  ;;  %v3809_v49 = vcombine.high %v3784_v18, %v3800_v28  ;;  %v3824_v51 = vcombine.low %v3791_v34, %v3807_v30  ;;  %v3825_v61 = vcombine.high %v3791_v34, %v3807_v30 }
0x133c   : > { %v3816_v6 = vrot.slane %v3808_v21, %v11777_v55  ;;  %v3823_v7 = vrot.slane %v3809_v49, %v11777_v55  ;;  %v3832_v8 = vrot.slane %v3824_v51, %v11777_v55  ;;  %v3839_v9 = vrot.slane %v3825_v61, %v11777_v55 }
0x133e   : > { %v3844_v36 = vcombine.low %v3816_v6, %v3823_v7  ;;  %v10223_v19 = vcombine.high %v3816_v6, %v3823_v7  ;;  %v3860_v20 = vcombine.low %v3832_v8, %v3839_v9  ;;  %v10224_v22 = vcombine.high %v3832_v8, %v3839_v9 }
0x1340   : > { %v3851_v43 = vrot.slane %v3844_v36, %v11766_v46  ;;  %v3859_v45 = vrot.slane %v10223_v19, %v11766_v46  ;;  %v3867_v47 = vrot.slane %v3860_v20, %v11766_v46  ;;  %v3875_v14 = vrot.slane %v10224_v22, %v11766_v46 }
0x1342   : > { %v3876_v62 = vcombine.low %v3851_v43, %v3859_v45  ;;  %v3892_v31 = vcombine.low %v3867_v47, %v3875_v14  ;;  %v3877_v28 = vcombine.high %v3851_v43, %v3859_v45  ;;  %v3893_v30 = vcombine.high %v3867_v47, %v3875_v14 }
0x1344   : > { %v3907_v6 = vrot.slane %v3893_v30, %v11777_v55 }
0x138c   : > { %v12177_v57 = vpop.f32.mrb[20].mxu0 }
0x138d   : > { %v10777_v58 = vpop.f32.mrb[21].mxu0 }
0x13a4   : > { %v3915_v63 = vpop.permute.xlu1 %3914  ;;  %v3917_v4 = vpop.permute.xlu0 %3916 }
0x13a5   : > { %v3924_v0 = vcombine.low %v3913_v26, %v3917_v4  ;;  %v3925_v5 = vcombine.high %v3913_v26, %v3917_v4  ;;  %v3884_v4 = vrot.slane %v3876_v62, %v11777_v55 }
0x13a7   : > { %v3932_v15 = vrot.slane %v3924_v0, %v11766_v46  ;;  %v3939_v16 = vrot.slane %v3925_v5, %v11766_v46  ;;  %v3900_v0 = vrot.slane %v3892_v31, %v11777_v55  ;;  %v3891_v5 = vrot.slane %v3877_v28, %v11777_v55 }
0x13a8   : > { %v3919_v10 = vpop.permute.xlu1 %3918 }
0x13a9   : > { %v3940_v11 = vcombine.low %v3915_v63, %v3919_v10  ;;  %v3941_v13 = vcombine.high %v3915_v63, %v3919_v10  ;;  %v3908_v9 = vcombine.low %v3884_v4, %v3900_v0  ;;  %v3910_v10 = vcombine.low %v3891_v5, %v3907_v6 }
0x13ab   : > { %v3948_v24 = vrot.slane %v3940_v11, %v11766_v46  ;;  %v3955_v17 = vrot.slane %v3941_v13, %v11766_v46  ;;  %v3909_v13 = vcombine.high %v3884_v4, %v3900_v0 }
0x13ad   : > { %v3956_v29 = vcombine.low %v3932_v15, %v3948_v24  ;;  %v3957_v32 = vcombine.high %v3932_v15, %v3948_v24  ;;  %v3972_v33 = vcombine.low %v3939_v16, %v3955_v17  ;;  %v3973_v35 = vcombine.high %v3939_v16, %v3955_v17 }
0x13ae   : > { %v3911_v16 = vcombine.high %v3891_v5, %v3907_v6  ;;  %v11587_v17 = vmov -1e+09  }
0x13af   : > { %v3964_v38 = vrot.slane %v3956_v29, %v11777_v55  ;;  %v3971_v39 = vrot.slane %v3957_v32, %v11777_v55  ;;  %v3980_v23 = vrot.slane %v3972_v33, %v11777_v55  ;;  %v3987_v42 = vrot.slane %v3973_v35, %v11777_v55 }
0x13b1   : > { %v3992_v48 = vcombine.low %v3964_v38, %v3971_v39  ;;  %v10225_v25 = vcombine.high %v3964_v38, %v3971_v39  ;;  %v4008_v41 = vcombine.low %v3980_v23, %v3987_v42  ;;  %v10226_v54 = vcombine.high %v3980_v23, %v3987_v42 }
0x13b3   : > { %v3999_v56 = vrot.slane %v3992_v48, %v11766_v46  ;;  %v4007_v58 = vrot.slane %v10225_v25, %v11766_v46  ;;  %v4015_v59 = vrot.slane %v4008_v41, %v11766_v46  ;;  %v4023_v60 = vrot.slane %v10226_v54, %v11766_v46 }
0x13b5   : > { %v4024_v26 = vcombine.low %v3999_v56, %v4007_v58  ;;  %v4025_v18 = vcombine.high %v3999_v56, %v4007_v58  ;;  %v4040_v34 = vcombine.low %v4015_v59, %v4023_v60  ;;  %v4041_v21 = vcombine.high %v4015_v59, %v4023_v60  ;;  %v409_v24 = vpop.permute.xlu0 %408 }
0x13b6   : > { %vm410_vm12 = vcmp.eq.s32.totalorder %v409_v24, 1 }
0x13b7   : > { %v4032_v49 = vrot.slane %v4024_v26, %v11777_v55  ;;  %v4048_v51 = vrot.slane %v4040_v34, %v11777_v55  ;;  %v4039_v61 = vrot.slane %v4025_v18, %v11777_v55  ;;  %v4055_v63 = vrot.slane %v4041_v21, %v11777_v55  ;;  %vm411_vm13 = vmand %vm404_vm11, %vm410_vm12 }
0x13b8   : > { %v12241_v36 = vsel %vm411_vm13, 0.0, %v11587_v17 }
0x13b9   : > { %v4056_v7 = vcombine.low %v4032_v49, %v4048_v51  ;;  %v4058_v8 = vcombine.low %v4039_v61, %v4055_v63  ;;  %v4057_v11 = vcombine.high %v4032_v49, %v4048_v51  ;;  %v4059_v15 = vcombine.high %v4039_v61, %v4055_v63 }
0x13bb   : > { %10790 = vmatpush3.xpose.msk.msra.mxu1 %vm938_vm6, %v4056_v7  ;;  %10800 = vmatpush3.xpose.msk.msra.mxu0 %vm938_vm6, %v4058_v8 }
0x13bc   : > { %10794 = vmatprep.subr.mxu1 %v11575_v3  ;;  %10809 = vmatprep.subr.mxu0 %v11575_v3 }
0x13be   : > { %10792 = vmatmul.mubr.msk.f32.vlgmr.msra.gmra.mrb[32].mxu1 %vm938_vm6, %v3908_v9  ;;  %10802 = vmatmul.mubr.msk.f32.vlgmr.msra.gmra.mrb[22].mxu0 %vm938_vm6, %v3910_v10 }
0x13bf   : > { %10795 = vmatpush3.xpose.msk.msra.mxu1 %vm938_vm6, %v4057_v11  ;;  %10796 = vmatprep.mubr.msk.f32.mxu1 %vm11574_vm0, %v11575_v3 }
0x13c0   : > { %10804 = vmatprep.subr.mxu1 %v11575_v3  ;;  %10811 = vmatprep.mubr.msk.f32.mxu0 %vm11574_vm0, %v11575_v3 }
0x13c2   : > { %10797 = vmatmul.mubr.msk.f32.vlgmr.msra.gmra.mrb[34].mxu1 %vm938_vm6, %v3909_v13 }
0x13c3   : > { %10805 = vmatpush3.xpose.msk.msra.mxu1 %vm938_vm6, %v4059_v15  ;;  %10806 = vmatprep.mubr.msk.f32.mxu1 %vm11574_vm0, %v11575_v3 }
0x13c4   : > { %10814 = vmatprep.subr.mxu1 %v11575_v3 }
0x13c6   : > { %10807 = vmatmul.mubr.msk.f32.vlgmr.msra.gmra.mrb[36].mxu1 %vm938_vm6, %v3911_v16 }
0x13c7   : > { %10816 = vmatprep.mubr.msk.f32.mxu1 %vm11574_vm0, %v11575_v3 }
0x1491   : > { %v4280_v19 = vpop.f32.mrb[32].mxu1  ;;  %v4432_v20 = vpop.f32.mrb[22].mxu0 }
0x1492   : > { %v4512_v22 = vmul.f32 0.35355338, %v4280_v19  ;;  %v10793_v29 = vpop.f32.mrb[33].mxu1  ;;  %v10803_v32 = vpop.f32.mrb[23].mxu0  ;;  %v4514_v38 = vmul.f32 0.35355338, %v4432_v20 }
0x1494   : > { %v4516_v33 = vadd.f32 %v4512_v22, %v12241_v36  ;;  %v4518_v14 = vadd.f32 %v4514_v38, %v12241_v36 }
0x1495   : > { %v4356_v35 = vpop.f32.mrb[34].mxu1 }
0x1496   : > { %v4513_v39 = vmul.f32 0.35355338, %v4356_v35  ;;  %v10798_v23 = vpop.f32.mrb[35].mxu1  ;;  %v4520_v42 = vsel %vm938_vm6, %v4516_v33, -inf  ;;  %v4526_v25 = vsel %vm938_vm6, %v4518_v14, -inf }
0x1497   : > { %4521 = vmax.xlane.f32.xlu1 %v4520_v42 }
0x1498   : > { %v4517_v1 = vadd.f32 %v4513_v39, %v12241_v36 }
0x1499   : > { %v4508_v52 = vpop.f32.mrb[36].mxu1 }
0x149a   : > { %v4515_v43 = vmul.f32 0.35355338, %v4508_v52  ;;  %v10808_v45 = vpop.f32.mrb[37].mxu1  ;;  %v4523_v47 = vsel %vm938_vm6, %v4517_v1, -inf }
0x149b   : > { %4524 = vmax.xlane.f32.xlu0 %v4523_v47 }
0x149c   : > { %v4519_v48 = vadd.f32 %v4515_v43, %v12241_v36 }
0x149e   : > { %v4529_v41 = vsel %vm938_vm6, %v4519_v48, -inf }
0x149f   : > { %4527 = vmax.xlane.f32.xlu0 %v4526_v25  ;;  %4530 = vmax.xlane.f32.xlu1 %v4529_v41 }
0x14b0   : > { %4062 = vrot.lane.b32.xlu1 %v12165_v50, %s11583_s7 }
0x14b4   : > { %4064 = vrot.lane.b32.xlu1 %v12163_v44, %s11583_s7 }
0x1524   : > { %v4522_v54 = vpop.xlane.xlu1 %4521 }
0x1525   : > { %v4532_v56 = vsub.f32 %v4516_v33, %v4522_v54 }
0x1527   : > { %v4536_v58 = vmul.f32 1.442695, %v4532_v56 }
0x1528   : > { %v4525_v59 = vpop.xlane.xlu0 %4524 }
0x1529   : > { %11394 = vpow2.f32 %v4536_v58  ;;  %v4533_v60 = vsub.f32 %v4517_v1, %v4525_v59 }
0x152b   : > { %v4538_v62 = vmul.f32 1.442695, %v4533_v60 }
0x152c   : > { %v4528_v31 = vpop.xlane.xlu0 %4527  ;;  %v4531_v28 = vpop.xlane.xlu1 %4530 }
0x152d   : > { %11396 = vpow2.f32 %v4538_v62  ;;  %v4534_v30 = vsub.f32 %v4518_v14, %v4528_v31  ;;  %v4535_v26 = vsub.f32 %v4519_v48, %v4531_v28 }
0x152f   : > { %v4540_v18 = vmul.f32 1.442695, %v4534_v30  ;;  %v4542_v34 = vmul.f32 1.442695, %v4535_v26 }
0x1530   : > { %v4063_v0 = vpop.permute.xlu1 %4062 }
0x1531   : > { %11398 = vpow2.f32 %v4540_v18 }
0x1532   : > { %11400 = vpow2.f32 %v4542_v34 }
0x1533   : > { %v12255_v50 = vpop.eup %11394 }
0x1534   : > { %v4544_v44 = vsel %vm938_vm6, %v12255_v50, 0.0  ;;  %v4065_v5 = vpop.permute.xlu1 %4064 }
0x1535   : > { %4545 = vadd.xlane.f32.xlu0 %v4544_v44 }
0x1537   : > { %v11397_v21 = vpop.eup %11396 }
0x1538   : > { %v4547_v49 = vsel %vm938_vm6, %v11397_v21, 0.0 }
0x1539   : > { %4548 = vadd.xlane.f32.xlu1 %v4547_v49 }
0x153b   : > { %v12260_v51 = vpop.eup %11398 }
0x153c   : > { %v12262_v61 = vpop.eup %11400  ;;  %v4550_v63 = vsel %vm938_vm6, %v12260_v51, 0.0 }
0x153d   : > { %4551 = vadd.xlane.f32.xlu0 %v4550_v63  ;;  %v4553_v4 = vsel %vm938_vm6, %v12262_v61, 0.0 }
0x153e   : > { %4554 = vadd.xlane.f32.xlu1 %v4553_v4 }
0x154f   : > { %4066 = vrot.lane.b32.xlu1 %v12171_v53, %s11583_s7 }
0x1553   : > { %4060 = vrot.lane.b32.xlu0 %v12153_v40, %s11583_s7 }
0x15c2   : > { %v4546_v6 = vpop.xlane.xlu0 %4545 }
0x15c3   : > { %11402 = vrcp.f32 %v4546_v6 }
0x15c6   : > { %v4549_v7 = vpop.xlane.xlu1 %4548 }
0x15c7   : > { %11404 = vrcp.f32 %v4549_v7 }
0x15ca   : > { %v4552_v8 = vpop.xlane.xlu0 %4551 }
0x15cb   : > { %v4555_v9 = vpop.xlane.xlu1 %4554  ;;  %11406 = vrcp.f32 %v4552_v8 }
0x15cc   : > { %11408 = vrcp.f32 %v4555_v9 }
0x15cd   : > { %v11403_v41 = vpop.eup %11402 }
0x15ce   : > { %v4061_v10 = vpop.permute.xlu0 %4060  ;;  %v4560_v18 = vmul.f32 %v11403_v41, %v12255_v50  ;;  %v5007_v50 = vld [vmem:[#allocation2 + $0x128] sm:$0xff] }
0x15cf   : > { %v4072_v11 = vcombine.low %v4061_v10, %v4065_v5  ;;  %v4073_v13 = vcombine.high %v4061_v10, %v4065_v5  ;;  %v4067_v15 = vpop.permute.xlu1 %4066 }
0x15d0   : > { %v4088_v16 = vcombine.low %v4063_v0, %v4067_v15  ;;  %v4089_v24 = vcombine.high %v4063_v0, %v4067_v15 }
0x15d1   : > { %v4080_v17 = vrot.slane %v4072_v11, %v11766_v46  ;;  %v4087_v19 = vrot.slane %v4073_v13, %v11766_v46  ;;  %v11405_v59 = vpop.eup %11404 }
0x15d2   : > { %v4096_v53 = vrot.slane %v4088_v16, %v11766_v46  ;;  %v4103_v40 = vrot.slane %v4089_v24, %v11766_v46  ;;  %v4561_v34 = vmul.f32 %v11405_v59, %v11397_v21  ;;  %v5008_v21 = vld [vmem:[#allocation2 + $0x130] sm:$0xff] }
0x15d4   : > { %v4104_v20 = vcombine.low %v4080_v17, %v4096_v53  ;;  %v4105_v22 = vcombine.high %v4080_v17, %v4096_v53  ;;  %v4120_v29 = vcombine.low %v4087_v19, %v4103_v40  ;;  %v4121_v32 = vcombine.high %v4087_v19, %v4103_v40 }
0x15d5   : > { %v11407_v26 = vpop.eup %11406 }
0x15d6   : > { %v4112_v33 = vrot.slane %v4104_v20, %v11777_v55  ;;  %v4119_v35 = vrot.slane %v4105_v22, %v11777_v55  ;;  %v4128_v38 = vrot.slane %v4120_v29, %v11777_v55  ;;  %v4135_v39 = vrot.slane %v4121_v32, %v11777_v55  ;;  %v11409_v44 = vpop.eup %11408 }
0x15d7   : > { %v4562_v4 = vmul.f32 %v11407_v26, %v12260_v51  ;;  %v4563_v0 = vmul.f32 %v11409_v44, %v12262_v61  ;;  %v11192_v51 = vpack.c.bf16 %v5008_v21, %v5007_v50  ;;  %v10217_v44 = vld [vmem:[#allocation2 + $0x418] ss:$0 sm:$0xff] }
0x15d8   : > { %v4140_v23 = vcombine.low %v4112_v33, %v4119_v35  ;;  %v10227_v42 = vcombine.high %v4112_v33, %v4119_v35  ;;  %v4156_v1 = vcombine.low %v4128_v38, %v4135_v39  ;;  %v10228_v52 = vcombine.high %v4128_v38, %v4135_v39  ;;  %v5009_v33 = vld [vmem:[#allocation2 + $0x138] sm:$0xff]  ;;  %v5010_v35 = vld [vmem:[#allocation2 + $0x140] sm:$0xff] }
0x15da   : > { %v4147_v43 = vrot.slane %v4140_v23, %v11766_v46  ;;  %v4155_v45 = vrot.slane %v10227_v42, %v11766_v46  ;;  %v4163_v47 = vrot.slane %v4156_v1, %v11766_v46  ;;  %v4171_v14 = vrot.slane %v10228_v52, %v11766_v46 }
0x15db   : > { %v11195_v1 = vpack.c.bf16 %v5010_v35, %v5009_v33 }
0x15dc   : > { %v4172_v48 = vcombine.low %v4147_v43, %v4155_v45  ;;  %v4173_v25 = vcombine.high %v4147_v43, %v4155_v45  ;;  %v4188_v54 = vcombine.low %v4163_v47, %v4171_v14  ;;  %v4189_v56 = vcombine.high %v4163_v47, %v4171_v14 }
0x15de   : > { %v4180_v58 = vrot.slane %v4172_v48, %v11777_v55  ;;  %v4196_v60 = vrot.slane %v4188_v54, %v11777_v55  ;;  %v4187_v62 = vrot.slane %v4173_v25, %v11777_v55  ;;  %v4203_v31 = vrot.slane %v4189_v56, %v11777_v55 }
0x15e0   : > { %v4204_v28 = vcombine.low %v4180_v58, %v4196_v60  ;;  %v4205_v30 = vcombine.high %v4180_v58, %v4196_v60  ;;  %v4206_v49 = vcombine.low %v4187_v62, %v4203_v31  ;;  %v4207_v63 = vcombine.high %v4187_v62, %v4203_v31 }
0x15e2   : > { %10810 = vmatpush3.msra.mxu0 %v4204_v28  ;;  %10815 = vmatpush3.msra.mxu1 %v4205_v30 }
0x15e3   : > { %10812 = vmatmul.mubr.msk.f32.vlgmr.msra.gmra.mrb[24].mxu0 %vm938_vm6, %v4560_v18  ;;  %10817 = vmatmul.mubr.msk.f32.vlgmr.msra.gmra.mrb[38].mxu1 %vm938_vm6, %v4561_v34 }
0x15e4   : > { %10819 = vmatprep.subr.mxu0 %v11575_v3  ;;  %10824 = vmatprep.subr.mxu1 %v11575_v3 }
0x15e5   : > { %10820 = vmatpush3.msra.mxu0 %v4206_v49  ;;  %10825 = vmatpush3.msra.mxu1 %v4207_v63  ;;  %v3653_v49 = vadd.f32 %v10217_v44, %v12177_v57  ;;  %v5201_v57 = vld [vmem:[#allocation2 + $0x28] sm:$0xff] }
0x15e6   : > { %10821 = vmatprep.mubr.msk.f32.mxu0 %vm11574_vm0, %v11575_v3  ;;  %10826 = vmatprep.mubr.msk.f32.mxu1 %vm11574_vm0, %v11575_v3 }
0x15e7   : > { %10822 = vmatmul.mubr.msk.f32.vlgmr.msra.gmra.mrb[26].mxu0 %vm938_vm6, %v4562_v4  ;;  %10827 = vmatmul.mubr.msk.f32.vlgmr.msra.gmra.mrb[40].mxu1 %vm938_vm6, %v4563_v0  ;;  %v3656_v63 = vadd.f32 %v3653_v49, %v12134_v27  ;;  %v10245_v49 = vld [vmem:[#allocation2 + $0xf0] ss:$0 sm:$0xff] }
0x15e8   : > { %11191 = vmatprep.subr.bf16.mxu0 %v11573_v2  ;;  %10837 = vmatprep.mubr.msk.f32.mxu0 %vm11574_vm0, %v11575_v3 }
0x15e9   : > { %11197 = vmatprep.subr.bf16.mxu1 %v11573_v2  ;;  %10848 = vmatprep.mubr.msk.f32.mxu1 %vm11574_vm0, %v11575_v3  ;;  %v3661_v4 = vmul.f32 %v3656_v63, %v3656_v63  ;;  %v3657_v50 = vsel %vm422_vm5, %v3656_v63, 0.0 }
0x15ea   : > { %11193 = vmatpush3.bf16.msra.mxu0 %v11192_v51  ;;  %v5199_v51 = vld [vmem:[#allocation2 + $0x18] sm:$0xff] }
0x15eb   : > { %11194 = vmatprep.subr.bf16.mxu0 %v11573_v2  ;;  %v3662_v0 = vsel %vm422_vm5, %v3661_v4, 0.0  ;;  %v10246_v4 = vld [vmem:[#allocation2 + $0xe8] ss:$0 sm:$0xff] }
0x15ee   : > { %11196 = vmatpush3.bf16.msra.mxu0 %v11195_v1 }
0x15ef   : > { %11203 = vmatprep.subr.bf16.mxu0 %v11573_v2 }
0x16b6   : > { %v4633_v61 = vpop.f32.mrb[24].mxu0  ;;  %v4706_v5 = vpop.f32.mrb[38].mxu1 }
0x16b7   : > { %v10813_v6 = vpop.f32.mrb[25].mxu0  ;;  %v10818_v7 = vpop.f32.mrb[39].mxu1 }
0x16ba   : > { %v4779_v8 = vpop.f32.mrb[26].mxu0  ;;  %v4852_v9 = vpop.f32.mrb[40].mxu1 }
0x16bb   : > { %v4856_v10 = vcombine.low %v4633_v61, %v4779_v8  ;;  %v4857_v11 = vcombine.high %v4633_v61, %v4779_v8  ;;  %v4872_v13 = vcombine.low %v4706_v5, %v4852_v9  ;;  %v4873_v15 = vcombine.high %v4706_v5, %v4852_v9  ;;  %v10823_v16 = vpop.f32.mrb[27].mxu0  ;;  %v10828_v24 = vpop.f32.mrb[41].mxu1  ;;  %v5200_v61 = vld [vmem:[#allocation2 + $0x20] sm:$0xff] }
0x16bc   : > { %v11204_v7 = vpack.c.bf16 %v5200_v61, %v5199_v51 }
0x16bd   : > { %v4864_v17 = vrot.slane %v4856_v10, %v11766_v46  ;;  %v4871_v19 = vrot.slane %v4857_v11, %v11766_v46  ;;  %v4880_v53 = vrot.slane %v4872_v13, %v11766_v46  ;;  %v4887_v40 = vrot.slane %v4873_v15, %v11766_v46  ;;  %v5202_v10 = vld [vmem:[#allocation2 + $0x30] sm:$0xff] }
0x16be   : > { %v11207_v11 = vpack.c.bf16 %v5202_v10, %v5201_v57 }
0x16bf   : > { %v4888_v20 = vcombine.low %v4864_v17, %v4880_v53  ;;  %v4889_v22 = vcombine.high %v4864_v17, %v4880_v53  ;;  %v4904_v29 = vcombine.low %v4871_v19, %v4887_v40  ;;  %v4905_v32 = vcombine.high %v4871_v19, %v4887_v40 }
0x16c1   : > { %v4896_v38 = vrot.slane %v4888_v20, %v11777_v55  ;;  %v4903_v39 = vrot.slane %v4889_v22, %v11777_v55  ;;  %v4912_v23 = vrot.slane %v4904_v29, %v11777_v55  ;;  %v4919_v42 = vrot.slane %v4905_v32, %v11777_v55  ;;  %v10219_v22 = vld [vmem:[#allocation2 + $0x498] ss:$0 sm:$0xff]  ;;  %v10220_v32 = vld [vmem:[#allocation2 + $0x490] ss:$0 sm:$0xff] }
0x16c3   : > { %v4924_v52 = vcombine.low %v4896_v38, %v4903_v39  ;;  %v10241_v43 = vcombine.high %v4896_v38, %v4903_v39  ;;  %v4940_v45 = vcombine.low %v4912_v23, %v4919_v42  ;;  %v10242_v47 = vcombine.high %v4912_v23, %v4919_v42  ;;  %v10243_v38 = vld [vmem:[#allocation2 + $0x118] ss:$0 sm:$0xff] }
0x16c5   : > { %v4931_v14 = vrot.slane %v4924_v52, %v11766_v46  ;;  %v4939_v48 = vrot.slane %v10241_v43, %v11766_v46  ;;  %v4947_v25 = vrot.slane %v4940_v45, %v11766_v46  ;;  %v4955_v41 = vrot.slane %v10242_v47, %v11766_v46  ;;  %v5117_v47 = vld [vmem:[#allocation2 + $0x58] sm:$0xff] }
0x16c7   : > { %v4957_v54 = vcombine.high %v4931_v14, %v4939_v48  ;;  %v4973_v56 = vcombine.high %v4947_v25, %v4955_v41  ;;  %v4956_v58 = vcombine.low %v4931_v14, %v4939_v48  ;;  %v4972_v59 = vcombine.low %v4947_v25, %v4955_v41  ;;  %v5118_v14 = vld [vmem:[#allocation2 + $0x60] sm:$0xff]  ;;  %v5119_v25 = vld [vmem:[#allocation2 + $0x68] sm:$0xff]  ;;  %v5120_v41 = vld [vmem:[#allocation2 + $0x70] sm:$0xff] }
0x16c8   : > { %v11198_v48 = vpack.c.bf16 %v5118_v14, %v5117_v47 }
0x16c9   : > { %v4971_v60 = vrot.slane %v4957_v54, %v11777_v55  ;;  %v4987_v62 = vrot.slane %v4973_v56, %v11777_v55  ;;  %v4964_v31 = vrot.slane %v4956_v58, %v11777_v55  ;;  %v4980_v28 = vrot.slane %v4972_v59, %v11777_v55 }
0x16ca   : > { %11199 = vmatpush3.bf16.msra.mxu1 %v11198_v48  ;;  %v11201_v54 = vpack.c.bf16 %v5120_v41, %v5119_v25 }
0x16cb   : > { %v4990_v30 = vcombine.low %v4971_v60, %v4987_v62  ;;  %v4989_v26 = vcombine.high %v4964_v31, %v4980_v28  ;;  %v4991_v18 = vcombine.high %v4971_v60, %v4987_v62  ;;  %v4988_v34 = vcombine.low %v4964_v31, %v4980_v28  ;;  %11200 = vmatprep.subr.bf16.mxu1 %v11573_v2 }
0x16cd   : > { %4997 = vrot.lane.b32.xlu1 %v4990_v30, %s11584_s8  ;;  %4993 = vrot.lane.b32.xlu0 %v4989_v26, %s11585_s9 }
0x16ce   : > { %11202 = vmatpush3.bf16.msra.mxu1 %v11201_v54 }
0x16cf   : > { %10862 = vmatprep.subr.mxu1 %v11575_v3 }
0x16d1   : > { %5001 = vrot.lane.b32.xlu0 %v4991_v18, %s11586_s10 }
0x16f0   : > { %3663 = vadd.xlane.f32.xlu0 %v3662_v0 }
0x16f1   : > { %3658 = vadd.xlane.f32.xlu1 %v3657_v50 }
0x173f   : > { %v4994_v21 = vpop.permute.xlu0 %4993  ;;  %v4998_v5 = vpop.permute.xlu1 %4997 }
0x1740   : > { %v5004_v6 = vsel %vm938_vm6, %v4988_v34, %v4994_v21 }
0x1741   : > { %v5005_v9 = vsel %vm255_vm4, %v5004_v6, %v4998_v5 }
0x1743   : > { %v5002_v8 = vpop.permute.xlu0 %5001 }
0x1744   : > { %v5006_v27 = vsel %vm1743_vm8, %v5005_v9, %v5002_v8 }
0x1745   : > { %10838 = vmatmul.mubr.msk.f32.vlgmr.msra.gmra.mrb[28].mxu0 %vm422_vm5, %v5006_v27 }
0x1746   : > { %11205 = vmatpush3.bf16.msra.mxu0 %v11204_v7  ;;  %10859 = vmatprep.mubr.msk.f32.mxu0 %vm11574_vm0, %v11575_v3 }
0x1747   : > { %11206 = vmatprep.subr.bf16.mxu0 %v11573_v2 }
0x174a   : > { %11208 = vmatpush3.bf16.msra.mxu0 %v11207_v11 }
0x174b   : > { %10872 = vmatprep.subr.mxu0 %v11575_v3 }
0x177d   : > { %v3664_v13 = vpop.xlane.xlu0 %3663 }
0x177e   : > { %v3659_v15 = vpop.xlane.xlu1 %3658  ;;  %v3665_v24 = vmul.f32 0.03125, %v3664_v13 }
0x177f   : > { %v3660_v16 = vmul.f32 0.03125, %v3659_v15 }
0x1781   : > { %v3666_v17 = vmul.f32 %v3660_v16, %v3660_v16  ;;  %v3668_v40 = vsub.f32 %v3656_v63, %v3660_v16 }
0x1783   : > { %v3667_v19 = vsub.f32 %v3665_v24, %v3666_v17 }
0x1785   : > { %v3669_v53 = vadd.f32 1e-05, %v3667_v19 }
0x1787   : > { %11410 = vrsqrt.f32 %v3669_v53 }
0x1791   : > { %v11411_v20 = vpop.eup %11410 }
0x1792   : > { %v3671_v29 = vmul.f32 %v11411_v20, %v3668_v40 }
0x1794   : > { %v3677_v33 = vmul.f32 %v10219_v22, %v3671_v29 }
0x1796   : > { %v12340_v35 = vadd.f32 %v10220_v32, %v3677_v33 }
0x1798   : > { %10860 = vmatmul.mubr.msk.f32.vlgmr.msra.gmra.mrb[30].mxu0 %vm422_vm5, %v12340_v35 }
0x1799   : > { %10874 = vmatprep.mubr.msk.f32.mxu0 %vm11574_vm0, %v11575_v3 }
0x1818   : > { %v5085_v39 = vpop.f32.mrb[28].mxu0 }
0x1819   : > { %v5086_v23 = vadd.f32 %v10243_v38, %v5085_v39  ;;  %v10839_v42 = vpop.f32.mrb[29].mxu0 }
0x181b   : > { %v5089_v1 = vadd.f32 %v5086_v23, %v12142_v37  ;;  %v10249_v37 = vld [vmem:[#allocation2] ss:$0 sm:$0xff] }
0x181d   : > { %v5090_v52 = vsel %vm422_vm5, %v5089_v1, 0.0  ;;  %v5094_v43 = vmul.f32 %v5089_v1, %v5089_v1 }
0x181e   : > { %5091 = vadd.xlane.f32.xlu0 %v5090_v52 }
0x181f   : > { %v5095_v45 = vsel %vm422_vm5, %v5094_v43, 0.0 }
0x1822   : > { %5096 = vadd.xlane.f32.xlu0 %v5095_v45 }
0x186b   : > { %v5277_v56 = vpop.f32.mrb[30].mxu0 }
0x186c   : > { %v12351_v58 = vadd.f32 %v10249_v37, %v5277_v56  ;;  %v10861_v59 = vpop.f32.mrb[31].mxu0  ;;  %v10247_v37 = vld [vmem:[#allocation2 + $0x10] ss:$0 sm:$0xff] }
0x186e   : > { %5431 = vrot.lane.b32.xlu0 %v12351_v58, %s11579_s28  ;;  %5428 = vrot.lane.b32.xlu1 %v12351_v58, %s11578_s27 }
0x1872   : > { %5434 = vrot.lane.b32.xlu1 %v12351_v58, %s11577_s26 }
0x18ab   : > { %v5092_v60 = vpop.xlane.xlu0 %5091 }
0x18ac   : > { %v5093_v62 = vmul.f32 0.03125, %v5092_v60 }
0x18ae   : > { %v5099_v28 = vmul.f32 %v5093_v62, %v5093_v62  ;;  %v5101_v34 = vsub.f32 %v5089_v1, %v5093_v62 }
0x18af   : > { %v5097_v31 = vpop.xlane.xlu0 %5096 }
0x18b0   : > { %v5098_v30 = vmul.f32 0.03125, %v5097_v31 }
0x18b2   : > { %v5100_v26 = vsub.f32 %v5098_v30, %v5099_v28 }
0x18b4   : > { %v5102_v18 = vadd.f32 1e-05, %v5100_v26 }
0x18b6   : > { %11412 = vrsqrt.f32 %v5102_v18 }
0x18c0   : > { %v11413_v44 = vpop.eup %11412 }
0x18c1   : > { %v5104_v63 = vmul.f32 %v11413_v44, %v5101_v34 }
0x18c3   : > { %v5110_v0 = vmul.f32 %v10245_v49, %v5104_v63 }
0x18c5   : > { %v12359_v50 = vadd.f32 %v10246_v4, %v5110_v0 }
0x18c7   : > { %10849 = vmatmul.mubr.msk.f32.vlgmr.msra.gmra.mrb[42].mxu1 %vm422_vm5, %v12359_v50 }
0x18c8   : > { %10864 = vmatprep.mubr.msk.f32.mxu1 %vm11574_vm0, %v11575_v3 }
0x18e0   : > { %v12365_v21 = vpop.permute.xlu0 %5431  ;;  %v12367_v51 = vpop.permute.xlu1 %5428 }
0x18e1   : > { %v5437_v61 = vcombine.low %v12351_v58, %v12365_v21  ;;  %v5438_v5 = vcombine.high %v12351_v58, %v12365_v21 }
0x18e3   : > { %v5445_v9 = vrot.slane %v5437_v61, %v11766_v46  ;;  %v5452_v57 = vrot.slane %v5438_v5, %v11766_v46 }
0x18e4   : > { %v12373_v6 = vpop.permute.xlu1 %5434 }
0x18e5   : > { %v5453_v7 = vcombine.low %v12367_v51, %v12373_v6  ;;  %v5454_v8 = vcombine.high %v12367_v51, %v12373_v6 }
0x18e7   : > { %v5461_v10 = vrot.slane %v5453_v7, %v11766_v46  ;;  %v5468_v27 = vrot.slane %v5454_v8, %v11766_v46 }
0x18e9   : > { %v5469_v11 = vcombine.low %v5445_v9, %v5461_v10  ;;  %v5470_v13 = vcombine.high %v5445_v9, %v5461_v10  ;;  %v5485_v15 = vcombine.low %v5452_v57, %v5468_v27  ;;  %v5486_v16 = vcombine.high %v5452_v57, %v5468_v27 }
0x18eb   : > { %v5477_v24 = vrot.slane %v5469_v11, %v11777_v55  ;;  %v5484_v17 = vrot.slane %v5470_v13, %v11777_v55  ;;  %v5493_v19 = vrot.slane %v5485_v15, %v11777_v55  ;;  %v5500_v53 = vrot.slane %v5486_v16, %v11777_v55 }
0x18ed   : > { %v5505_v40 = vcombine.low %v5477_v24, %v5484_v17  ;;  %v10253_v20 = vcombine.high %v5477_v24, %v5484_v17  ;;  %v5521_v22 = vcombine.low %v5493_v19, %v5500_v53  ;;  %v10254_v29 = vcombine.high %v5493_v19, %v5500_v53 }
0x18ef   : > { %v5512_v32 = vrot.slane %v5505_v40, %v11766_v46  ;;  %v5520_v33 = vrot.slane %v10253_v20, %v11766_v46  ;;  %v5528_v38 = vrot.slane %v5521_v22, %v11766_v46  ;;  %v5536_v39 = vrot.slane %v10254_v29, %v11766_v46 }
0x18f1   : > { %v5537_v23 = vcombine.low %v5512_v32, %v5520_v33  ;;  %v5538_v42 = vcombine.high %v5512_v32, %v5520_v33  ;;  %v5553_v1 = vcombine.low %v5528_v38, %v5536_v39  ;;  %v5554_v52 = vcombine.high %v5528_v38, %v5536_v39 }
0x18f3   : > { %v5545_v43 = vrot.slane %v5537_v23, %v11777_v55  ;;  %v5561_v45 = vrot.slane %v5553_v1, %v11777_v55  ;;  %v12394_v47 = vrot.slane %v5538_v42, %v11777_v55  ;;  %v5568_v14 = vrot.slane %v5554_v52, %v11777_v55 }
0x18f5   : > { %v5569_v48 = vcombine.low %v5545_v43, %v5561_v45  ;;  %v5571_v25 = vcombine.low %v12394_v47, %v5568_v14  ;;  %v5570_v41 = vcombine.high %v5545_v43, %v5561_v45  ;;  %v5572_v54 = vcombine.high %v12394_v47, %v5568_v14 }
0x18f7   : > { %10863 = vmatpush3.xpose.msk.msra.mxu1 %vm938_vm6, %v5569_v48  ;;  %10873 = vmatpush3.xpose.msk.msra.mxu0 %vm938_vm6, %v5571_v25 }
0x18f8   : > { %10867 = vmatprep.subr.mxu1 %v11575_v3  ;;  %10882 = vmatprep.subr.mxu0 %v11575_v3 }
0x199a   : > { %v5195_v56 = vpop.f32.mrb[42].mxu1 }
0x199b   : > { %v5196_v59 = vadd.f32 %v10247_v37, %v5195_v56  ;;  %v10850_v60 = vpop.f32.mrb[43].mxu1 }
0x199d   : > { %5288 = vrot.lane.b32.xlu0 %v5196_v59, %s11577_s26  ;;  %5282 = vrot.lane.b32.xlu1 %v5196_v59, %s11578_s27 }
0x19a1   : > { %5285 = vrot.lane.b32.xlu1 %v5196_v59, %s11579_s28 }
0x1a0f   : > { %v5289_v62 = vpop.permute.xlu0 %5288  ;;  %v5283_v31 = vpop.permute.xlu1 %5282 }
0x1a10   : > { %v5307_v28 = vcombine.low %v5283_v31, %v5289_v62  ;;  %v5308_v30 = vcombine.high %v5283_v31, %v5289_v62 }
0x1a12   : > { %v5315_v44 = vrot.slane %v5307_v28, %v11766_v46  ;;  %v5322_v49 = vrot.slane %v5308_v30, %v11766_v46 }
0x1a13   : > { %v5286_v26 = vpop.permute.xlu1 %5285 }
0x1a14   : > { %v5291_v18 = vcombine.low %v5196_v59, %v5286_v26  ;;  %v5292_v34 = vcombine.high %v5196_v59, %v5286_v26 }
0x1a16   : > { %v5299_v63 = vrot.slane %v5291_v18, %v11766_v46  ;;  %v5306_v4 = vrot.slane %v5292_v34, %v11766_v46 }
0x1a18   : > { %v5323_v0 = vcombine.low %v5299_v63, %v5315_v44  ;;  %v5324_v61 = vcombine.high %v5299_v63, %v5315_v44  ;;  %v5339_v5 = vcombine.low %v5306_v4, %v5322_v49  ;;  %v5340_v7 = vcombine.high %v5306_v4, %v5322_v49 }
0x1a1a   : > { %v5331_v8 = vrot.slane %v5323_v0, %v11777_v55  ;;  %v5338_v9 = vrot.slane %v5324_v61, %v11777_v55  ;;  %v5347_v57 = vrot.slane %v5339_v5, %v11777_v55  ;;  %v5354_v10 = vrot.slane %v5340_v7, %v11777_v55 }
0x1a1c   : > { %v5359_v27 = vcombine.low %v5331_v8, %v5338_v9  ;;  %v10251_v11 = vcombine.high %v5331_v8, %v5338_v9  ;;  %v5375_v13 = vcombine.low %v5347_v57, %v5354_v10  ;;  %v10252_v15 = vcombine.high %v5347_v57, %v5354_v10 }
0x1a1e   : > { %v5366_v16 = vrot.slane %v5359_v27, %v11766_v46  ;;  %v5374_v24 = vrot.slane %v10251_v11, %v11766_v46  ;;  %v5382_v17 = vrot.slane %v5375_v13, %v11766_v46  ;;  %v5390_v19 = vrot.slane %v10252_v15, %v11766_v46 }
0x1a20   : > { %v5391_v53 = vcombine.low %v5366_v16, %v5374_v24  ;;  %v5392_v40 = vcombine.high %v5366_v16, %v5374_v24  ;;  %v5407_v20 = vcombine.low %v5382_v17, %v5390_v19  ;;  %v5408_v22 = vcombine.high %v5382_v17, %v5390_v19 }
0x1a22   : > { %v5399_v29 = vrot.slane %v5391_v53, %v11777_v55  ;;  %v5415_v32 = vrot.slane %v5407_v20, %v11777_v55  ;;  %v5406_v33 = vrot.slane %v5392_v40, %v11777_v55  ;;  %v5422_v38 = vrot.slane %v5408_v22, %v11777_v55 }
0x1a24   : > { %v5423_v39 = vcombine.low %v5399_v29, %v5415_v32  ;;  %v5425_v23 = vcombine.low %v5406_v33, %v5422_v38  ;;  %v5424_v42 = vcombine.high %v5399_v29, %v5415_v32  ;;  %v5426_v1 = vcombine.high %v5406_v33, %v5422_v38 }
0x1a26   : > { %10865 = vmatmul.mubr.msk.f32.vlgmr.msra.gmra.mrb[44].mxu1 %vm938_vm6, %v5423_v39  ;;  %10875 = vmatmul.mubr.msk.f32.vlgmr.msra.gmra.mrb[32].mxu0 %vm938_vm6, %v5425_v23 }
0x1a27   : > { %10868 = vmatpush3.xpose.msk.msra.mxu1 %vm938_vm6, %v5570_v41  ;;  %10869 = vmatprep.mubr.msk.f32.mxu1 %vm11574_vm0, %v11575_v3 }
0x1a28   : > { %10877 = vmatprep.subr.mxu1 %v11575_v3  ;;  %10884 = vmatprep.mubr.msk.f32.mxu0 %vm11574_vm0, %v11575_v3 }
0x1a2a   : > { %10870 = vmatmul.mubr.msk.f32.vlgmr.msra.gmra.mrb[46].mxu1 %vm938_vm6, %v5424_v42 }
0x1a2b   : > { %10878 = vmatpush3.xpose.msk.msra.mxu1 %vm938_vm6, %v5572_v54  ;;  %10879 = vmatprep.mubr.msk.f32.mxu1 %vm11574_vm0, %v11575_v3 }
0x1a2c   : > { %10887 = vmatprep.subr.mxu1 %v11575_v3 }
0x1a2e   : > { %10880 = vmatmul.mubr.msk.f32.vlgmr.msra.gmra.mrb[48].mxu1 %vm938_vm6, %v5426_v1 }
0x1a2f   : > { %10889 = vmatprep.mubr.msk.f32.mxu1 %vm11574_vm0, %v11575_v3 }
0x1af9   : > { %v5793_v52 = vpop.f32.mrb[44].mxu1  ;;  %v5945_v43 = vpop.f32.mrb[32].mxu0 }
0x1afa   : > { %v6025_v45 = vmul.f32 0.35355338, %v5793_v52  ;;  %v6027_v47 = vmul.f32 0.35355338, %v5945_v43  ;;  %v10866_v14 = vpop.f32.mrb[45].mxu1  ;;  %v10876_v48 = vpop.f32.mrb[33].mxu0 }
0x1afc   : > { %v6031_v25 = vadd.f32 %v6027_v47, %v11713_v12  ;;  %v6029_v41 = vadd.f32 %v6025_v45, %v11713_v12 }
0x1afd   : > { %v5869_v54 = vpop.f32.mrb[46].mxu1 }
0x1afe   : > { %v6026_v37 = vmul.f32 0.35355338, %v5869_v54  ;;  %v10871_v56 = vpop.f32.mrb[47].mxu1  ;;  %v6039_v59 = vsel %vm938_vm6, %v6031_v25, -inf  ;;  %v6033_v60 = vsel %vm938_vm6, %v6029_v41, -inf }
0x1aff   : > { %6040 = vmax.xlane.f32.xlu0 %v6039_v59  ;;  %6034 = vmax.xlane.f32.xlu1 %v6033_v60 }
0x1b00   : > { %v6030_v62 = vadd.f32 %v6026_v37, %v11713_v12 }
0x1b01   : > { %v6021_v31 = vpop.f32.mrb[48].mxu1 }
0x1b02   : > { %v6028_v28 = vmul.f32 0.35355338, %v6021_v31  ;;  %v10881_v30 = vpop.f32.mrb[49].mxu1  ;;  %v6036_v26 = vsel %vm938_vm6, %v6030_v62, -inf }
0x1b03   : > { %6037 = vmax.xlane.f32.xlu0 %v6036_v26 }
0x1b04   : > { %v6032_v18 = vadd.f32 %v6028_v28, %v11713_v12 }
0x1b06   : > { %v6042_v34 = vsel %vm938_vm6, %v6032_v18, -inf }
0x1b07   : > { %6043 = vmax.xlane.f32.xlu0 %v6042_v34 }
0x1b10   : > { %5573 = vrot.lane.b32.xlu1 %v12351_v58, %s11580_s29 }
0x1b8c   : > { %v6041_v44 = vpop.xlane.xlu0 %6040  ;;  %v6035_v49 = vpop.xlane.xlu1 %6034 }
0x1b8d   : > { %v6047_v63 = vsub.f32 %v6031_v25, %v6041_v44  ;;  %v6045_v4 = vsub.f32 %v6029_v41, %v6035_v49 }
0x1b8f   : > { %v6049_v0 = vmul.f32 1.442695, %v6045_v4  ;;  %v6053_v61 = vmul.f32 1.442695, %v6047_v63 }
0x1b90   : > { %v6038_v5 = vpop.xlane.xlu0 %6037  ;;  %v5574_v19 = vpop.permute.xlu1 %5573 }
0x1b91   : > { %v6046_v7 = vsub.f32 %v6030_v62, %v6038_v5  ;;  %11414 = vpow2.f32 %v6049_v0 }
0x1b92   : > { %11416 = vpow2.f32 %v6053_v61 }
0x1b93   : > { %v6051_v8 = vmul.f32 1.442695, %v6046_v7 }
0x1b94   : > { %v6044_v9 = vpop.xlane.xlu0 %6043 }
0x1b95   : > { %11418 = vpow2.f32 %v6051_v8  ;;  %v6048_v57 = vsub.f32 %v6032_v18, %v6044_v9 }
0x1b97   : > { %v6055_v10 = vmul.f32 1.442695, %v6048_v57 }
0x1b99   : > { %11420 = vpow2.f32 %v6055_v10 }
0x1b9b   : > { %v12448_v27 = vpop.eup %11414 }
0x1b9c   : > { %v6057_v58 = vsel %vm938_vm6, %v12448_v27, 0.0  ;;  %v12452_v11 = vpop.eup %11416 }
0x1b9d   : > { %6058 = vadd.xlane.f32.xlu1 %v6057_v58  ;;  %v6063_v16 = vsel %vm938_vm6, %v12452_v11, 0.0 }
0x1b9f   : > { %v11419_v13 = vpop.eup %11418 }
0x1ba0   : > { %v6060_v15 = vsel %vm938_vm6, %v11419_v13, 0.0 }
0x1ba1   : > { %6061 = vadd.xlane.f32.xlu0 %v6060_v15  ;;  %6064 = vadd.xlane.f32.xlu1 %v6063_v16 }
0x1ba3   : > { %v12457_v24 = vpop.eup %11420 }
0x1ba4   : > { %v6066_v17 = vsel %vm938_vm6, %v12457_v24, 0.0 }
0x1ba5   : > { %6067 = vadd.xlane.f32.xlu0 %v6066_v17 }
0x1bb2   : > { %5577 = vrot.lane.b32.xlu1 %v12365_v21, %s11580_s29 }
0x1bb6   : > { %5579 = vrot.lane.b32.xlu1 %v12373_v6, %s11580_s29 }
0x1bbb   : > { %5575 = vrot.lane.b32.xlu0 %v12367_v51, %s11580_s29 }
0x1c2a   : > { %v6059_v53 = vpop.xlane.xlu1 %6058 }
0x1c2b   : > { %11422 = vrcp.f32 %v6059_v53 }
0x1c2e   : > { %v6062_v40 = vpop.xlane.xlu0 %6061  ;;  %v6065_v20 = vpop.xlane.xlu1 %6064 }
0x1c2f   : > { %11424 = vrcp.f32 %v6062_v40 }
0x1c30   : > { %11426 = vrcp.f32 %v6065_v20 }
0x1c32   : > { %v6068_v22 = vpop.xlane.xlu0 %6067  ;;  %v5578_v29 = vpop.permute.xlu1 %5577 }
0x1c33   : > { %v5585_v32 = vcombine.low %v5574_v19, %v5578_v29  ;;  %v5586_v33 = vcombine.high %v5574_v19, %v5578_v29  ;;  %11428 = vrcp.f32 %v6068_v22 }
0x1c35   : > { %v5593_v21 = vrot.slane %v5585_v32, %v11766_v46  ;;  %v5600_v1 = vrot.slane %v5586_v33, %v11766_v46  ;;  %v11423_v18 = vpop.eup %11422 }
0x1c36   : > { %v5576_v38 = vpop.permute.xlu0 %5575  ;;  %v5580_v39 = vpop.permute.xlu1 %5579  ;;  %v6073_v9 = vmul.f32 %v11423_v18, %v12448_v27  ;;  %v6520_v27 = vld [vmem:[#allocation2 + $0x38] sm:$0xff] }
0x1c37   : > { %v5601_v23 = vcombine.low %v5576_v38, %v5580_v39  ;;  %v5602_v42 = vcombine.high %v5576_v38, %v5580_v39 }
0x1c39   : > { %v5609_v6 = vrot.slane %v5601_v23, %v11766_v46  ;;  %v5616_v51 = vrot.slane %v5602_v42, %v11766_v46  ;;  %v11425_v63 = vpop.eup %11424 }
0x1c3a   : > { %v11427_v8 = vpop.eup %11426  ;;  %v6074_v57 = vmul.f32 %v11425_v63, %v11419_v13 }
0x1c3b   : > { %v5617_v52 = vcombine.low %v5593_v21, %v5609_v6  ;;  %v5618_v43 = vcombine.high %v5593_v21, %v5609_v6  ;;  %v5633_v45 = vcombine.low %v5600_v1, %v5616_v51  ;;  %v5634_v47 = vcombine.high %v5600_v1, %v5616_v51 }
0x1c3c   : > { %v6075_v16 = vmul.f32 %v11427_v8, %v12452_v11  ;;  %v6521_v11 = vld [vmem:[#allocation2 + $0x40] sm:$0xff] }
0x1c3d   : > { %v5625_v14 = vrot.slane %v5617_v52, %v11777_v55  ;;  %v5632_v48 = vrot.slane %v5618_v43, %v11777_v55  ;;  %v5641_v25 = vrot.slane %v5633_v45, %v11777_v55  ;;  %v5648_v41 = vrot.slane %v5634_v47, %v11777_v55  ;;  %v11429_v10 = vpop.eup %11428  ;;  %v6522_v47 = vld [vmem:[#allocation2 + $0x48] sm:$0xff] }
0x1c3e   : > { %v6076_v17 = vmul.f32 %v11429_v10, %v12457_v24  ;;  %v11210_v13 = vpack.c.bf16 %v6521_v11, %v6520_v27  ;;  %v10271_v27 = vld [vmem:[#allocation2 + $0x8] ss:$0 sm:$0xff] }
0x1c3f   : > { %v5653_v54 = vcombine.low %v5625_v14, %v5632_v48  ;;  %v10255_v37 = vcombine.high %v5625_v14, %v5632_v48  ;;  %v5669_v56 = vcombine.low %v5641_v25, %v5648_v41  ;;  %v10256_v59 = vcombine.high %v5641_v25, %v5648_v41  ;;  %v6523_v14 = vld [vmem:[#allocation2 + $0x50] sm:$0xff] }
0x1c41   : > { %v5660_v60 = vrot.slane %v5653_v54, %v11766_v46  ;;  %v5668_v62 = vrot.slane %v10255_v37, %v11766_v46  ;;  %v5676_v31 = vrot.slane %v5669_v56, %v11766_v46  ;;  %v5684_v28 = vrot.slane %v10256_v59, %v11766_v46 }
0x1c42   : > { %v11213_v37 = vpack.c.bf16 %v6523_v14, %v6522_v47 }
0x1c43   : > { %v5685_v30 = vcombine.low %v5660_v60, %v5668_v62  ;;  %v5686_v26 = vcombine.high %v5660_v60, %v5668_v62  ;;  %v5701_v34 = vcombine.low %v5676_v31, %v5684_v28  ;;  %v5702_v44 = vcombine.high %v5676_v31, %v5684_v28 }
0x1c45   : > { %v5693_v49 = vrot.slane %v5685_v30, %v11777_v55  ;;  %v5709_v4 = vrot.slane %v5701_v34, %v11777_v55  ;;  %v5700_v0 = vrot.slane %v5686_v26, %v11777_v55  ;;  %v5716_v61 = vrot.slane %v5702_v44, %v11777_v55 }
0x1c47   : > { %v5717_v5 = vcombine.low %v5693_v49, %v5709_v4  ;;  %v5718_v7 = vcombine.high %v5693_v49, %v5709_v4  ;;  %v5719_v58 = vcombine.low %v5700_v0, %v5716_v61  ;;  %v5720_v15 = vcombine.high %v5700_v0, %v5716_v61 }
0x1c49   : > { %10883 = vmatpush3.msra.mxu0 %v5717_v5  ;;  %10888 = vmatpush3.msra.mxu1 %v5718_v7 }
0x1c4a   : > { %10885 = vmatmul.mubr.msk.f32.vlgmr.msra.gmra.mrb[34].mxu0 %vm938_vm6, %v6073_v9  ;;  %10890 = vmatmul.mubr.msk.f32.vlgmr.msra.gmra.mrb[50].mxu1 %vm938_vm6, %v6074_v57 }
0x1c4b   : > { %10892 = vmatprep.subr.mxu0 %v11575_v3  ;;  %10897 = vmatprep.subr.mxu1 %v11575_v3 }
0x1c4c   : > { %10893 = vmatpush3.msra.mxu0 %v5719_v58  ;;  %10898 = vmatpush3.msra.mxu1 %v5720_v15 }
0x1c4d   : > { %10894 = vmatprep.mubr.msk.f32.mxu0 %vm11574_vm0, %v11575_v3  ;;  %10899 = vmatprep.mubr.msk.f32.mxu1 %vm11574_vm0, %v11575_v3 }
0x1c4e   : > { %10895 = vmatmul.mubr.msk.f32.vlgmr.msra.gmra.mrb[36].mxu0 %vm938_vm6, %v6075_v16  ;;  %10900 = vmatmul.mubr.msk.f32.vlgmr.msra.gmra.mrb[52].mxu1 %vm938_vm6, %v6076_v17 }
0x1c4f   : > { %11209 = vmatprep.subr.bf16.mxu0 %v11573_v2  ;;  %10910 = vmatprep.mubr.msk.f32.mxu0 %vm11574_vm0, %v11575_v3 }
0x1c50   : > { %11215 = vmatprep.subr.bf16.mxu1 %v11573_v2  ;;  %10921 = vmatprep.mubr.msk.f32.mxu1 %vm11574_vm0, %v11575_v3 }
0x1c51   : > { %11211 = vmatpush3.bf16.msra.mxu0 %v11210_v13 }
0x1c52   : > { %11212 = vmatprep.subr.bf16.mxu0 %v11573_v2 }
0x1c55   : > { %11214 = vmatpush3.bf16.msra.mxu0 %v11213_v37 }
0x1c56   : > { %11221 = vmatprep.subr.bf16.mxu0 %v11573_v2 }
0x1d1d   : > { %v6146_v24 = vpop.f32.mrb[34].mxu0  ;;  %v6219_v19 = vpop.f32.mrb[50].mxu1 }
0x1d1e   : > { %v10886_v53 = vpop.f32.mrb[35].mxu0  ;;  %v10891_v40 = vpop.f32.mrb[51].mxu1 }
0x1d21   : > { %v6292_v20 = vpop.f32.mrb[36].mxu0  ;;  %v6365_v22 = vpop.f32.mrb[52].mxu1 }
0x1d22   : > { %v6369_v29 = vcombine.low %v6146_v24, %v6292_v20  ;;  %v6370_v32 = vcombine.high %v6146_v24, %v6292_v20  ;;  %v6385_v33 = vcombine.low %v6219_v19, %v6365_v22  ;;  %v6386_v38 = vcombine.high %v6219_v19, %v6365_v22  ;;  %v10896_v39 = vpop.f32.mrb[37].mxu0  ;;  %v10901_v23 = vpop.f32.mrb[53].mxu1  ;;  %v6630_v22 = vld [vmem:[#allocation2 + $0x88] sm:$0xff] }
0x1d23   : > { %v6714_v23 = vld [vmem:[#allocation2 + $0xb0] sm:$0xff] }
0x1d24   : > { %v6377_v42 = vrot.slane %v6369_v29, %v11766_v46  ;;  %v6384_v21 = vrot.slane %v6370_v32, %v11766_v46  ;;  %v6393_v1 = vrot.slane %v6385_v33, %v11766_v46  ;;  %v6400_v6 = vrot.slane %v6386_v38, %v11766_v46  ;;  %v6631_v29 = vld [vmem:[#allocation2 + $0x90] sm:$0xff]  ;;  %v6632_v33 = vld [vmem:[#allocation2 + $0x98] sm:$0xff]  ;;  %v6633_v38 = vld [vmem:[#allocation2 + $0xa0] sm:$0xff] }
0x1d25   : > { %v11216_v32 = vpack.c.bf16 %v6631_v29, %v6630_v22  ;;  %v11219_v39 = vpack.c.bf16 %v6633_v38, %v6632_v33  ;;  %v10279_v33 = vld [vmem:[#allocation2 + $0x110] ss:$0 sm:$0xff] }
0x1d26   : > { %v6401_v51 = vcombine.low %v6377_v42, %v6393_v1  ;;  %v6402_v52 = vcombine.high %v6377_v42, %v6393_v1  ;;  %v6417_v43 = vcombine.low %v6384_v21, %v6400_v6  ;;  %v6418_v45 = vcombine.high %v6384_v21, %v6400_v6  ;;  %v6715_v42 = vld [vmem:[#allocation2 + $0xb8] sm:$0xff]  ;;  %v6716_v1 = vld [vmem:[#allocation2 + $0xc0] sm:$0xff] }
0x1d27   : > { %11217 = vmatpush3.bf16.msra.mxu1 %v11216_v32  ;;  %v11225_v6 = vpack.c.bf16 %v6716_v1, %v6715_v42  ;;  %v10281_v42 = vld [vmem:[#allocation2 + $0x288] ss:$0 sm:$0xff] }
0x1d28   : > { %v6409_v48 = vrot.slane %v6401_v51, %v11777_v55  ;;  %v6416_v25 = vrot.slane %v6402_v52, %v11777_v55  ;;  %v6425_v41 = vrot.slane %v6417_v43, %v11777_v55  ;;  %v6432_v54 = vrot.slane %v6418_v45, %v11777_v55  ;;  %11218 = vmatprep.subr.bf16.mxu1 %v11573_v2  ;;  %v6717_v51 = vld [vmem:[#allocation2 + $0xc8] sm:$0xff]  ;;  %v6718_v52 = vld [vmem:[#allocation2 + $0xd0] sm:$0xff] }
0x1d29   : > { %v11228_v43 = vpack.c.bf16 %v6718_v52, %v6717_v51 }
0x1d2a   : > { %v6437_v56 = vcombine.low %v6409_v48, %v6416_v25  ;;  %v10269_v59 = vcombine.high %v6409_v48, %v6416_v25  ;;  %v6453_v60 = vcombine.low %v6425_v41, %v6432_v54  ;;  %v10270_v62 = vcombine.high %v6425_v41, %v6432_v54 }
0x1d2b   : > { %11220 = vmatpush3.bf16.msra.mxu1 %v11219_v39  ;;  %v10280_v39 = vld [vmem:[#allocation2 + $0x108] ss:$0 sm:$0xff] }
0x1d2c   : > { %v6444_v31 = vrot.slane %v6437_v56, %v11766_v46  ;;  %v6452_v28 = vrot.slane %v10269_v59, %v11766_v46  ;;  %v6460_v30 = vrot.slane %v6453_v60, %v11766_v46  ;;  %v6468_v26 = vrot.slane %v10270_v62, %v11766_v46  ;;  %11233 = vmatprep.subr.bf16.mxu1 %v11573_v2  ;;  %v10273_v59 = vld [vmem:[#allocation2 + $0x100] ss:$0 sm:$0xff]  ;;  %v10274_v62 = vld [vmem:[#allocation2 + $0xf8] ss:$0 sm:$0xff] }
0x1d2e   : > { %v6470_v18 = vcombine.high %v6444_v31, %v6452_v28  ;;  %v6486_v34 = vcombine.high %v6460_v30, %v6468_v26  ;;  %v6469_v44 = vcombine.low %v6444_v31, %v6452_v28  ;;  %v6485_v49 = vcombine.low %v6460_v30, %v6468_v26  ;;  %v6719_v30 = vld [vmem:[#allocation2 + $0xd8] sm:$0xff]  ;;  %v6720_v26 = vld [vmem:[#allocation2 + $0xe0] sm:$0xff] }
0x1d30   : > { %v6484_v63 = vrot.slane %v6470_v18, %v11777_v55  ;;  %v6500_v4 = vrot.slane %v6486_v34, %v11777_v55  ;;  %v6477_v0 = vrot.slane %v6469_v44, %v11777_v55  ;;  %v6493_v61 = vrot.slane %v6485_v49, %v11777_v55  ;;  %v10275_v34 = vld [vmem:[#allocation2 + $0x78] ss:$0 sm:$0xff] }
0x1d31   : > { %v11231_v18 = vpack.c.bf16 %v6720_v26, %v6719_v30 }
0x1d32   : > { %v6503_v5 = vcombine.low %v6484_v63, %v6500_v4  ;;  %v6502_v7 = vcombine.high %v6477_v0, %v6493_v61  ;;  %v6504_v8 = vcombine.high %v6484_v63, %v6500_v4  ;;  %v6501_v9 = vcombine.low %v6477_v0, %v6493_v61  ;;  %v10277_v0 = vld [vmem:[#allocation2 + $0x80] ss:$0 sm:$0xff] }
0x1d34   : > { %6510 = vrot.lane.b32.xlu0 %v6503_v5, %s11584_s8  ;;  %6506 = vrot.lane.b32.xlu1 %v6502_v7, %s11585_s9 }
0x1d38   : > { %6514 = vrot.lane.b32.xlu1 %v6504_v8, %s11586_s10 }
0x1da6   : > { %v6507_v57 = vpop.permute.xlu1 %6506  ;;  %v6511_v10 = vpop.permute.xlu0 %6510 }
0x1da7   : > { %v6517_v58 = vsel %vm938_vm6, %v6501_v9, %v6507_v57 }
0x1da8   : > { %v6518_v16 = vsel %vm255_vm4, %v6517_v58, %v6511_v10  ;;  %v6827_v58 = vld [vmem:[#allocation2 + $0x2b0] sm:$0xff] }
0x1daa   : > { %v6515_v15 = vpop.permute.xlu1 %6514 }
0x1dab   : > { %v6519_v17 = vsel %vm1743_vm8, %v6518_v16, %v6515_v15  ;;  %v6828_v15 = vld [vmem:[#allocation2 + $0x2b8] sm:$0xff] }
0x1dac   : > { %10911 = vmatmul.mubr.msk.f32.vlgmr.msra.gmra.mrb[38].mxu0 %vm422_vm5, %v6519_v17  ;;  %v11234_v16 = vpack.c.bf16 %v6828_v15, %v6827_v58  ;;  %v6829_v17 = vld [vmem:[#allocation2 + $0x2c0] sm:$0xff] }
0x1dad   : > { %10940 = vmatprep.mubr.msk.f32.mxu0 %vm11574_vm0, %v11575_v3 }
0x1e7f   : > { %v6598_v11 = vpop.f32.mrb[38].mxu0 }
0x1e80   : > { %v6599_v13 = vadd.f32 %v10271_v27, %v6598_v11  ;;  %v10912_v24 = vpop.f32.mrb[39].mxu0  ;;  %v6830_v27 = vld [vmem:[#allocation2 + $0x2c8] sm:$0xff] }
0x1e81   : > { %v11237_v11 = vpack.c.bf16 %v6830_v27, %v6829_v17 }
0x1e82   : > { %v6602_v19 = vadd.f32 %v6599_v13, %v12359_v50  ;;  %v6713_v50 = vld [vmem:[#allocation2 + $0xa8] sm:$0xff] }
0x1e83   : > { %v11222_v21 = vpack.c.bf16 %v6714_v23, %v6713_v50 }
0x1e84   : > { %v6603_v53 = vsel %vm422_vm5, %v6602_v19, 0.0  ;;  %v6607_v40 = vmul.f32 %v6602_v19, %v6602_v19 }
0x1e85   : > { %6604 = vadd.xlane.f32.xlu0 %v6603_v53  ;;  %11223 = vmatpush3.bf16.msra.mxu0 %v11222_v21 }
0x1e86   : > { %v6608_v20 = vsel %vm422_vm5, %v6607_v40, 0.0  ;;  %11224 = vmatprep.subr.bf16.mxu0 %v11573_v2 }
0x1e87   : > { %6609 = vadd.xlane.f32.xlu1 %v6608_v20 }
0x1e89   : > { %11226 = vmatpush3.bf16.msra.mxu0 %v11225_v6 }
0x1e8a   : > { %11227 = vmatprep.subr.bf16.mxu0 %v11573_v2 }
0x1e8d   : > { %11229 = vmatpush3.bf16.msra.mxu0 %v11228_v43 }
0x1e8e   : > { %11230 = vmatprep.subr.bf16.mxu0 %v11573_v2 }
0x1e91   : > { %11232 = vmatpush3.bf16.msra.mxu0 %v11231_v18 }
0x1e92   : > { %10964 = vmatprep.subr.mxu0 %v11575_v3 }
0x1f12   : > { %v6605_v45 = vpop.xlane.xlu0 %6604 }
0x1f13   : > { %v6606_v47 = vmul.f32 0.03125, %v6605_v45 }
0x1f14   : > { %v6610_v14 = vpop.xlane.xlu1 %6609 }
0x1f15   : > { %v6612_v48 = vmul.f32 %v6606_v47, %v6606_v47  ;;  %v6611_v25 = vmul.f32 0.03125, %v6610_v14  ;;  %v6614_v37 = vsub.f32 %v6602_v19, %v6606_v47 }
0x1f17   : > { %v6613_v41 = vsub.f32 %v6611_v25, %v6612_v48 }
0x1f19   : > { %v6615_v54 = vadd.f32 1e-05, %v6613_v41 }
0x1f1b   : > { %11430 = vrsqrt.f32 %v6615_v54 }
0x1f25   : > { %v11431_v56 = vpop.eup %11430 }
0x1f26   : > { %v6617_v60 = vmul.f32 %v11431_v56, %v6614_v37 }
0x1f28   : > { %v6623_v31 = vmul.f32 %v10273_v59, %v6617_v60 }
0x1f2a   : > { %v6629_v28 = vadd.f32 %v10274_v62, %v6623_v31 }
0x1f2c   : > { %10922 = vmatmul.mubr.msk.f32.vlgmr.msra.gmra.mrb[54].mxu1 %vm422_vm5, %v6629_v28 }
0x1f2d   : > { %10951 = vmatprep.mubr.msk.f32.mxu1 %vm11574_vm0, %v11575_v3  ;;  %11235 = vmatpush3.bf16.msra.mxu1 %v11234_v16 }
0x1f2e   : > { %11236 = vmatprep.subr.bf16.mxu1 %v11573_v2 }
0x1f31   : > { %11238 = vmatpush3.bf16.msra.mxu1 %v11237_v11 }
0x1f32   : > { %10954 = vmatprep.subr.mxu1 %v11575_v3 }
0x1fff   : > { %v6708_v44 = vpop.f32.mrb[54].mxu1 }
0x2000   : > { %v6709_v49 = vadd.f32 %v10275_v34, %v6708_v44  ;;  %v10923_v63 = vpop.f32.mrb[55].mxu1 }
0x2002   : > { %v6712_v4 = vmax.f32 %v6709_v49, 0.0 }
0x2004   : > { %10941 = vmatmul.mubr.msk.f32.vlgmr.msra.gmra.mrb[40].mxu0 %vm1952_vm9, %v6712_v4 }
0x2005   : > { %10966 = vmatprep.mubr.msk.f32.mxu0 %vm11574_vm0, %v11575_v3 }
0x20d7   : > { %v6795_v61 = vpop.f32.mrb[40].mxu0 }
0x20d8   : > { %v6796_v5 = vadd.f32 %v10277_v0, %v6795_v61  ;;  %v10942_v7 = vpop.f32.mrb[41].mxu0 }
0x20da   : > { %v6799_v8 = vadd.f32 %v6796_v5, %v6629_v28 }
0x20dc   : > { %v6800_v9 = vsel %vm422_vm5, %v6799_v8, 0.0  ;;  %v6804_v57 = vmul.f32 %v6799_v8, %v6799_v8 }
0x20dd   : > { %6801 = vadd.xlane.f32.xlu0 %v6800_v9 }
0x20de   : > { %v6805_v10 = vsel %vm422_vm5, %v6804_v57, 0.0 }
0x20e1   : > { %6806 = vadd.xlane.f32.xlu0 %v6805_v10 }
0x216a   : > { %v6802_v13 = vpop.xlane.xlu0 %6801 }
0x216b   : > { %v6803_v24 = vmul.f32 0.03125, %v6802_v13 }
0x216d   : > { %v6809_v53 = vmul.f32 %v6803_v24, %v6803_v24  ;;  %v6811_v29 = vsub.f32 %v6799_v8, %v6803_v24 }
0x216e   : > { %v6807_v19 = vpop.xlane.xlu0 %6806 }
0x216f   : > { %v6808_v40 = vmul.f32 0.03125, %v6807_v19 }
0x2171   : > { %v6810_v20 = vsub.f32 %v6808_v40, %v6809_v53 }
0x2173   : > { %v6812_v22 = vadd.f32 1e-05, %v6810_v20 }
0x2175   : > { %11432 = vrsqrt.f32 %v6812_v22 }
0x217f   : > { %v11433_v32 = vpop.eup %11432 }
0x2180   : > { %v6814_v38 = vmul.f32 %v11433_v32, %v6811_v29 }
0x2182   : > { %v6820_v50 = vmul.f32 %v10279_v33, %v6814_v38 }
0x2184   : > { %v12548_v23 = vadd.f32 %v10280_v39, %v6820_v50 }
0x2186   : > { %10952 = vmatmul.mubr.msk.f32.vlgmr.msra.gmra.mrb[56].mxu1 %vm422_vm5, %v12548_v23 }
0x2187   : > { %10956 = vmatprep.mubr.msk.f32.mxu1 %vm11574_vm0, %v11575_v3 }
0x2259   : > { %v6905_v21 = vpop.f32.mrb[56].mxu1 }
0x225a   : > { %v12554_v1 = vadd.f32 %v10281_v42, %v6905_v21  ;;  %v10953_v6 = vpop.f32.mrb[57].mxu1 }
0x225c   : > { %6913 = vrot.lane.b32.xlu1 %v12554_v1, %s11579_s28  ;;  %6910 = vrot.lane.b32.xlu0 %v12554_v1, %s11578_s27 }
0x2260   : > { %6916 = vrot.lane.b32.xlu1 %v12554_v1, %s11577_s26 }
0x2264   : > { %7055 = vrot.lane.b32.xlu1 %v12554_v1, %s11580_s29 }
0x22ce   : > { %v12564_v51 = vpop.permute.xlu1 %6913  ;;  %v12566_v52 = vpop.permute.xlu0 %6910 }
0x22cf   : > { %7059 = vrot.lane.b32.xlu1 %v12564_v51, %s11580_s29  ;;  %7057 = vrot.lane.b32.xlu0 %v12566_v52, %s11580_s29  ;;  %v6919_v14 = vcombine.low %v12554_v1, %v12564_v51  ;;  %v6920_v48 = vcombine.high %v12554_v1, %v12564_v51 }
0x22d1   : > { %v6927_v37 = vrot.slane %v6919_v14, %v11766_v46  ;;  %v6934_v56 = vrot.slane %v6920_v48, %v11766_v46 }
0x22d2   : > { %v12572_v43 = vpop.permute.xlu1 %6916 }
0x22d3   : > { %7061 = vrot.lane.b32.xlu0 %v12572_v43, %s11580_s29  ;;  %v6935_v45 = vcombine.low %v12566_v52, %v12572_v43  ;;  %v6936_v47 = vcombine.high %v12566_v52, %v12572_v43 }
0x22d5   : > { %v6943_v25 = vrot.slane %v6935_v45, %v11766_v46  ;;  %v6950_v41 = vrot.slane %v6936_v47, %v11766_v46 }
0x22d6   : > { %v7056_v54 = vpop.permute.xlu1 %7055 }
0x22d7   : > { %v6951_v59 = vcombine.low %v6927_v37, %v6943_v25  ;;  %v6952_v60 = vcombine.high %v6927_v37, %v6943_v25  ;;  %v6967_v62 = vcombine.low %v6934_v56, %v6950_v41  ;;  %v6968_v31 = vcombine.high %v6934_v56, %v6950_v41 }
0x22d9   : > { %v6959_v34 = vrot.slane %v6951_v59, %v11777_v55  ;;  %v6966_v44 = vrot.slane %v6952_v60, %v11777_v55  ;;  %v6975_v49 = vrot.slane %v6967_v62, %v11777_v55  ;;  %v6982_v63 = vrot.slane %v6968_v31, %v11777_v55 }
0x22db   : > { %v6987_v57 = vcombine.low %v6959_v34, %v6966_v44  ;;  %v10283_v10 = vcombine.high %v6959_v34, %v6966_v44  ;;  %v7003_v58 = vcombine.low %v6975_v49, %v6982_v63  ;;  %v10284_v15 = vcombine.high %v6975_v49, %v6982_v63 }
0x22dd   : > { %v6994_v40 = vrot.slane %v6987_v57, %v11766_v46  ;;  %v7002_v20 = vrot.slane %v10283_v10, %v11766_v46  ;;  %v7010_v22 = vrot.slane %v7003_v58, %v11766_v46  ;;  %v7018_v29 = vrot.slane %v10284_v15, %v11766_v46 }
0x22df   : > { %v7019_v45 = vcombine.low %v6994_v40, %v7002_v20  ;;  %v7035_v47 = vcombine.low %v7010_v22, %v7018_v29  ;;  %v7020_v14 = vcombine.high %v6994_v40, %v7002_v20  ;;  %v7036_v48 = vcombine.high %v7010_v22, %v7018_v29 }
0x22e1   : > { %v7027_v31 = vrot.slane %v7019_v45, %v11777_v55 }
0x2341   : > { %v7060_v28 = vpop.permute.xlu1 %7059  ;;  %v7058_v30 = vpop.permute.xlu0 %7057 }
0x2342   : > { %v7067_v26 = vcombine.low %v7056_v54, %v7060_v28  ;;  %v7068_v18 = vcombine.high %v7056_v54, %v7060_v28  ;;  %v7043_v28 = vrot.slane %v7035_v47, %v11777_v55 }
0x2344   : > { %v7075_v5 = vrot.slane %v7067_v26, %v11766_v46  ;;  %v7082_v7 = vrot.slane %v7068_v18, %v11766_v46  ;;  %v7050_v26 = vrot.slane %v7036_v48, %v11777_v55  ;;  %v7051_v44 = vcombine.low %v7027_v31, %v7043_v28 }
0x2345   : > { %v7062_v4 = vpop.permute.xlu0 %7061 }
0x2346   : > { %v7083_v0 = vcombine.low %v7058_v30, %v7062_v4  ;;  %v7084_v61 = vcombine.high %v7058_v30, %v7062_v4  ;;  %v7034_v30 = vrot.slane %v7020_v14, %v11777_v55  ;;  %v7052_v4 = vcombine.high %v7027_v31, %v7043_v28 }
0x2348   : > { %v7091_v8 = vrot.slane %v7083_v0, %v11766_v46  ;;  %v7098_v9 = vrot.slane %v7084_v61, %v11766_v46  ;;  %v7053_v49 = vcombine.low %v7034_v30, %v7050_v26  ;;  %v7054_v61 = vcombine.high %v7034_v30, %v7050_v26 }
0x234a   : > { %v7099_v16 = vcombine.low %v7075_v5, %v7091_v8  ;;  %v7100_v17 = vcombine.high %v7075_v5, %v7091_v8  ;;  %v7115_v27 = vcombine.low %v7082_v7, %v7098_v9  ;;  %v7116_v11 = vcombine.high %v7082_v7, %v7098_v9 }
0x234c   : > { %v7107_v13 = vrot.slane %v7099_v16, %v11777_v55  ;;  %v7114_v24 = vrot.slane %v7100_v17, %v11777_v55  ;;  %v7123_v19 = vrot.slane %v7115_v27, %v11777_v55  ;;  %v7130_v53 = vrot.slane %v7116_v11, %v11777_v55 }
0x234e   : > { %v7135_v32 = vcombine.low %v7107_v13, %v7114_v24  ;;  %v10285_v33 = vcombine.high %v7107_v13, %v7114_v24  ;;  %v7151_v38 = vcombine.low %v7123_v19, %v7130_v53  ;;  %v10286_v39 = vcombine.high %v7123_v19, %v7130_v53 }
0x2350   : > { %v7142_v50 = vrot.slane %v7135_v32, %v11766_v46  ;;  %v7150_v42 = vrot.slane %v10285_v33, %v11766_v46  ;;  %v7158_v21 = vrot.slane %v7151_v38, %v11766_v46  ;;  %v7166_v6 = vrot.slane %v10286_v39, %v11766_v46 }
0x2352   : > { %v7167_v25 = vcombine.low %v7142_v50, %v7150_v42  ;;  %v7168_v41 = vcombine.high %v7142_v50, %v7150_v42  ;;  %v7183_v54 = vcombine.low %v7158_v21, %v7166_v6  ;;  %v7184_v37 = vcombine.high %v7158_v21, %v7166_v6 }
0x2354   : > { %v7175_v56 = vrot.slane %v7167_v25, %v11777_v55  ;;  %v7191_v59 = vrot.slane %v7183_v54, %v11777_v55  ;;  %v7182_v60 = vrot.slane %v7168_v41, %v11777_v55  ;;  %v7198_v62 = vrot.slane %v7184_v37, %v11777_v55 }
0x2356   : > { %v7199_v18 = vcombine.low %v7175_v56, %v7191_v59  ;;  %v7201_v34 = vcombine.low %v7182_v60, %v7198_v62  ;;  %v7200_v63 = vcombine.high %v7175_v56, %v7191_v59  ;;  %v7202_v0 = vcombine.high %v7182_v60, %v7198_v62 }
0x2358   : > { %10955 = vmatpush3.xpose.msk.msra.mxu1 %vm938_vm6, %v7199_v18  ;;  %10965 = vmatpush3.xpose.msk.msra.mxu0 %vm938_vm6, %v7201_v34 }
0x2359   : > { %10959 = vmatprep.subr.mxu1 %v11575_v3  ;;  %10974 = vmatprep.subr.mxu0 %v11575_v3 }
0x235b   : > { %10957 = vmatmul.mubr.msk.f32.vlgmr.msra.gmra.mrb[58].mxu1 %vm938_vm6, %v7051_v44  ;;  %10967 = vmatmul.mubr.msk.f32.vlgmr.msra.gmra.mrb[42].mxu0 %vm938_vm6, %v7053_v49 }
0x235c   : > { %10960 = vmatpush3.xpose.msk.msra.mxu1 %vm938_vm6, %v7200_v63  ;;  %10961 = vmatprep.mubr.msk.f32.mxu1 %vm11574_vm0, %v11575_v3 }
0x235d   : > { %10969 = vmatprep.subr.mxu1 %v11575_v3  ;;  %10976 = vmatprep.mubr.msk.f32.mxu0 %vm11574_vm0, %v11575_v3 }
0x235f   : > { %10962 = vmatmul.mubr.msk.f32.vlgmr.msra.gmra.mrb[60].mxu1 %vm938_vm6, %v7052_v4 }
0x2360   : > { %10970 = vmatpush3.xpose.msk.msra.mxu1 %vm938_vm6, %v7202_v0  ;;  %10971 = vmatprep.mubr.msk.f32.mxu1 %vm11574_vm0, %v11575_v3 }
0x2361   : > { %10979 = vmatprep.subr.mxu1 %v11575_v3 }
0x2363   : > { %10972 = vmatmul.mubr.msk.f32.vlgmr.msra.gmra.mrb[62].mxu1 %vm938_vm6, %v7054_v61 }
0x2364   : > { %10981 = vmatprep.mubr.msk.f32.mxu1 %vm11574_vm0, %v11575_v3 }
0x242e   : > { %v7423_v5 = vpop.f32.mrb[58].mxu1  ;;  %v7575_v7 = vpop.f32.mrb[42].mxu0 }
0x242f   : > { %v7655_v8 = vmul.f32 0.35355338, %v7423_v5  ;;  %v7657_v9 = vmul.f32 0.35355338, %v7575_v7  ;;  %v10958_v57 = vpop.f32.mrb[59].mxu1  ;;  %v10968_v10 = vpop.f32.mrb[43].mxu0 }
0x2431   : > { %v7659_v58 = vadd.f32 %v7655_v8, %v12241_v36  ;;  %v7661_v15 = vadd.f32 %v7657_v9, %v12241_v36 }
0x2432   : > { %v7499_v16 = vpop.f32.mrb[60].mxu1 }
0x2433   : > { %v7656_v17 = vmul.f32 0.35355338, %v7499_v16  ;;  %v10963_v27 = vpop.f32.mrb[61].mxu1  ;;  %v7669_v11 = vsel %vm938_vm6, %v7661_v15, -inf  ;;  %v7663_v13 = vsel %vm938_vm6, %v7659_v58, -inf }
0x2434   : > { %7670 = vmax.xlane.f32.xlu0 %v7669_v11  ;;  %7664 = vmax.xlane.f32.xlu1 %v7663_v13 }
0x2435   : > { %v7660_v24 = vadd.f32 %v7656_v17, %v12241_v36 }
0x2436   : > { %v7651_v19 = vpop.f32.mrb[62].mxu1 }
0x2437   : > { %v7658_v53 = vmul.f32 0.35355338, %v7651_v19  ;;  %v10973_v40 = vpop.f32.mrb[63].mxu1  ;;  %v7666_v20 = vsel %vm938_vm6, %v7660_v24, -inf }
0x2438   : > { %7667 = vmax.xlane.f32.xlu0 %v7666_v20 }
0x2439   : > { %v7662_v22 = vadd.f32 %v7658_v53, %v12241_v36 }
0x243b   : > { %v7672_v29 = vsel %vm938_vm6, %v7662_v22, -inf }
0x243c   : > { %7673 = vmax.xlane.f32.xlu0 %v7672_v29 }
0x2445   : > { %7203 = vrot.lane.b32.xlu1 %v12554_v1, %s11583_s7 }
0x24c1   : > { %v7671_v32 = vpop.xlane.xlu0 %7670  ;;  %v7665_v33 = vpop.xlane.xlu1 %7664 }
0x24c2   : > { %v7677_v38 = vsub.f32 %v7661_v15, %v7671_v32  ;;  %v7675_v39 = vsub.f32 %v7659_v58, %v7665_v33 }
0x24c4   : > { %v7679_v50 = vmul.f32 1.442695, %v7675_v39  ;;  %v7683_v42 = vmul.f32 1.442695, %v7677_v38 }
0x24c5   : > { %v7668_v21 = vpop.xlane.xlu0 %7667  ;;  %v7204_v60 = vpop.permute.xlu1 %7203 }
0x24c6   : > { %v7676_v6 = vsub.f32 %v7660_v24, %v7668_v21  ;;  %11434 = vpow2.f32 %v7679_v50 }
0x24c7   : > { %11436 = vpow2.f32 %v7683_v42 }
0x24c8   : > { %v7681_v45 = vmul.f32 1.442695, %v7676_v6 }
0x24c9   : > { %v7674_v47 = vpop.xlane.xlu0 %7673 }
0x24ca   : > { %11438 = vpow2.f32 %v7681_v45  ;;  %v7678_v36 = vsub.f32 %v7662_v22, %v7674_v47 }
0x24cc   : > { %v7685_v14 = vmul.f32 1.442695, %v7678_v36 }
0x24ce   : > { %11440 = vpow2.f32 %v7685_v14 }
0x24d0   : > { %v12646_v48 = vpop.eup %11434 }
0x24d1   : > { %v7687_v1 = vsel %vm938_vm6, %v12646_v48, 0.0  ;;  %v12650_v25 = vpop.eup %11436 }
0x24d2   : > { %7688 = vadd.xlane.f32.xlu1 %v7687_v1  ;;  %v7693_v37 = vsel %vm938_vm6, %v12650_v25, 0.0 }
0x24d4   : > { %v11439_v41 = vpop.eup %11438 }
0x24d5   : > { %v7690_v54 = vsel %vm938_vm6, %v11439_v41, 0.0 }
0x24d6   : > { %7691 = vadd.xlane.f32.xlu0 %v7690_v54  ;;  %7694 = vadd.xlane.f32.xlu1 %v7693_v37 }
0x24d8   : > { %v12655_v56 = vpop.eup %11440 }
0x24d9   : > { %v7696_v59 = vsel %vm938_vm6, %v12655_v56, 0.0 }
0x24da   : > { %7697 = vadd.xlane.f32.xlu0 %v7696_v59 }
0x24e7   : > { %7207 = vrot.lane.b32.xlu1 %v12564_v51, %s11583_s7 }
0x24eb   : > { %7209 = vrot.lane.b32.xlu1 %v12572_v43, %s11583_s7 }
0x24f0   : > { %7205 = vrot.lane.b32.xlu0 %v12566_v52, %s11583_s7 }
0x255f   : > { %v7689_v62 = vpop.xlane.xlu1 %7688 }
0x2560   : > { %11442 = vrcp.f32 %v7689_v62 }
0x2563   : > { %v7692_v31 = vpop.xlane.xlu0 %7691  ;;  %v7695_v28 = vpop.xlane.xlu1 %7694 }
0x2564   : > { %11444 = vrcp.f32 %v7692_v31 }
0x2565   : > { %11446 = vrcp.f32 %v7695_v28 }
0x2567   : > { %v7698_v30 = vpop.xlane.xlu0 %7697  ;;  %v7208_v26 = vpop.permute.xlu1 %7207 }
0x2568   : > { %v7215_v18 = vcombine.low %v7204_v60, %v7208_v26  ;;  %v7216_v34 = vcombine.high %v7204_v60, %v7208_v26  ;;  %11448 = vrcp.f32 %v7698_v30 }
0x256a   : > { %v7223_v51 = vrot.slane %v7215_v18, %v11766_v46  ;;  %v7230_v0 = vrot.slane %v7216_v34, %v11766_v46  ;;  %v11443_v20 = vpop.eup %11442 }
0x256b   : > { %v7206_v44 = vpop.permute.xlu0 %7205  ;;  %v7210_v49 = vpop.permute.xlu1 %7209  ;;  %v7703_v45 = vmul.f32 %v11443_v20, %v12646_v48  ;;  %v8150_v48 = vld [vmem:[#allocation2 + $0x290] sm:$0xff] }
0x256c   : > { %v7231_v63 = vcombine.low %v7206_v44, %v7210_v49  ;;  %v7232_v4 = vcombine.high %v7206_v44, %v7210_v49 }
0x256e   : > { %v7239_v43 = vrot.slane %v7231_v63, %v11766_v46  ;;  %v7246_v52 = vrot.slane %v7232_v4, %v11766_v46  ;;  %v11445_v33 = vpop.eup %11444 }
0x256f   : > { %v11447_v6 = vpop.eup %11446  ;;  %v7704_v47 = vmul.f32 %v11445_v33, %v11439_v41 }
0x2570   : > { %v7247_v61 = vcombine.low %v7223_v51, %v7239_v43  ;;  %v7248_v5 = vcombine.high %v7223_v51, %v7239_v43  ;;  %v7263_v7 = vcombine.low %v7230_v0, %v7246_v52  ;;  %v7264_v8 = vcombine.high %v7230_v0, %v7246_v52 }
0x2571   : > { %v7705_v54 = vmul.f32 %v11447_v6, %v12650_v25  ;;  %v8151_v25 = vld [vmem:[#allocation2 + $0x298] sm:$0xff] }
0x2572   : > { %v7255_v9 = vrot.slane %v7247_v61, %v11777_v55  ;;  %v7262_v57 = vrot.slane %v7248_v5, %v11777_v55  ;;  %v7271_v10 = vrot.slane %v7263_v7, %v11777_v55  ;;  %v7278_v58 = vrot.slane %v7264_v8, %v11777_v55  ;;  %v11449_v36 = vpop.eup %11448  ;;  %v8152_v7 = vld [vmem:[#allocation2 + $0x2a0] sm:$0xff]  ;;  %v8153_v8 = vld [vmem:[#allocation2 + $0x2a8] sm:$0xff] }
0x2573   : > { %v7706_v37 = vmul.f32 %v11449_v36, %v12655_v56  ;;  %v11240_v41 = vpack.c.bf16 %v8151_v25, %v8150_v48  ;;  %v8343_v36 = vld [vmem:[#allocation2 + $0x188] sm:$0xff]  ;;  %v8344_v25 = vld [vmem:[#allocation2 + $0x190] sm:$0xff] }
0x2574   : > { %v7283_v15 = vcombine.low %v7255_v9, %v7262_v57  ;;  %v10287_v16 = vcombine.high %v7255_v9, %v7262_v57  ;;  %v7299_v17 = vcombine.low %v7271_v10, %v7278_v58  ;;  %v10288_v27 = vcombine.high %v7271_v10, %v7278_v58 }
0x2575   : > { %v11243_v9 = vpack.c.bf16 %v8153_v8, %v8152_v7 }
0x2576   : > { %v7290_v11 = vrot.slane %v7283_v15, %v11766_v46  ;;  %v7298_v13 = vrot.slane %v10287_v16, %v11766_v46  ;;  %v7306_v24 = vrot.slane %v7299_v17, %v11766_v46  ;;  %v7314_v19 = vrot.slane %v10288_v27, %v11766_v46 }
0x2578   : > { %v7315_v53 = vcombine.low %v7290_v11, %v7298_v13  ;;  %v7316_v40 = vcombine.high %v7290_v11, %v7298_v13  ;;  %v7331_v22 = vcombine.low %v7306_v24, %v7314_v19  ;;  %v7332_v29 = vcombine.high %v7306_v24, %v7314_v19 }
0x257a   : > { %v7323_v32 = vrot.slane %v7315_v53, %v11777_v55  ;;  %v7339_v38 = vrot.slane %v7331_v22, %v11777_v55  ;;  %v7330_v39 = vrot.slane %v7316_v40, %v11777_v55  ;;  %v7346_v50 = vrot.slane %v7332_v29, %v11777_v55 }
0x257c   : > { %v7347_v42 = vcombine.low %v7323_v32, %v7339_v38  ;;  %v7348_v21 = vcombine.high %v7323_v32, %v7339_v38  ;;  %v7349_v14 = vcombine.low %v7330_v39, %v7346_v50  ;;  %v7350_v1 = vcombine.high %v7330_v39, %v7346_v50 }
0x257e   : > { %10975 = vmatpush3.msra.mxu0 %v7347_v42  ;;  %10980 = vmatpush3.msra.mxu1 %v7348_v21 }
0x257f   : > { %10977 = vmatmul.mubr.msk.f32.vlgmr.msra.gmra.mrb[44].mxu0 %vm938_vm6, %v7703_v45  ;;  %10982 = vmatmul.mubr.msk.f32.vlgmr.msra.gmra.mrb[64].mxu1 %vm938_vm6, %v7704_v47  ;;  %v8342_v47 = vld [vmem:[#allocation2 + $0x180] sm:$0xff] }
0x2580   : > { %10984 = vmatprep.subr.mxu0 %v11575_v3  ;;  %10989 = vmatprep.subr.mxu1 %v11575_v3 }
0x2581   : > { %10985 = vmatpush3.msra.mxu0 %v7349_v14  ;;  %10990 = vmatpush3.msra.mxu1 %v7350_v1 }
0x2582   : > { %10986 = vmatprep.mubr.msk.f32.mxu0 %vm11574_vm0, %v11575_v3  ;;  %10991 = vmatprep.mubr.msk.f32.mxu1 %vm11574_vm0, %v11575_v3 }
0x2583   : > { %10987 = vmatmul.mubr.msk.f32.vlgmr.msra.gmra.mrb[46].mxu0 %vm938_vm6, %v7705_v54  ;;  %10992 = vmatmul.mubr.msk.f32.vlgmr.msra.gmra.mrb[66].mxu1 %vm938_vm6, %v7706_v37  ;;  %v11252_v54 = vpack.c.bf16 %v8343_v36, %v8342_v47 }
0x2584   : > { %11239 = vmatprep.subr.bf16.mxu0 %v11573_v2  ;;  %11002 = vmatprep.mubr.msk.f32.mxu0 %vm11574_vm0, %v11575_v3 }
0x2585   : > { %11245 = vmatprep.subr.bf16.mxu1 %v11573_v2  ;;  %11013 = vmatprep.mubr.msk.f32.mxu1 %vm11574_vm0, %v11575_v3 }
0x2586   : > { %11241 = vmatpush3.bf16.msra.mxu0 %v11240_v41  ;;  %v8345_v41 = vld [vmem:[#allocation2 + $0x198] sm:$0xff] }
0x2587   : > { %11242 = vmatprep.subr.bf16.mxu0 %v11573_v2 }
0x258a   : > { %11244 = vmatpush3.bf16.msra.mxu0 %v11243_v9 }
0x258b   : > { %11251 = vmatprep.subr.bf16.mxu0 %v11573_v2 }
0x2652   : > { %v7776_v56 = vpop.f32.mrb[44].mxu0  ;;  %v7849_v59 = vpop.f32.mrb[64].mxu1 }
0x2653   : > { %v10978_v60 = vpop.f32.mrb[45].mxu0  ;;  %v10983_v62 = vpop.f32.mrb[65].mxu1 }
0x2654   : > { %v10303_v60 = vld [vmem:[#allocation2 + $0x280] ss:$0 sm:$0xff] }
0x2656   : > { %v7922_v31 = vpop.f32.mrb[46].mxu0  ;;  %v7995_v28 = vpop.f32.mrb[66].mxu1 }
0x2657   : > { %v7999_v30 = vcombine.low %v7776_v56, %v7922_v31  ;;  %v8000_v26 = vcombine.high %v7776_v56, %v7922_v31  ;;  %v8015_v18 = vcombine.low %v7849_v59, %v7995_v28  ;;  %v8016_v34 = vcombine.high %v7849_v59, %v7995_v28  ;;  %v10988_v44 = vpop.f32.mrb[47].mxu0  ;;  %v10993_v49 = vpop.f32.mrb[67].mxu1 }
0x2658   : > { %v11255_v59 = vpack.c.bf16 %v8345_v41, %v8344_v25 }
0x2659   : > { %v8007_v63 = vrot.slane %v7999_v30, %v11766_v46  ;;  %v8014_v4 = vrot.slane %v8000_v26, %v11766_v46  ;;  %v8023_v51 = vrot.slane %v8015_v18, %v11766_v46  ;;  %v8030_v0 = vrot.slane %v8016_v34, %v11766_v46 }
0x265b   : > { %v8031_v43 = vcombine.low %v8007_v63, %v8023_v51  ;;  %v8032_v52 = vcombine.high %v8007_v63, %v8023_v51  ;;  %v8047_v61 = vcombine.low %v8014_v4, %v8030_v0  ;;  %v8048_v5 = vcombine.high %v8014_v4, %v8030_v0  ;;  %v10309_v63 = vld [vmem:[#allocation2 + $0x168] ss:$0 sm:$0xff]  ;;  %v8260_v4 = vld [vmem:[#allocation2 + $0x1c0] sm:$0xff]  ;;  %v8262_v0 = vld [vmem:[#allocation2 + $0x1d0] sm:$0xff] }
0x265d   : > { %v8039_v57 = vrot.slane %v8031_v43, %v11777_v55  ;;  %v8046_v10 = vrot.slane %v8032_v52, %v11777_v55  ;;  %v8055_v58 = vrot.slane %v8047_v61, %v11777_v55  ;;  %v8062_v15 = vrot.slane %v8048_v5, %v11777_v55  ;;  %v8263_v43 = vld [vmem:[#allocation2 + $0x1d8] sm:$0xff] }
0x265e   : > { %v11249_v52 = vpack.c.bf16 %v8263_v43, %v8262_v0 }
0x265f   : > { %v8067_v16 = vcombine.low %v8039_v57, %v8046_v10  ;;  %v10301_v17 = vcombine.high %v8039_v57, %v8046_v10  ;;  %v8083_v27 = vcombine.low %v8055_v58, %v8062_v15  ;;  %v10302_v11 = vcombine.high %v8055_v58, %v8062_v15 }
0x2661   : > { %v8074_v13 = vrot.slane %v8067_v16, %v11766_v46  ;;  %v8082_v24 = vrot.slane %v10301_v17, %v11766_v46  ;;  %v8090_v19 = vrot.slane %v8083_v27, %v11766_v46  ;;  %v8098_v53 = vrot.slane %v10302_v11, %v11766_v46 }
0x2663   : > { %v8100_v40 = vcombine.high %v8074_v13, %v8082_v24  ;;  %v8116_v20 = vcombine.high %v8090_v19, %v8098_v53  ;;  %v8099_v22 = vcombine.low %v8074_v13, %v8082_v24  ;;  %v8115_v29 = vcombine.low %v8090_v19, %v8098_v53 }
0x2665   : > { %v8114_v32 = vrot.slane %v8100_v40, %v11777_v55  ;;  %v8130_v33 = vrot.slane %v8116_v20, %v11777_v55  ;;  %v8107_v38 = vrot.slane %v8099_v22, %v11777_v55  ;;  %v8123_v39 = vrot.slane %v8115_v29, %v11777_v55 }
0x2667   : > { %v8133_v50 = vcombine.low %v8114_v32, %v8130_v33  ;;  %v8132_v42 = vcombine.high %v8107_v38, %v8123_v39  ;;  %v8134_v21 = vcombine.high %v8114_v32, %v8130_v33  ;;  %v8131_v6 = vcombine.low %v8107_v38, %v8123_v39 }
0x2669   : > { %8140 = vrot.lane.b32.xlu0 %v8133_v50, %s11584_s8  ;;  %8136 = vrot.lane.b32.xlu1 %v8132_v42, %s11585_s9 }
0x266d   : > { %8144 = vrot.lane.b32.xlu1 %v8134_v21, %s11586_s10 }
0x26db   : > { %v8137_v45 = vpop.permute.xlu1 %8136  ;;  %v8141_v14 = vpop.permute.xlu0 %8140 }
0x26dc   : > { %v8147_v1 = vsel %vm938_vm6, %v8131_v6, %v8137_v45 }
0x26dd   : > { %v8148_v48 = vsel %vm255_vm4, %v8147_v1, %v8141_v14 }
0x26df   : > { %v8145_v37 = vpop.permute.xlu1 %8144 }
0x26e0   : > { %v8149_v56 = vsel %vm1743_vm8, %v8148_v48, %v8145_v37 }
0x26e1   : > { %11003 = vmatmul.mubr.msk.f32.vlgmr.msra.gmra.mrb[48].mxu0 %vm422_vm5, %v8149_v56 }
0x26e2   : > { %11253 = vmatpush3.bf16.msra.mxu0 %v11252_v54  ;;  %11024 = vmatprep.mubr.msk.f32.mxu0 %vm11574_vm0, %v11575_v3  ;;  %v10305_v54 = vld [vmem:[#allocation2 + $0x258] ss:$0 sm:$0xff] }
0x26e3   : > { %11254 = vmatprep.subr.bf16.mxu0 %v11573_v2 }
0x26e6   : > { %11256 = vmatpush3.bf16.msra.mxu0 %v11255_v59  ;;  %v10306_v59 = vld [vmem:[#allocation2 + $0x250] ss:$0 sm:$0xff] }
0x26e7   : > { %11037 = vmatprep.subr.mxu0 %v11575_v3 }
0x26e9   : > { %11025 = vmatmul.mubr.msk.f32.vlgmr.msra.gmra.mrb[50].mxu0 %vm422_vm5, %v12340_v35 }
0x26ea   : > { %11039 = vmatprep.mubr.msk.f32.mxu0 %vm11574_vm0, %v11575_v3 }
0x27b4   : > { %v8228_v62 = vpop.f32.mrb[48].mxu0 }
0x27b5   : > { %v8229_v31 = vadd.f32 %v10303_v60, %v8228_v62  ;;  %v11004_v28 = vpop.f32.mrb[49].mxu0 }
0x27b7   : > { %v8232_v30 = vadd.f32 %v8229_v31, %v12548_v23  ;;  %v8261_v23 = vld [vmem:[#allocation2 + $0x1c8] sm:$0xff] }
0x27b8   : > { %v11246_v51 = vpack.c.bf16 %v8261_v23, %v8260_v4  ;;  %v10307_v23 = vld [vmem:[#allocation2 + $0x178] ss:$0 sm:$0xff] }
0x27b9   : > { %v8233_v26 = vsel %vm422_vm5, %v8232_v30, 0.0  ;;  %v8237_v18 = vmul.f32 %v8232_v30, %v8232_v30 }
0x27ba   : > { %8234 = vadd.xlane.f32.xlu0 %v8233_v26  ;;  %11247 = vmatpush3.bf16.msra.mxu1 %v11246_v51 }
0x27bb   : > { %v8238_v34 = vsel %vm422_vm5, %v8237_v18, 0.0  ;;  %11248 = vmatprep.subr.bf16.mxu1 %v11573_v2 }
0x27bc   : > { %v8417_v44 = vpop.f32.mrb[50].mxu0  ;;  %8239 = vadd.xlane.f32.xlu1 %v8238_v34 }
0x27bd   : > { %v11026_v49 = vpop.f32.mrb[51].mxu0  ;;  %v12736_v35 = vadd.f32 %v10309_v63, %v8417_v44 }
0x27be   : > { %11250 = vmatpush3.bf16.msra.mxu1 %v11249_v52 }
0x27bf   : > { %11027 = vmatprep.subr.mxu1 %v11575_v3 }
0x27cd   : > { %8571 = vrot.lane.b32.xlu1 %v12736_v35, %s11579_s28 }
0x27d0   : > { %8568 = vrot.lane.b32.xlu0 %v12736_v35, %s11578_s27 }
0x27d4   : > { %8574 = vrot.lane.b32.xlu0 %v12736_v35, %s11577_s26 }
0x2847   : > { %v8235_v61 = vpop.xlane.xlu0 %8234 }
0x2848   : > { %v8236_v5 = vmul.f32 0.03125, %v8235_v61 }
0x2849   : > { %v8240_v7 = vpop.xlane.xlu1 %8239 }
0x284a   : > { %v8242_v8 = vmul.f32 %v8236_v5, %v8236_v5  ;;  %v8241_v9 = vmul.f32 0.03125, %v8240_v7  ;;  %v8244_v6 = vsub.f32 %v8232_v30, %v8236_v5 }
0x284b   : > { %v12746_v57 = vpop.permute.xlu0 %8568 }
0x284c   : > { %v8243_v10 = vsub.f32 %v8241_v9, %v8242_v8 }
0x284d   : > { %v12748_v58 = vpop.permute.xlu1 %8571 }
0x284e   : > { %v8245_v15 = vadd.f32 1e-05, %v8243_v10  ;;  %v8577_v16 = vcombine.low %v12736_v35, %v12748_v58  ;;  %v8578_v17 = vcombine.high %v12736_v35, %v12748_v58 }
0x284f   : > { %v12754_v27 = vpop.permute.xlu0 %8574 }
0x2850   : > { %11450 = vrsqrt.f32 %v8245_v15  ;;  %v8593_v11 = vcombine.low %v12746_v57, %v12754_v27  ;;  %v8594_v13 = vcombine.high %v12746_v57, %v12754_v27  ;;  %v8585_v24 = vrot.slane %v8577_v16, %v11766_v46 }
0x2851   : > { %v8592_v53 = vrot.slane %v8578_v17, %v11766_v46 }
0x2852   : > { %v8601_v19 = vrot.slane %v8593_v11, %v11766_v46  ;;  %v8608_v40 = vrot.slane %v8594_v13, %v11766_v46 }
0x2854   : > { %v8609_v20 = vcombine.low %v8585_v24, %v8601_v19  ;;  %v8610_v22 = vcombine.high %v8585_v24, %v8601_v19  ;;  %v8625_v29 = vcombine.low %v8592_v53, %v8608_v40  ;;  %v8626_v32 = vcombine.high %v8592_v53, %v8608_v40 }
0x2856   : > { %v8617_v33 = vrot.slane %v8609_v20, %v11777_v55  ;;  %v8624_v38 = vrot.slane %v8610_v22, %v11777_v55  ;;  %v8633_v39 = vrot.slane %v8625_v29, %v11777_v55  ;;  %v8640_v50 = vrot.slane %v8626_v32, %v11777_v55 }
0x2858   : > { %v8645_v42 = vcombine.low %v8617_v33, %v8624_v38  ;;  %v10313_v21 = vcombine.high %v8617_v33, %v8624_v38  ;;  %v8661_v45 = vcombine.low %v8633_v39, %v8640_v50  ;;  %v10314_v47 = vcombine.high %v8633_v39, %v8640_v50 }
0x285a   : > { %v11451_v36 = vpop.eup %11450  ;;  %v8652_v14 = vrot.slane %v8645_v42, %v11766_v46  ;;  %v8660_v1 = vrot.slane %v10313_v21, %v11766_v46  ;;  %v8668_v48 = vrot.slane %v8661_v45, %v11766_v46  ;;  %v8676_v25 = vrot.slane %v10314_v47, %v11766_v46 }
0x285b   : > { %v8247_v37 = vmul.f32 %v11451_v36, %v8244_v6 }
0x285c   : > { %v8677_v41 = vcombine.low %v8652_v14, %v8660_v1  ;;  %v8678_v56 = vcombine.high %v8652_v14, %v8660_v1  ;;  %v8693_v60 = vcombine.low %v8668_v48, %v8676_v25  ;;  %v8694_v62 = vcombine.high %v8668_v48, %v8676_v25 }
0x285d   : > { %v8253_v31 = vmul.f32 %v10305_v54, %v8247_v37 }
0x285e   : > { %v8685_v28 = vrot.slane %v8677_v41, %v11777_v55  ;;  %v12774_v30 = vrot.slane %v8678_v56, %v11777_v55  ;;  %v8701_v18 = vrot.slane %v8693_v60, %v11777_v55  ;;  %v12780_v34 = vrot.slane %v8694_v62, %v11777_v55 }
0x285f   : > { %v12776_v26 = vadd.f32 %v10306_v59, %v8253_v31 }
0x2860   : > { %v8709_v44 = vcombine.low %v8685_v28, %v8701_v18  ;;  %v8711_v49 = vcombine.low %v12774_v30, %v12780_v34  ;;  %v8710_v63 = vcombine.high %v8685_v28, %v8701_v18  ;;  %v8712_v4 = vcombine.high %v12774_v30, %v12780_v34 }
0x2861   : > { %11014 = vmatmul.mubr.msk.f32.vlgmr.msra.gmra.mrb[68].mxu1 %vm422_vm5, %v12776_v26 }
0x2862   : > { %11029 = vmatprep.mubr.msk.f32.mxu1 %vm11574_vm0, %v11575_v3  ;;  %11028 = vmatpush3.xpose.msk.msra.mxu1 %vm938_vm6, %v8709_v44 }
0x2863   : > { %11038 = vmatpush3.xpose.msk.msra.mxu0 %vm938_vm6, %v8711_v49  ;;  %11032 = vmatprep.subr.mxu1 %v11575_v3 }
0x2864   : > { %11047 = vmatprep.subr.mxu0 %v11575_v3 }
0x2934   : > { %v8338_v51 = vpop.f32.mrb[68].mxu1 }
0x2935   : > { %v8339_v0 = vadd.f32 %v10307_v23, %v8338_v51  ;;  %v11015_v43 = vpop.f32.mrb[69].mxu1 }
0x2937   : > { %8425 = vrot.lane.b32.xlu0 %v8339_v0, %s11579_s28  ;;  %8422 = vrot.lane.b32.xlu1 %v8339_v0, %s11578_s27  ;;  %s12941_s27 = scalar_lea.hbm %s12986_s3, %s10344_s19  ;;  %s10051_s28 = scalar_lea.sflag [#allocation4], %s185_s11 }
0x293b   : > { %8428 = vrot.lane.b32.xlu1 %v8339_v0, %s11577_s26 }
0x29a9   : > { %v8426_v52 = vpop.permute.xlu0 %8425  ;;  %v8423_v61 = vpop.permute.xlu1 %8422 }
0x29aa   : > { %v8431_v5 = vcombine.low %v8339_v0, %v8426_v52  ;;  %v8432_v7 = vcombine.high %v8339_v0, %v8426_v52 }
0x29ac   : > { %v8439_v15 = vrot.slane %v8431_v5, %v11766_v46  ;;  %v8446_v16 = vrot.slane %v8432_v7, %v11766_v46 }
0x29ad   : > { %v8429_v8 = vpop.permute.xlu1 %8428 }
0x29ae   : > { %v8447_v9 = vcombine.low %v8423_v61, %v8429_v8  ;;  %v8448_v10 = vcombine.high %v8423_v61, %v8429_v8 }
0x29b0   : > { %v8455_v17 = vrot.slane %v8447_v9, %v11766_v46  ;;  %v8462_v11 = vrot.slane %v8448_v10, %v11766_v46 }
0x29b2   : > { %v8463_v13 = vcombine.low %v8439_v15, %v8455_v17  ;;  %v8464_v24 = vcombine.high %v8439_v15, %v8455_v17  ;;  %v8479_v19 = vcombine.low %v8446_v16, %v8462_v11  ;;  %v8480_v53 = vcombine.high %v8446_v16, %v8462_v11 }
0x29b4   : > { %v8471_v40 = vrot.slane %v8463_v13, %v11777_v55  ;;  %v8478_v20 = vrot.slane %v8464_v24, %v11777_v55  ;;  %v8487_v22 = vrot.slane %v8479_v19, %v11777_v55  ;;  %v8494_v29 = vrot.slane %v8480_v53, %v11777_v55 }
0x29b6   : > { %v8499_v32 = vcombine.low %v8471_v40, %v8478_v20  ;;  %v10311_v33 = vcombine.high %v8471_v40, %v8478_v20  ;;  %v8515_v38 = vcombine.low %v8487_v22, %v8494_v29  ;;  %v10312_v39 = vcombine.high %v8487_v22, %v8494_v29 }
0x29b8   : > { %v8506_v50 = vrot.slane %v8499_v32, %v11766_v46  ;;  %v8514_v42 = vrot.slane %v10311_v33, %v11766_v46  ;;  %v8522_v21 = vrot.slane %v8515_v38, %v11766_v46  ;;  %v8530_v6 = vrot.slane %v10312_v39, %v11766_v46 }
0x29ba   : > { %v8531_v45 = vcombine.low %v8506_v50, %v8514_v42  ;;  %v8532_v47 = vcombine.high %v8506_v50, %v8514_v42  ;;  %v8547_v36 = vcombine.low %v8522_v21, %v8530_v6  ;;  %v8548_v14 = vcombine.high %v8522_v21, %v8530_v6 }
0x29bc   : > { %v8539_v1 = vrot.slane %v8531_v45, %v11777_v55  ;;  %v8555_v54 = vrot.slane %v8547_v36, %v11777_v55  ;;  %v8546_v37 = vrot.slane %v8532_v47, %v11777_v55  ;;  %v8562_v48 = vrot.slane %v8548_v14, %v11777_v55 }
0x29be   : > { %v8563_v25 = vcombine.low %v8539_v1, %v8555_v54  ;;  %v8565_v41 = vcombine.low %v8546_v37, %v8562_v48  ;;  %v8564_v56 = vcombine.high %v8539_v1, %v8555_v54  ;;  %v8566_v59 = vcombine.high %v8546_v37, %v8562_v48 }
0x29c0   : > { %11030 = vmatmul.mubr.msk.f32.vlgmr.msra.gmra.mrb[70].mxu1 %vm938_vm6, %v8563_v25  ;;  %11040 = vmatmul.mubr.msk.f32.vlgmr.msra.gmra.mrb[52].mxu0 %vm938_vm6, %v8565_v41 }
0x29c1   : > { %11033 = vmatpush3.xpose.msk.msra.mxu1 %vm938_vm6, %v8710_v63  ;;  %11034 = vmatprep.mubr.msk.f32.mxu1 %vm11574_vm0, %v11575_v3 }
0x29c2   : > { %11042 = vmatprep.subr.mxu1 %v11575_v3  ;;  %11049 = vmatprep.mubr.msk.f32.mxu0 %vm11574_vm0, %v11575_v3 }
0x29c4   : > { %11035 = vmatmul.mubr.msk.f32.vlgmr.msra.gmra.mrb[72].mxu1 %vm938_vm6, %v8564_v56 }
0x29c5   : > { %11043 = vmatpush3.xpose.msk.msra.mxu1 %vm938_vm6, %v8712_v4  ;;  %11044 = vmatprep.mubr.msk.f32.mxu1 %vm11574_vm0, %v11575_v3 }
0x29c6   : > { %11052 = vmatprep.subr.mxu1 %v11575_v3 }
0x29c8   : > { %11045 = vmatmul.mubr.msk.f32.vlgmr.msra.gmra.mrb[74].mxu1 %vm938_vm6, %v8566_v59 }
0x29c9   : > { %11054 = vmatprep.mubr.msk.f32.mxu1 %vm11574_vm0, %v11575_v3 }
0x2a93   : > { %v8933_v60 = vpop.f32.mrb[70].mxu1  ;;  %v9085_v62 = vpop.f32.mrb[52].mxu0 }
0x2a94   : > { %v9165_v31 = vmul.f32 0.35355338, %v8933_v60  ;;  %v9167_v28 = vmul.f32 0.35355338, %v9085_v62  ;;  %v11031_v30 = vpop.f32.mrb[71].mxu1  ;;  %v11041_v18 = vpop.f32.mrb[53].mxu0 }
0x2a96   : > { %v9169_v34 = vadd.f32 %v9165_v31, %v11713_v12  ;;  %v9171_v49 = vadd.f32 %v9167_v28, %v11713_v12 }
0x2a97   : > { %v9009_v44 = vpop.f32.mrb[72].mxu1 }
0x2a98   : > { %v9166_v63 = vmul.f32 0.35355338, %v9009_v44  ;;  %v11036_v4 = vpop.f32.mrb[73].mxu1  ;;  %v9173_v23 = vsel %vm938_vm6, %v9169_v34, -inf  ;;  %v9179_v61 = vsel %vm938_vm6, %v9171_v49, -inf }
0x2a99   : > { %9174 = vmax.xlane.f32.xlu0 %v9173_v23 }
0x2a9a   : > { %v9170_v51 = vadd.f32 %v9166_v63, %v11713_v12 }
0x2a9b   : > { %v9161_v0 = vpop.f32.mrb[74].mxu1 }
0x2a9c   : > { %v9168_v43 = vmul.f32 0.35355338, %v9161_v0  ;;  %v11046_v52 = vpop.f32.mrb[75].mxu1  ;;  %v9176_v5 = vsel %vm938_vm6, %v9170_v51, -inf }
0x2a9d   : > { %9180 = vmax.xlane.f32.xlu0 %v9179_v61  ;;  %9177 = vmax.xlane.f32.xlu1 %v9176_v5 }
0x2a9e   : > { %v9172_v7 = vadd.f32 %v9168_v43, %v11713_v12 }
0x2aa0   : > { %v9182_v8 = vsel %vm938_vm6, %v9172_v7, -inf }
0x2aa1   : > { %9183 = vmax.xlane.f32.xlu0 %v9182_v8 }
0x2aae   : > { %8715 = vrot.lane.b32.xlu1 %v12746_v57, %s11580_s29 }
0x2ab2   : > { %8717 = vrot.lane.b32.xlu1 %v12748_v58, %s11580_s29 }
0x2b26   : > { %v9175_v9 = vpop.xlane.xlu0 %9174 }
0x2b27   : > { %v9185_v10 = vsub.f32 %v9169_v34, %v9175_v9 }
0x2b29   : > { %v9189_v15 = vmul.f32 1.442695, %v9185_v10 }
0x2b2a   : > { %v9181_v16 = vpop.xlane.xlu0 %9180  ;;  %v9178_v17 = vpop.xlane.xlu1 %9177 }
0x2b2b   : > { %11452 = vpow2.f32 %v9189_v15  ;;  %v9187_v11 = vsub.f32 %v9171_v49, %v9181_v16  ;;  %v9186_v13 = vsub.f32 %v9170_v51, %v9178_v17 }
0x2b2d   : > { %v9193_v24 = vmul.f32 1.442695, %v9187_v11  ;;  %v9191_v19 = vmul.f32 1.442695, %v9186_v13 }
0x2b2e   : > { %v9184_v12 = vpop.xlane.xlu0 %9183  ;;  %v8716_v39 = vpop.permute.xlu1 %8715 }
0x2b2f   : > { %11454 = vpow2.f32 %v9193_v24  ;;  %v9188_v53 = vsub.f32 %v9172_v7, %v9184_v12 }
0x2b30   : > { %11456 = vpow2.f32 %v9191_v19 }
0x2b31   : > { %v9195_v40 = vmul.f32 1.442695, %v9188_v53 }
0x2b32   : > { %v8718_v42 = vpop.permute.xlu1 %8717 }
0x2b33   : > { %11458 = vpow2.f32 %v9195_v40 }
0x2b35   : > { %v12841_v57 = vpop.eup %11452 }
0x2b36   : > { %v9197_v58 = vsel %vm938_vm6, %v12841_v57, 0.0 }
0x2b37   : > { %9198 = vadd.xlane.f32.xlu0 %v9197_v58 }
0x2b39   : > { %v12845_v20 = vpop.eup %11454 }
0x2b3a   : > { %v11457_v22 = vpop.eup %11456  ;;  %v9203_v29 = vsel %vm938_vm6, %v12845_v20, 0.0 }
0x2b3b   : > { %v9200_v32 = vsel %vm938_vm6, %v11457_v22, 0.0  ;;  %9204 = vadd.xlane.f32.xlu0 %v9203_v29 }
0x2b3c   : > { %9201 = vadd.xlane.f32.xlu1 %v9200_v32 }
0x2b3d   : > { %v12850_v33 = vpop.eup %11458 }
0x2b3e   : > { %v9206_v38 = vsel %vm938_vm6, %v12850_v33, 0.0 }
0x2b40   : > { %9207 = vadd.xlane.f32.xlu1 %v9206_v38 }
0x2b51   : > { %8719 = vrot.lane.b32.xlu1 %v12754_v27, %s11580_s29  ;;  %8713 = vrot.lane.b32.xlu0 %v12736_v35, %s11580_s29  ;;  %s11502_s29 = scalar_lea.vmem %s12943_s24, 128 }
0x2b52   : > { %p11503_p6 = scmp.ne.s32.totalorder %s12943_s24, %s11502_s29  ;;  %p11510_p3 = scmp.lt.s32.totalorder %s11508_s4, %s11502_s29 }
0x2b54   : > { %p11504_p10 = pnand %p11503_p6, %p12997_p9  ;;  %p11511_p4 = por %p11510_p3, %p11509_p2 }
0x2b56   : > { %p11505_p12 = pneg %p11504_p10 }
0x2b58   : > { %p11512_p7 = pnand %p11511_p4, %p11505_p12 }
0x2bc4   : > { %v9199_v50 = vpop.xlane.xlu0 %9198 }
0x2bc5   : > { %11460 = vrcp.f32 %v9199_v50 }
0x2bc8   : > { %v9205_v21 = vpop.xlane.xlu0 %9204 }
0x2bc9   : > { %v9202_v6 = vpop.xlane.xlu1 %9201 }
0x2bca   : > { %11462 = vrcp.f32 %v9202_v6 }
0x2bcb   : > { %11464 = vrcp.f32 %v9205_v21 }
0x2bcc   : > { %v8714_v47 = vpop.permute.xlu0 %8713 }
0x2bcd   : > { %v9208_v45 = vpop.xlane.xlu1 %9207  ;;  %v8725_v36 = vcombine.low %v8714_v47, %v8718_v42  ;;  %v8726_v14 = vcombine.high %v8714_v47, %v8718_v42 }
0x2bce   : > { %11466 = vrcp.f32 %v9208_v45 }
0x2bcf   : > { %v8733_v48 = vrot.slane %v8725_v36, %v11766_v46  ;;  %v8740_v27 = vrot.slane %v8726_v14, %v11766_v46  ;;  %v11461_v0 = vpop.eup %11460 }
0x2bd0   : > { %v9213_v24 = vmul.f32 %v11461_v0, %v12841_v57  ;;  %v9660_v57 = vld [vmem:[#allocation2 + $0x1a0] sm:$0xff] }
0x2bd1   : > { %v8720_v1 = vpop.permute.xlu1 %8719 }
0x2bd2   : > { %v8741_v54 = vcombine.low %v8716_v39, %v8720_v1  ;;  %v8742_v37 = vcombine.high %v8716_v39, %v8720_v1 }
0x2bd4   : > { %v8749_v25 = vrot.slane %v8741_v54, %v11766_v46  ;;  %v8756_v35 = vrot.slane %v8742_v37, %v11766_v46  ;;  %v11463_v7 = vpop.eup %11462 }
0x2bd5   : > { %v11465_v10 = vpop.eup %11464  ;;  %v9214_v19 = vmul.f32 %v11463_v7, %v11457_v22 }
0x2bd6   : > { %v8757_v41 = vcombine.low %v8733_v48, %v8749_v25  ;;  %v8758_v56 = vcombine.high %v8733_v48, %v8749_v25  ;;  %v8773_v59 = vcombine.low %v8740_v27, %v8756_v35  ;;  %v8774_v60 = vcombine.high %v8740_v27, %v8756_v35 }
0x2bd7   : > { %v9215_v40 = vmul.f32 %v11465_v10, %v12845_v20  ;;  %v9661_v20 = vld [vmem:[#allocation2 + $0x1a8] sm:$0xff] }
0x2bd8   : > { %v8765_v62 = vrot.slane %v8757_v41, %v11777_v55  ;;  %v8772_v31 = vrot.slane %v8758_v56, %v11777_v55  ;;  %v8781_v28 = vrot.slane %v8773_v59, %v11777_v55  ;;  %v8788_v30 = vrot.slane %v8774_v60, %v11777_v55  ;;  %v11467_v13 = vpop.eup %11466  ;;  %v9662_v41 = vld [vmem:[#allocation2 + $0x1b0] sm:$0xff]  ;;  %v9663_v56 = vld [vmem:[#allocation2 + $0x1b8] sm:$0xff] }
0x2bd9   : > { %v9216_v58 = vmul.f32 %v11467_v13, %v12850_v33  ;;  %v11258_v22 = vpack.c.bf16 %v9661_v20, %v9660_v57 }
0x2bda   : > { %v8793_v18 = vcombine.low %v8765_v62, %v8772_v31  ;;  %v10315_v34 = vcombine.high %v8765_v62, %v8772_v31  ;;  %v8809_v44 = vcombine.low %v8781_v28, %v8788_v30  ;;  %v10316_v49 = vcombine.high %v8781_v28, %v8788_v30 }
0x2bdb   : > { %v11261_v28 = vpack.c.bf16 %v9663_v56, %v9662_v41 }
0x2bdc   : > { %v8800_v63 = vrot.slane %v8793_v18, %v11766_v46  ;;  %v8808_v4 = vrot.slane %v10315_v34, %v11766_v46  ;;  %v8816_v23 = vrot.slane %v8809_v44, %v11766_v46  ;;  %v8824_v51 = vrot.slane %v10316_v49, %v11766_v46 }
0x2bde   : > { %v8825_v43 = vcombine.low %v8800_v63, %v8808_v4  ;;  %v8841_v52 = vcombine.low %v8816_v23, %v8824_v51  ;;  %v8826_v61 = vcombine.high %v8800_v63, %v8808_v4  ;;  %v8842_v5 = vcombine.high %v8816_v23, %v8824_v51 }
0x2be0   : > { %v8833_v8 = vrot.slane %v8825_v43, %v11777_v55  ;;  %v8849_v9 = vrot.slane %v8841_v52, %v11777_v55  ;;  %v8840_v15 = vrot.slane %v8826_v61, %v11777_v55  ;;  %v8856_v16 = vrot.slane %v8842_v5, %v11777_v55 }
0x2be2   : > { %v8857_v17 = vcombine.low %v8833_v8, %v8849_v9  ;;  %v8858_v11 = vcombine.high %v8833_v8, %v8849_v9  ;;  %v8859_v12 = vcombine.low %v8840_v15, %v8856_v16  ;;  %v8860_v53 = vcombine.high %v8840_v15, %v8856_v16 }
0x2be4   : > { %11048 = vmatpush3.msra.mxu0 %v8857_v17  ;;  %11053 = vmatpush3.msra.mxu1 %v8858_v11 }
0x2be5   : > { %11050 = vmatmul.mubr.msk.f32.vlgmr.msra.gmra.mrb[54].mxu0 %vm938_vm6, %v9213_v24  ;;  %11055 = vmatmul.mubr.msk.f32.vlgmr.msra.gmra.mrb[76].mxu1 %vm938_vm6, %v9214_v19 }
0x2be6   : > { %11057 = vmatprep.subr.mxu0 %v11575_v3  ;;  %11062 = vmatprep.subr.mxu1 %v11575_v3 }
0x2be7   : > { %11058 = vmatpush3.msra.mxu0 %v8859_v12  ;;  %11063 = vmatpush3.msra.mxu1 %v8860_v53 }
0x2be8   : > { %11059 = vmatprep.mubr.msk.f32.mxu0 %vm11574_vm0, %v11575_v3  ;;  %11064 = vmatprep.mubr.msk.f32.mxu1 %vm11574_vm0, %v11575_v3 }
0x2be9   : > { %11060 = vmatmul.mubr.msk.f32.vlgmr.msra.gmra.mrb[56].mxu0 %vm938_vm6, %v9215_v40  ;;  %11065 = vmatmul.mubr.msk.f32.vlgmr.msra.gmra.mrb[78].mxu1 %vm938_vm6, %v9216_v58 }
0x2bea   : > { %11257 = vmatprep.subr.bf16.mxu0 %v11573_v2  ;;  %11075 = vmatprep.mubr.msk.f32.mxu0 %vm11574_vm0, %v11575_v3 }
0x2beb   : > { %11263 = vmatprep.subr.bf16.mxu1 %v11573_v2  ;;  %11086 = vmatprep.mubr.msk.f32.mxu1 %vm11574_vm0, %v11575_v3 }
0x2bec   : > { %11259 = vmatpush3.bf16.msra.mxu0 %v11258_v22 }
0x2bed   : > { %11260 = vmatprep.subr.bf16.mxu0 %v11573_v2 }
0x2bf0   : > { %11262 = vmatpush3.bf16.msra.mxu0 %v11261_v28 }
0x2bf1   : > { %11269 = vmatprep.subr.bf16.mxu0 %v11573_v2 }
0x2cb8   : > { %v9286_v29 = vpop.f32.mrb[54].mxu0  ;;  %v9359_v32 = vpop.f32.mrb[76].mxu1 }
0x2cb9   : > { %v11051_v33 = vpop.f32.mrb[55].mxu0  ;;  %v11056_v38 = vpop.f32.mrb[77].mxu1 }
0x2cba   : > { %v9772_v38 = vld [vmem:[#allocation2 + $0x200] sm:$0xff] }
0x2cbc   : > { %v9432_v39 = vpop.f32.mrb[56].mxu0  ;;  %v9505_v50 = vpop.f32.mrb[78].mxu1 }
0x2cbd   : > { %v9509_v42 = vcombine.low %v9286_v29, %v9432_v39  ;;  %v9510_v21 = vcombine.high %v9286_v29, %v9432_v39  ;;  %v9525_v6 = vcombine.low %v9359_v32, %v9505_v50  ;;  %v9526_v45 = vcombine.high %v9359_v32, %v9505_v50  ;;  %v11061_v47 = vpop.f32.mrb[57].mxu0  ;;  %v11066_v36 = vpop.f32.mrb[79].mxu1  ;;  %v9770_v29 = vld [vmem:[#allocation2 + $0x1f0] sm:$0xff]  ;;  %v9771_v32 = vld [vmem:[#allocation2 + $0x1f8] sm:$0xff]  ;;  %v9773_v39 = vld [vmem:[#allocation2 + $0x208] sm:$0xff] }
0x2cbe   : > { %v11264_v33 = vpack.c.bf16 %v9771_v32, %v9770_v29  ;;  %v11267_v50 = vpack.c.bf16 %v9773_v39, %v9772_v38  ;;  %v9857_v36 = vld [vmem:[#allocation2 + $0x230] sm:$0xff] }
0x2cbf   : > { %v9517_v14 = vrot.slane %v9509_v42, %v11766_v46  ;;  %v9524_v1 = vrot.slane %v9510_v21, %v11766_v46  ;;  %v9533_v54 = vrot.slane %v9525_v6, %v11766_v46  ;;  %v9540_v37 = vrot.slane %v9526_v45, %v11766_v46  ;;  %v9854_v42 = vld [vmem:[#allocation2 + $0x218] sm:$0xff]  ;;  %v9855_v21 = vld [vmem:[#allocation2 + $0x220] sm:$0xff]  ;;  %v9856_v45 = vld [vmem:[#allocation2 + $0x228] sm:$0xff] }
0x2cc0   : > { %11265 = vmatpush3.bf16.msra.mxu1 %v11264_v33  ;;  %v11273_v47 = vpack.c.bf16 %v9856_v45, %v9855_v21 }
0x2cc1   : > { %v9541_v48 = vcombine.low %v9517_v14, %v9533_v54  ;;  %v9542_v27 = vcombine.high %v9517_v14, %v9533_v54  ;;  %v9557_v25 = vcombine.low %v9524_v1, %v9540_v37  ;;  %v9558_v35 = vcombine.high %v9524_v1, %v9540_v37  ;;  %11266 = vmatprep.subr.bf16.mxu1 %v11573_v2  ;;  %v9858_v14 = vld [vmem:[#allocation2 + $0x238] sm:$0xff] }
0x2cc2   : > { %v11276_v1 = vpack.c.bf16 %v9858_v14, %v9857_v36 }
0x2cc3   : > { %v9549_v59 = vrot.slane %v9541_v48, %v11777_v55  ;;  %v9556_v60 = vrot.slane %v9542_v27, %v11777_v55  ;;  %v9565_v62 = vrot.slane %v9557_v25, %v11777_v55  ;;  %v9572_v31 = vrot.slane %v9558_v35, %v11777_v55 }
0x2cc4   : > { %11268 = vmatpush3.bf16.msra.mxu1 %v11267_v50 }
0x2cc5   : > { %v9577_v30 = vcombine.low %v9549_v59, %v9556_v60  ;;  %v10329_v18 = vcombine.high %v9549_v59, %v9556_v60  ;;  %v9593_v34 = vcombine.low %v9565_v62, %v9572_v31  ;;  %v10330_v44 = vcombine.high %v9565_v62, %v9572_v31  ;;  %11281 = vmatprep.subr.bf16.mxu1 %v11573_v2  ;;  %v10333_v60 = vld [vmem:[#allocation2 + $0x268] ss:$0 sm:$0xff]  ;;  %v10334_v31 = vld [vmem:[#allocation2 + $0x260] ss:$0 sm:$0xff] }
0x2cc7   : > { %v9584_v49 = vrot.slane %v9577_v30, %v11766_v46  ;;  %v9592_v63 = vrot.slane %v10329_v18, %v11766_v46  ;;  %v9600_v4 = vrot.slane %v9593_v34, %v11766_v46  ;;  %v9608_v23 = vrot.slane %v10330_v44, %v11766_v46  ;;  %v9859_v18 = vld [vmem:[#allocation2 + $0x240] sm:$0xff]  ;;  %v9860_v34 = vld [vmem:[#allocation2 + $0x248] sm:$0xff] }
0x2cc8   : > { %v11279_v44 = vpack.c.bf16 %v9860_v34, %v9859_v18 }
0x2cc9   : > { %v9610_v51 = vcombine.high %v9584_v49, %v9592_v63  ;;  %v9626_v0 = vcombine.high %v9600_v4, %v9608_v23  ;;  %v9609_v43 = vcombine.low %v9584_v49, %v9592_v63  ;;  %v9625_v52 = vcombine.low %v9600_v4, %v9608_v23  ;;  %v10335_v49 = vld [vmem:[#allocation2 + $0x1e0] ss:$0 sm:$0xff] }
0x2ccb   : > { %v9624_v61 = vrot.slane %v9610_v51, %v11777_v55  ;;  %v9640_v5 = vrot.slane %v9626_v0, %v11777_v55  ;;  %v9617_v7 = vrot.slane %v9609_v43, %v11777_v55  ;;  %v9633_v8 = vrot.slane %v9625_v52, %v11777_v55  ;;  %v10331_v55 = vld [vmem:[#allocation2 + $0x170] ss:$0 sm:$0xff]  ;;  %v10337_v0 = vld [vmem:[#allocation2 + $0x1e8] ss:$0 sm:$0xff] }
0x2ccd   : > { %v9643_v9 = vcombine.low %v9624_v61, %v9640_v5  ;;  %v9642_v10 = vcombine.high %v9617_v7, %v9633_v8  ;;  %v9644_v15 = vcombine.high %v9624_v61, %v9640_v5  ;;  %v9641_v16 = vcombine.low %v9617_v7, %v9633_v8 }
0x2ccf   : > { %9650 = vrot.lane.b32.xlu1 %v9643_v9, %s11584_s8  ;;  %9646 = vrot.lane.b32.xlu0 %v9642_v10, %s11585_s9  ;;  %v9967_v9 = vld [vmem:[#allocation2 + $0x4b8] sm:$0xff]  ;;  %v9968_v10 = vld [vmem:[#allocation2 + $0x4c0] sm:$0xff] }
0x2cd3   : > { %9654 = vrot.lane.b32.xlu0 %v9644_v15, %s11586_s10  ;;  %v11282_v15 = vpack.c.bf16 %v9968_v10, %v9967_v9 }
0x2d41   : > { %v9647_v46 = vpop.permute.xlu0 %9646  ;;  %v9651_v17 = vpop.permute.xlu1 %9650 }
0x2d42   : > { %v9657_v11 = vsel %vm938_vm6, %v9641_v16, %v9647_v46  ;;  %v9969_v16 = vld [vmem:[#allocation2 + $0x4c8] sm:$0xff]  ;;  %v9970_v46 = vld [vmem:[#allocation2 + $0x4d0] sm:$0xff] }
0x2d43   : > { %v9658_v24 = vsel %vm255_vm4, %v9657_v11, %v9651_v17  ;;  %v11285_v17 = vpack.c.bf16 %v9970_v46, %v9969_v16 }
0x2d45   : > { %v9655_v13 = vpop.permute.xlu0 %9654 }
0x2d46   : > { %v9659_v19 = vsel %vm1743_vm8, %v9658_v24, %v9655_v13 }
0x2d47   : > { %11076 = vmatmul.mubr.msk.f32.vlgmr.msra.gmra.mrb[58].mxu0 %vm422_vm5, %v9659_v19 }
0x2d48   : > { %11105 = vmatprep.mubr.msk.f32.mxu0 %vm11574_vm0, %v11575_v3 }
0x2e1a   : > { %v9738_v12 = vpop.f32.mrb[58].mxu0 }
0x2e1b   : > { %v9739_v53 = vadd.f32 %v10331_v55, %v9738_v12  ;;  %v11077_v40 = vpop.f32.mrb[59].mxu0 }
0x2e1d   : > { %v9742_v58 = vadd.f32 %v9739_v53, %v12776_v26  ;;  %v9853_v26 = vld [vmem:[#allocation2 + $0x210] sm:$0xff] }
0x2e1e   : > { %v11270_v6 = vpack.c.bf16 %v9854_v42, %v9853_v26 }
0x2e1f   : > { %v9743_v57 = vsel %vm422_vm5, %v9742_v58, 0.0  ;;  %v9747_v20 = vmul.f32 %v9742_v58, %v9742_v58 }
0x2e20   : > { %9744 = vadd.xlane.f32.xlu1 %v9743_v57  ;;  %11271 = vmatpush3.bf16.msra.mxu0 %v11270_v6  ;;  %v10339_v57 = vld [vmem:[#allocation2 + $0x278] ss:$0 sm:$0xff] }
0x2e21   : > { %v9748_v22 = vsel %vm422_vm5, %v9747_v20, 0.0  ;;  %11272 = vmatprep.subr.bf16.mxu0 %v11573_v2 }
0x2e22   : > { %9749 = vadd.xlane.f32.xlu0 %v9748_v22  ;;  %v10340_v22 = vld [vmem:[#allocation2 + $0x270] ss:$0 sm:$0xff] }
0x2e24   : > { %11274 = vmatpush3.bf16.msra.mxu0 %v11273_v47 }
0x2e25   : > { %11275 = vmatprep.subr.bf16.mxu0 %v11573_v2 }
0x2e28   : > { %11277 = vmatpush3.bf16.msra.mxu0 %v11276_v1 }
0x2e29   : > { %11278 = vmatprep.subr.bf16.mxu0 %v11573_v2 }
0x2e2c   : > { %11280 = vmatpush3.bf16.msra.mxu0 %v11279_v44 }
0x2ead   : > { %v9745_v54 = vpop.xlane.xlu1 %9744 }
0x2eae   : > { %v9746_v37 = vmul.f32 0.03125, %v9745_v54 }
0x2eaf   : > { %v9750_v48 = vpop.xlane.xlu0 %9749 }
0x2eb0   : > { %v9752_v27 = vmul.f32 %v9746_v37, %v9746_v37  ;;  %v9751_v25 = vmul.f32 0.03125, %v9750_v48  ;;  %v9754_v56 = vsub.f32 %v9742_v58, %v9746_v37 }
0x2eb2   : > { %v9753_v35 = vsub.f32 %v9751_v25, %v9752_v27 }
0x2eb4   : > { %v9755_v41 = vadd.f32 1e-05, %v9753_v35 }
0x2eb6   : > { %11468 = vrsqrt.f32 %v9755_v41 }
0x2ec0   : > { %v11469_v59 = vpop.eup %11468 }
0x2ec1   : > { %v9757_v62 = vmul.f32 %v11469_v59, %v9754_v56 }
0x2ec3   : > { %v9763_v28 = vmul.f32 %v10333_v60, %v9757_v62 }
0x2ec5   : > { %v9769_v30 = vadd.f32 %v10334_v31, %v9763_v28 }
0x2ec7   : > { %11087 = vmatmul.mubr.msk.f32.vlgmr.msra.gmra.mrb[80].mxu1 %vm422_vm5, %v9769_v30 }
0x2ec8   : > { %11116 = vmatprep.mubr.msk.f32.mxu1 %vm11574_vm0, %v11575_v3  ;;  %11283 = vmatpush3.bf16.msra.mxu1 %v11282_v15 }
0x2ec9   : > { %11284 = vmatprep.subr.bf16.mxu1 %v11573_v2  ;;  %v10341_v2 = vld [vmem:[#allocation2 + $0x4b0] ss:$0 sm:$0xff] }
0x2ecc   : > { %11286 = vmatpush3.bf16.msra.mxu1 %v11285_v17 }
0x2f9a   : > { %v9848_v63 = vpop.f32.mrb[80].mxu1 }
0x2f9b   : > { %v9849_v4 = vadd.f32 %v10335_v49, %v9848_v63  ;;  %v11088_v23 = vpop.f32.mrb[81].mxu1 }
0x2f9d   : > { %v9852_v51 = vmax.f32 %v9849_v4, 0.0 }
0x2f9f   : > { %11106 = vmatmul.mubr.msk.f32.vlgmr.msra.gmra.mrb[60].mxu0 %vm1952_vm9, %v9852_v51 }
0x3072   : > { %v9935_v43 = vpop.f32.mrb[60].mxu0 }
0x3073   : > { %v9936_v52 = vadd.f32 %v10337_v0, %v9935_v43  ;;  %v11107_v61 = vpop.f32.mrb[61].mxu0 }
0x3075   : > { %v9939_v5 = vadd.f32 %v9936_v52, %v9769_v30 }
0x3077   : > { %v9940_v7 = vsel %vm422_vm5, %v9939_v5, 0.0  ;;  %v9944_v8 = vmul.f32 %v9939_v5, %v9939_v5 }
0x3078   : > { %9941 = vadd.xlane.f32.xlu0 %v9940_v7 }
0x3079   : > { %v9945_v3 = vsel %vm422_vm5, %v9944_v8, 0.0 }
0x307c   : > { %9946 = vadd.xlane.f32.xlu0 %v9945_v3 }
0x3105   : > { %v9942_v11 = vpop.xlane.xlu0 %9941 }
0x3106   : > { %v9943_v13 = vmul.f32 0.03125, %v9942_v11 }
0x3108   : > { %v9949_v19 = vmul.f32 %v9943_v13, %v9943_v13  ;;  %v9951_v40 = vsub.f32 %v9939_v5, %v9943_v13 }
0x3109   : > { %v9947_v24 = vpop.xlane.xlu0 %9946 }
0x310a   : > { %v9948_v55 = vmul.f32 0.03125, %v9947_v24 }
0x310c   : > { %v9950_v12 = vsub.f32 %v9948_v55, %v9949_v19 }
0x310e   : > { %v9952_v53 = vadd.f32 1e-05, %v9950_v12 }
0x3110   : > { %11470 = vrsqrt.f32 %v9952_v53 }
0x311a   : > { %v11471_v58 = vpop.eup %11470 }
0x311b   : > { %v9954_v20 = vmul.f32 %v11471_v58, %v9951_v40 }
0x311d   : > { %v9960_v29 = vmul.f32 %v10339_v57, %v9954_v20 }
0x311f   : > { %v9966_v32 = vadd.f32 %v10340_v22, %v9960_v29 }
0x3121   : > { %11117 = vmatmul.mubr.msk.f32.vlgmr.msra.gmra.mrb[82].mxu1 %vm422_vm5, %v9966_v32 }
0x31f4   : > { %v10045_v33 = vpop.f32.mrb[82].mxu1 }
0x31f5   : > { %v10046_v38 = vadd.f32 %v10341_v2, %v10045_v33  ;;  %v11118_v39 = vpop.f32.mrb[83].mxu1 }
0x31f7   : > { %10049 = vst [vmem:[%s187_s20] sm:$0xff] %v10046_v38 }
0x31f8   : > { %11515 = shalt.err (!%p11512_p7)
}
0x31f9   : > { %s11516_s5 = scalar_lea.hbm %s12941_s27, 128  ;;  %s11520_s8 = scalar_lea.hbm %s12986_s3, 256 }
0x31fa   : > { %p11517_p8 = scmp.ne.s32.totalorder %s12941_s27, %s11516_s5  ;;  %p11521_p1 = scmp.lt.u32.totalorder %s12941_s27, %s12986_s3 }
0x31fb   : > { %p11522_p0 = scmp.lt.u32.totalorder %s11520_s8, %s11516_s5  ;;  %p11524_p6 = scmp.lt.u32.totalorder %s11516_s5, %s12941_s27 }
0x31fc   : > { %p11518_p11 = pnand %p11517_p8, %p12997_p9 }
0x31fd   : > { %p11523_p5 = por %p11522_p0, %p11521_p1 }
0x31fe   : > { %p11519_p13 = pneg %p11518_p11 }
0x31ff   : > { %p11525_p10 = por %p11524_p6, %p11523_p5 }
0x3201   : > { %p11526_p12 = pnand %p11525_p10, %p11519_p13 }
0x3203   : > { %11529 = shalt.err (!%p11526_p12)
}
0x3204   : > { %11291 = dma.vmem_to_hbm [thread:$0]  (%p12997_p9), %s12943_s24, 128, %s12941_s27, %s10051_s28  }
0x3205 PF: > { %p11303_p2 = scmp.ge.s32.totalorder %s11568_s15, 2  ;;  %s10076_s11 = sand.u32 1, %s11556_s12  }
0x3206   : > { %p12998_p3 = scmp.ne.s32.totalorder %s12991_s23, 0  ;;  %s10077_s17 = scalar_lea.sflag [#allocation4], %s10076_s11 }
0x3208   : > { %p11298_p4 = pnand %p11303_p2, %p12998_p3 }
0x320a   : > { %11551 = dma.done.wait (!%p11298_p4), %s10077_s17, 128  }
0x320b   : > { %11553 = vsyncadd (!%p11298_p4), %s10077_s17, 4294967168  ;;  %p14_p7 = scmp.ge.s32.totalorder %s11634_s18, 4   ;;  %s12999_s12 = smov %s11560_s13 }
0x320c   : > { %s13000_s13 = smov %s11564_s14  ;;  %s13001_s14 = smov %s11645_s21 }
0x320d   : > { %s13002_s15 = smov %s11634_s18  ;;  %16 = sbr.rel (!%p14_p7) target bundleno = 4 (0x4), region = 75 }
0x3214   :  { %10082 = vsyncpa [#allocation3], 1 }
0x3215   :  { %10084 = vsyncpa [#allocation3 + $0x1], 1 }
0x3216   :  { %10085 = vsyncpa [#allocation4], 1 }
0x3217   :  { %10087 = vsyncpa [#allocation4 + $0x1], 1 }

</bundles_post_ra>
